<compile_context>
chip_gen: v5e
topology: v5e:2x2
jax: 0.10.0
libtpu: 0.0.40
codegen_flags: <defaults>
</compile_context>

<pallas_src>
import jax
import jax.numpy as jnp
from jax.experimental import pallas as pl
from jax.experimental.pallas import tpu as pltpu


def _leaky_relu(x, slope=0.2):
    return jnp.where(x > 0, x, slope * x)


def _round_up(x, m):
    return ((x + m - 1) // m) * m


def discriminator_kernel(x_ref, w1_ref, b1_ref, w2_ref, b2_ref, w3_ref, b3_ref,
                         o_ref):
    # x_ref: (TILE_N, D) bf16 activation tile; weights resident across grid.
    x = x_ref[...]

    # Layer 1: Linear(D, 1024) on the MXU (bf16 operands, f32 accumulation).
    h1 = jnp.dot(x, w1_ref[...], preferred_element_type=jnp.float32)
    h1 = _leaky_relu(h1 + b1_ref[...])                        # f32 on the VPU

    # Layer 2: Linear(1024, 512) on the MXU.
    h2 = jnp.dot(h1.astype(jnp.bfloat16), w2_ref[...],
                 preferred_element_type=jnp.float32)
    h2 = _leaky_relu(h2 + b2_ref[...])                        # f32 on the VPU

    # Layer 3: Linear(512, 1) as VPU multiply + XLU lane reduction; w3_ref is
    # the weight row reshaped to (1, 512) f32.
    logits = jnp.sum(h2 * w3_ref[...], axis=-1, keepdims=True) + b3_ref[...]

    # Sigmoid: exp on the EUP, reciprocal via the approximate EUP path
    # (rel. error ~2^-12, far below the bf16-matmul noise floor).
    o_ref[...] = pl.reciprocal(1.0 + jnp.exp(-logits),
                               approx=True).astype(o_ref.dtype)


def _pick_tile_n(n, d, h1, h2, budget_bytes):
    """Largest batch tile (multiple of 8, <=512) whose VMEM footprint fits."""
    tile_n = min(512, _round_up(n, 8))
    # Weights use constant index_maps (fetched once); biases are tiny.
    weight_bytes = (d * h1 + h1 * h2) * 2 + (h1 + 2 * h2 + 1) * 4
    while tile_n > 8:
        act_bytes = 2 * tile_n * d * 2            # streamed x tile, dbl-buffered
        tmp_bytes = tile_n * (h1 + h2) * 4        # f32 intermediates
        out_bytes = 2 * tile_n * 4
        if weight_bytes + act_bytes + tmp_bytes + out_bytes <= budget_bytes:
            break
        tile_n = max(8, _round_up(tile_n // 2, 8))
    return tile_n


def discriminator_forward(img, params, *, tile_n=None):
    """img: (N, C, H, W) float32. Returns (N, 1) validity in [0, 1]."""
    w1, b1, w2, b2, w3, b3 = params
    n = img.shape[0]
    d, h1 = w1.shape
    h2 = w2.shape[1]

    # Flatten exactly like PyTorch img.view(N, -1); cast activations to bf16
    # for the MXU (halves activation HBM/VMEM traffic).
    x = img.reshape(n, -1).astype(jnp.bfloat16)
    assert x.shape[1] == d, (x.shape, d)

    # Batch tile: multiple of 8 sublanes, pad N up to a whole number of tiles,
    # slice the padding off afterwards.
    if tile_n is None:
        tile_n = _pick_tile_n(n, d, h1, h2, budget_bytes=40 << 20)
    tile_n = max(8, min(tile_n, _round_up(n, 8)))
    n_pad = _round_up(n, tile_n)
    if n_pad != n:
        x = jnp.pad(x, ((0, n_pad - n), (0, 0)))
    grid = (n_pad // tile_n,)

    # Weight layout presented to the kernel:
    #   w1: (D, 1024) bf16, w2: (1024, 512) bf16  -> MXU operands
    #   w3: (1, 512) f32 row                       -> VPU reduce
    #   biases: f32 broadcast rows
    w1b = w1.astype(jnp.bfloat16)
    w2b = w2.astype(jnp.bfloat16)
    w3r = w3.reshape(1, -1).astype(jnp.float32)
    b1r = b1.reshape(1, -1).astype(jnp.float32)
    b2r = b2.reshape(1, -1).astype(jnp.float32)
    b3r = b3.reshape(1, 1).astype(jnp.float32)

    const0 = lambda i: (0, 0)  # weights/biases stay resident (block 0 always)

    flops = 2 * n_pad * (d * h1 + h1 * h2 + h2)
    bytes_accessed = (
        x.size * 2 + w1b.size * 2 + w2b.size * 2
        + (w3r.size + b1r.size + b2r.size + b3r.size) * 4 + n_pad * 4)
    cost = pl.CostEstimate(flops=flops, transcendentals=2 * n_pad,
                           bytes_accessed=bytes_accessed)

    # Scoped-VMEM request: pessimistically double-count the weights (in case
    # the pipeliner allocates two buffers), clamp under v7x's 64 MiB physical.
    weight_vmem = 2 * (w1b.size * 2 + w2b.size * 2)
    act_vmem = 2 * tile_n * d * 2 + tile_n * (h1 + h2) * 4 + 2 * tile_n * 4
    vmem_limit = int(min(max(weight_vmem + act_vmem + (4 << 20), 32 << 20),
                         56 << 20))

    out = pl.pallas_call(
        discriminator_kernel,
        out_shape=jax.ShapeDtypeStruct((n_pad, 1), jnp.float32),
        grid=grid,
        in_specs=[
            pl.BlockSpec((tile_n, d), lambda i: (i, 0)),   # x tile (streamed)
            pl.BlockSpec((d, h1), const0),                 # w1 (resident)
            pl.BlockSpec((1, h1), const0),                 # b1
            pl.BlockSpec((h1, h2), const0),                # w2 (resident)
            pl.BlockSpec((1, h2), const0),                 # b2
            pl.BlockSpec((1, h2), const0),                 # w3 row
            pl.BlockSpec((1, 1), const0),                  # b3
        ],
        out_specs=pl.BlockSpec((tile_n, 1), lambda i: (i, 0)),
        compiler_params=pltpu.CompilerParams(
            dimension_semantics=("parallel",),
            vmem_limit_bytes=vmem_limit,
        ),
        cost_estimate=cost,
    )(x, w1b, b1r, w2b, b2r, w3r, b3r)

    return out[:n]


def init_params(key, img_dim, h1=1024, h2=512, out=1):
    """Synthetic parameter init; shapes match the nn.Linear layers.

    Weights stored as (in_features, out_features) in f32 (the wrapper handles
    bf16 casting / layout for the kernel); biases as (1, out_features).
    """
    ks = jax.random.split(key, 6)
    s1 = 1.0 / jnp.sqrt(img_dim)
    s2 = 1.0 / jnp.sqrt(h1)
    s3 = 1.0 / jnp.sqrt(h2)
    w1 = jax.random.uniform(ks[0], (img_dim, h1), jnp.float32, -s1, s1)
    b1 = jax.random.uniform(ks[1], (1, h1), jnp.float32, -s1, s1)
    w2 = jax.random.uniform(ks[2], (h1, h2), jnp.float32, -s2, s2)
    b2 = jax.random.uniform(ks[3], (1, h2), jnp.float32, -s2, s2)
    w3 = jax.random.uniform(ks[4], (h2, out), jnp.float32, -s3, s3)
    b3 = jax.random.uniform(ks[5], (1, out), jnp.float32, -s3, s3)
    return (w1, b1, w2, b2, w3, b3)


def reference_forward(img, params):
    """Pure-JAX f32 reference matching the PyTorch module exactly."""
    w1, b1, w2, b2, w3, b3 = params
    x = img.reshape(img.shape[0], -1)
    h = _leaky_relu(x @ w1 + b1)
    h = _leaky_relu(h @ w2 + b2)
    return jax.nn.sigmoid(h @ w3 + b3)


if __name__ == "__main__":
    # Small shapes consistent with the module: img_size=16, channels=3, batch=2.
    batch, channels, img_size = 2, 3, 16
    img_dim = channels * img_size * img_size  # 768

    key = jax.random.PRNGKey(0)
    k_img, k_params = jax.random.split(key)
    img = jax.random.normal(k_img, (batch, channels, img_size, img_size),
                            dtype=jnp.float32)
    params = init_params(k_params, img_dim)

    out = discriminator_forward(img, params)
    out = jax.block_until_ready(out)

    ref = reference_forward(img, params)
    assert out.shape == (batch, 1), out.shape
    # bf16 MXU operands (f32 accumulation) + approx reciprocal vs f32 reference
    # -> loose tolerance.
    assert jnp.allclose(out, ref, atol=1e-2, rtol=1e-2), (out, ref)
    print("KERNEL_OK")
</pallas_src>

<mosaic_0001>
module attributes {stable_mosaic.version = 11 : i64} {
  func.func @discriminator_kernel(%arg0: i32, %arg1: memref<8x768xbf16, #tpu.memory_space<vmem>>, %arg2: memref<768x1024xbf16, #tpu.memory_space<vmem>>, %arg3: memref<1x1024xf32, #tpu.memory_space<vmem>>, %arg4: memref<1024x512xbf16, #tpu.memory_space<vmem>>, %arg5: memref<1x512xf32, #tpu.memory_space<vmem>>, %arg6: memref<1x512xf32, #tpu.memory_space<vmem>>, %arg7: memref<1x1xf32, #tpu.memory_space<vmem>>, %arg8: memref<8x1xf32, #tpu.memory_space<vmem>>) attributes {dimension_semantics = [#tpu.dimension_semantics<parallel>], iteration_bounds = array<i64: 1>, scalar_prefetch = 0 : i64, scratch_operands = 0 : i64, tpu.core_type = #tpu.core_type<tc>, window_params = [{transform_indices = @transform_0, window_bounds = array<i64: 8, 768>}, {pipeline_mode = #tpu.pipeline_mode<synchronous>, transform_indices = @transform_1, window_bounds = array<i64: 768, 1024>}, {pipeline_mode = #tpu.pipeline_mode<synchronous>, transform_indices = @transform_2, window_bounds = array<i64: 1, 1024>}, {pipeline_mode = #tpu.pipeline_mode<synchronous>, transform_indices = @transform_3, window_bounds = array<i64: 1024, 512>}, {pipeline_mode = #tpu.pipeline_mode<synchronous>, transform_indices = @transform_4, window_bounds = array<i64: 1, 512>}, {pipeline_mode = #tpu.pipeline_mode<synchronous>, transform_indices = @transform_5, window_bounds = array<i64: 1, 512>}, {pipeline_mode = #tpu.pipeline_mode<synchronous>, transform_indices = @transform_6, window_bounds = array<i64: 1, 1>}, {transform_indices = @transform_7, window_bounds = array<i64: 8, 1>}]} {
    %c0 = arith.constant 0 : index
    %c0_0 = arith.constant 0 : index
    %0 = vector.load %arg1[%c0, %c0_0] : memref<8x768xbf16, #tpu.memory_space<vmem>>, vector<8x768xbf16>
    %c0_1 = arith.constant 0 : index
    %c0_2 = arith.constant 0 : index
    %1 = vector.load %arg2[%c0_1, %c0_2] : memref<768x1024xbf16, #tpu.memory_space<vmem>>, vector<768x1024xbf16>
    %cst = arith.constant dense<0.000000e+00> : vector<8x1024xf32>
    %2 = tpu.matmul %0, %1, %cst {dimension_numbers = #tpu.dot_dimension_numbers<[1], [0], [0], [1], [0, 0, 1, 1], [], []>} : vector<8x768xbf16>, vector<768x1024xbf16>, vector<8x1024xf32> -> vector<8x1024xf32>
    %c0_3 = arith.constant 0 : index
    %c0_4 = arith.constant 0 : index
    %3 = vector.load %arg3[%c0_3, %c0_4] : memref<1x1024xf32, #tpu.memory_space<vmem>>, vector<1x1024xf32>
    %4 = vector.broadcast %3 : vector<1x1024xf32> to vector<8x1024xf32>
    %5 = arith.addf %2, %4 : vector<8x1024xf32>
    %cst_5 = arith.constant 0.000000e+00 : f32
    %6 = vector.broadcast %cst_5 : f32 to vector<8x1024xf32>
    %7 = arith.cmpf ogt, %5, %6 : vector<8x1024xf32>
    %cst_6 = arith.constant 2.000000e-01 : f32
    %8 = vector.broadcast %cst_6 : f32 to vector<8x1024xf32>
    %9 = arith.mulf %8, %5 : vector<8x1024xf32>
    %10 = arith.select %7, %5, %9 : vector<8x1024xi1>, vector<8x1024xf32>
    %11 = arith.truncf %10 : vector<8x1024xf32> to vector<8x1024xbf16>
    %c0_7 = arith.constant 0 : index
    %c0_8 = arith.constant 0 : index
    %12 = vector.load %arg4[%c0_7, %c0_8] : memref<1024x512xbf16, #tpu.memory_space<vmem>>, vector<1024x512xbf16>
    %cst_9 = arith.constant dense<0.000000e+00> : vector<8x512xf32>
    %13 = tpu.matmul %11, %12, %cst_9 {dimension_numbers = #tpu.dot_dimension_numbers<[1], [0], [0], [1], [0, 0, 1, 1], [], []>} : vector<8x1024xbf16>, vector<1024x512xbf16>, vector<8x512xf32> -> vector<8x512xf32>
    %c0_10 = arith.constant 0 : index
    %c0_11 = arith.constant 0 : index
    %14 = vector.load %arg5[%c0_10, %c0_11] : memref<1x512xf32, #tpu.memory_space<vmem>>, vector<1x512xf32>
    %15 = vector.broadcast %14 : vector<1x512xf32> to vector<8x512xf32>
    %16 = arith.addf %13, %15 : vector<8x512xf32>
    %cst_12 = arith.constant 0.000000e+00 : f32
    %17 = vector.broadcast %cst_12 : f32 to vector<8x512xf32>
    %18 = arith.cmpf ogt, %16, %17 : vector<8x512xf32>
    %cst_13 = arith.constant 2.000000e-01 : f32
    %19 = vector.broadcast %cst_13 : f32 to vector<8x512xf32>
    %20 = arith.mulf %19, %16 : vector<8x512xf32>
    %21 = arith.select %18, %16, %20 : vector<8x512xi1>, vector<8x512xf32>
    %c0_14 = arith.constant 0 : index
    %c0_15 = arith.constant 0 : index
    %22 = vector.load %arg6[%c0_14, %c0_15] : memref<1x512xf32, #tpu.memory_space<vmem>>, vector<1x512xf32>
    %23 = vector.broadcast %22 : vector<1x512xf32> to vector<8x512xf32>
    %24 = arith.mulf %21, %23 : vector<8x512xf32>
    %cst_16 = arith.constant dense<0.000000e+00> : vector<8xf32>
    %25 = vector.multi_reduction <add>, %24, %cst_16 [1] : vector<8x512xf32> to vector<8xf32>
    %26 = vector.shape_cast %25 : vector<8xf32> to vector<8x1xf32>
    %c0_17 = arith.constant 0 : index
    %c0_18 = arith.constant 0 : index
    %27 = vector.load %arg7[%c0_17, %c0_18] : memref<1x1xf32, #tpu.memory_space<vmem>>, vector<1x1xf32>
    %28 = vector.broadcast %27 : vector<1x1xf32> to vector<8x1xf32>
    %29 = arith.addf %26, %28 : vector<8x1xf32>
    %cst_19 = arith.constant 0.000000e+00 : f32
    %30 = vector.broadcast %cst_19 : f32 to vector<8x1xf32>
    %31 = arith.subf %30, %29 : vector<8x1xf32>
    %32 = math.exp %31 : vector<8x1xf32>
    %cst_20 = arith.constant 1.000000e+00 : f32
    %33 = vector.broadcast %cst_20 : f32 to vector<8x1xf32>
    %34 = arith.addf %33, %32 : vector<8x1xf32>
    %35 = tpu.reciprocal %34 {approx = true} : vector<8x1xf32> -> vector<8x1xf32>
    %c0_21 = arith.constant 0 : index
    %c0_22 = arith.constant 0 : index
    %36 = vector.load %arg8[%c0_21, %c0_22] : memref<8x1xf32, #tpu.memory_space<vmem>>, vector<8x1xf32>
    tpu.vector_store %arg8[%c0_21, %c0_22], %35 {strides = array<i32>} : memref<8x1xf32, #tpu.memory_space<vmem>>, vector<8x1xf32>,
    return
  }
  func.func @transform_0(%arg0: i32) -> (i32, i32) {
    %c0_i32 = arith.constant 0 : i32
    %c0_i32_0 = arith.constant 0 : i32
    return %arg0, %c0_i32 : i32, i32
  }
  func.func @transform_1(%arg0: i32) -> (i32, i32) {
    %c0_i32 = arith.constant 0 : i32
    %c0_i32_0 = arith.constant 0 : i32
    %c0_i32_1 = arith.constant 0 : i32
    return %c0_i32, %c0_i32_0 : i32, i32
  }
  func.func @transform_2(%arg0: i32) -> (i32, i32) {
    %c0_i32 = arith.constant 0 : i32
    %c0_i32_0 = arith.constant 0 : i32
    %c0_i32_1 = arith.constant 0 : i32
    return %c0_i32, %c0_i32_0 : i32, i32
  }
  func.func @transform_3(%arg0: i32) -> (i32, i32) {
    %c0_i32 = arith.constant 0 : i32
    %c0_i32_0 = arith.constant 0 : i32
    %c0_i32_1 = arith.constant 0 : i32
    return %c0_i32, %c0_i32_0 : i32, i32
  }
  func.func @transform_4(%arg0: i32) -> (i32, i32) {
    %c0_i32 = arith.constant 0 : i32
    %c0_i32_0 = arith.constant 0 : i32
    %c0_i32_1 = arith.constant 0 : i32
    return %c0_i32, %c0_i32_0 : i32, i32
  }
  func.func @transform_5(%arg0: i32) -> (i32, i32) {
    %c0_i32 = arith.constant 0 : i32
    %c0_i32_0 = arith.constant 0 : i32
    %c0_i32_1 = arith.constant 0 : i32
    return %c0_i32, %c0_i32_0 : i32, i32
  }
  func.func @transform_6(%arg0: i32) -> (i32, i32) {
    %c0_i32 = arith.constant 0 : i32
    %c0_i32_0 = arith.constant 0 : i32
    %c0_i32_1 = arith.constant 0 : i32
    return %c0_i32, %c0_i32_0 : i32, i32
  }
  func.func @transform_7(%arg0: i32) -> (i32, i32) {
    %c0_i32 = arith.constant 0 : i32
    %c0_i32_0 = arith.constant 0 : i32
    return %arg0, %c0_i32 : i32, i32
  }
}

</mosaic_0001>

<bundles_post_ra>
// kernel: tpu_custom_call.1
= control target key start
LH: loop header
LB: loop body
LE: loop exit
PB: predicated region body
PF: predicated region fallthrough
CT: control target
= control target key end

     0   :  { %s8795_s0 = inlined_call_operand.hbm [shape: bf16[8,768], index: 0, kind: input, shape index: {}]   ;;  %s8796_s1 = inlined_call_operand.hbm [shape: bf16[768,1024], index: 1, kind: input, shape index: {}]   ;;  %s8797_s2 = inlined_call_operand.hbm [shape: f32[1,1024], index: 2, kind: input, shape index: {}]   ;;  %s8798_s3 = inlined_call_operand.hbm [shape: bf16[1024,512], index: 3, kind: input, shape index: {}]   ;;  %s8799_s4 = inlined_call_operand.hbm [shape: f32[1,512], index: 4, kind: input, shape index: {}]   ;;  %s8800_s5 = inlined_call_operand.hbm [shape: f32[1,512], index: 5, kind: input, shape index: {}]   ;;  %s8801_s6 = inlined_call_operand.<no memory space> [shape: f32[1,1], index: 6, kind: input, shape index: {}]   ;;  %s8802_s7 = inlined_call_operand.vmem [shape: f32[8,1], index: 7, kind: output, shape index: {}]  }
   0x1   :  { %v12_v0 = vstv %s8801_s6 }
   0x2   :  { %13 = vst [vmem:[#allocation2] sm:$0x1] %v12_v0 }
   0x3   :  { %14 = vsyncpa [#allocation4], 0 }
   0x4   :  { %15 = vsyncpa [#allocation6], 0 }
   0x5   :  { %16 = vsyncpa [#allocation9], 0  ;;  %s33_s28 = sshll.u32 %s8796_s1, 4  ;;  %s34_s28 = int_to_ptr.hbm [resolvable:$true] %s33_s28 }
   0x6   :  { %17 = vsyncpa [#allocation12], 0  ;;  %s8499_s29 = smov [#allocation5]   ;;  %s57_s10 = sshll.u32 %s8798_s3, 4  ;;  %s58_s10 = int_to_ptr.hbm [resolvable:$true] %s57_s10 }
   0x7   :  { %s35_s30 = sshll.u32 %s8499_s29, 4  ;;  %s8500_s11 = smov 512   ;;  %s36_s30 = int_to_ptr.vmem [resolvable:$true] %s35_s30 }
   0x8   :  { %s8501_s12 = smov 32   ;;  %s8502_s6 = smov [#allocation8]  }
   0x9   :  { %41 = dma.hbm_to_vmem [thread:$0]  %s34_s28, 49152, %s36_s30, [#allocation6], %s8500_s11, %s8500_s11, %s8501_s12  }
   0xa   :  { %s59_s13 = sshll.u32 %s8502_s6, 4  ;;  %s8503_s14 = smov 256   ;;  %s60_s13 = int_to_ptr.vmem [resolvable:$true] %s59_s13 }
   0xb   :  { %s8504_s15 = smov 16   ;;  %s23_s17 = sshll.u32 %s8795_s0, 4  ;;  %s24_s17 = int_to_ptr.hbm [resolvable:$true] %s23_s17 }
   0xc   :  { %65 = dma.hbm_to_vmem [thread:$0]  %s58_s10, 32768, %s60_s13, [#allocation9], %s8503_s14, %s8503_s14, %s8504_s15  }
   0xd   :  { %s8505_s18 = smov [#allocation3]   ;;  %s47_s21 = sshll.u32 %s8797_s2, 4  ;;  %s48_s21 = int_to_ptr.hbm [resolvable:$true] %s47_s21 }
   0xe   :  { %s25_s19 = sshll.u32 %s8505_s18, 4  ;;  %s8506_s22 = smov [#allocation7]   ;;  %s26_s19 = int_to_ptr.vmem [resolvable:$true] %s25_s19 }
   0xf   :  { %28 = dma.hbm_to_vmem [thread:$0]  %s24_s17, 384, %s26_s19, [#allocation4]  }
  0x10   :  { %s49_s23 = sshll.u32 %s8506_s22, 4  ;;  %s71_s26 = sshll.u32 %s8799_s4, 4  ;;  %s50_s23 = int_to_ptr.vmem [resolvable:$true] %s49_s23  ;;  %s72_s26 = int_to_ptr.hbm [resolvable:$true] %s71_s26 }
  0x11   :  { %52 = dma.hbm_to_vmem [thread:$0]  %s48_s21, 128, %s50_s23, [#allocation6]  }
  0x12   :  { %s82_s28 = sshll.u32 %s8800_s5, 4  ;;  %s8507_s29 = smov [#allocation10]   ;;  %s83_s28 = int_to_ptr.hbm [resolvable:$true] %s82_s28 }
  0x13   :  { %s73_s30 = sshll.u32 %s8507_s29, 4  ;;  %s8508_s2 = smov [#allocation11]   ;;  %s74_s30 = int_to_ptr.vmem [resolvable:$true] %s73_s30 }
  0x14   :  { %76 = dma.hbm_to_vmem [thread:$0]  %s72_s26, 64, %s74_s30, [#allocation9]  }
  0x15   :  { %s84_s8 = sshll.u32 %s8508_s2, 4  ;;  %s85_s8 = int_to_ptr.vmem [resolvable:$true] %s84_s8 }
  0x16   :  { %87 = dma.hbm_to_vmem [thread:$0]  %s83_s28, 64, %s85_s8, [#allocation12]  }
  0x17   :  { %8491 = dma.done.wait [#allocation4], 384  }
  0x18   :  { %8492 = vsyncadd [#allocation4], 4294966912 }
  0x19   :  { %8493 = dma.done.wait [#allocation6], 49280  }
  0x1a   :  { %8494 = vsyncadd [#allocation6], 4294918016 }
  0x1b   :  { %8495 = dma.done.wait [#allocation9], 32832  }
  0x1c   :  { %8496 = vsyncadd [#allocation9], 4294934464 }
  0x1d   :  { %8497 = dma.done.wait [#allocation12], 64  }
  0x1e   :  { %8498 = vsyncadd [#allocation12], 4294967232  ;;  %v5355_v1 = vld [vmem:[#allocation5 + $0x1c0] sm:$0xf]  ;;  %vm5119_vm12 = vcmask 7168  }
  0x1f   :  { %v7749_v2 = vld [vmem:[#allocation5 + $0x1dc] sm:$0xf0] }
  0x20   :  { %v5611_v3 = vld [vmem:[#allocation5 + $0x3c0] sm:$0xf]  ;;  %v5356_v4 = vor.u32 %v7749_v2, %v5355_v1 }
  0x21   :  { %v7813_v5 = vld [vmem:[#allocation5 + $0x3dc] sm:$0xf0] }
  0x22   :  { %v5867_v6 = vld [vmem:[#allocation5 + $0x5c0] sm:$0xf]  ;;  %v5612_v8 = vor.u32 %v7813_v5, %v5611_v3  ;;  %2460 = vmatpush.bf16.msra.mxu0 %v5356_v4 }
  0x23   :  { %v7877_v7 = vld [vmem:[#allocation5 + $0x5dc] sm:$0xf0] }
  0x24   :  { %v5868_v9 = vor.u32 %v7877_v7, %v5867_v6  ;;  %v6123_v10 = vld [vmem:[#allocation5 + $0x7c0] sm:$0xf]  ;;  %2473 = vmatpush.bf16.msra.mxu1 %v5612_v8 }
  0x25   :  { %v7941_v11 = vld [vmem:[#allocation5 + $0x7dc] sm:$0xf0] }
  0x26   :  { %v5323_v12 = vld [vmem:[#allocation5 + $0x180] sm:$0xf]  ;;  %v6124_v13 = vor.u32 %v7941_v11, %v6123_v10  ;;  %2486 = vmatpush.bf16.msra.mxu2 %v5868_v9 }
  0x27   :  { %v7741_v14 = vld [vmem:[#allocation5 + $0x19c] sm:$0xf0] }
  0x28   :  { %v5579_v15 = vld [vmem:[#allocation5 + $0x380] sm:$0xf]  ;;  %v5324_v17 = vor.u32 %v7741_v14, %v5323_v12  ;;  %2499 = vmatpush.bf16.msra.mxu3 %v6124_v13 }
  0x29   :  { %v7805_v16 = vld [vmem:[#allocation5 + $0x39c] sm:$0xf0] }
  0x2a   :  { %v5580_v18 = vor.u32 %v7805_v16, %v5579_v15  ;;  %v5835_v19 = vld [vmem:[#allocation5 + $0x580] sm:$0xf]  ;;  %2461 = vmatpush.bf16.msra.mxu0 %v5324_v17 }
  0x2b   :  { %v7869_v20 = vld [vmem:[#allocation5 + $0x59c] sm:$0xf0] }
  0x2c   :  { %v6091_v21 = vld [vmem:[#allocation5 + $0x780] sm:$0xf]  ;;  %v5836_v22 = vor.u32 %v7869_v20, %v5835_v19  ;;  %2474 = vmatpush.bf16.msra.mxu1 %v5580_v18 }
  0x2d   :  { %v7933_v23 = vld [vmem:[#allocation5 + $0x79c] sm:$0xf0] }
  0x2e   :  { %v5291_v24 = vld [vmem:[#allocation5 + $0x140] sm:$0xf]  ;;  %v6092_v26 = vor.u32 %v7933_v23, %v6091_v21  ;;  %2487 = vmatpush.bf16.msra.mxu2 %v5836_v22 }
  0x2f   :  { %v7733_v25 = vld [vmem:[#allocation5 + $0x15c] sm:$0xf0] }
  0x30   :  { %v5547_v27 = vld [vmem:[#allocation5 + $0x340] sm:$0xf]  ;;  %v5292_v30 = vor.u32 %v7733_v25, %v5291_v24  ;;  %2500 = vmatpush.bf16.msra.mxu3 %v6092_v26 }
  0x31   :  { %v7797_v28 = vld [vmem:[#allocation5 + $0x35c] sm:$0xf0] }
  0x32   :  { %v5803_v29 = vld [vmem:[#allocation5 + $0x540] sm:$0xf]  ;;  %v5548_v34 = vor.u32 %v7797_v28, %v5547_v27  ;;  %2462 = vmatpush.bf16.msra.mxu0 %v5292_v30 }
  0x33   :  { %v7861_v31 = vld [vmem:[#allocation5 + $0x55c] sm:$0xf0] }
  0x34   :  { %v6059_v32 = vld [vmem:[#allocation5 + $0x740] sm:$0xf]  ;;  %v5804_v35 = vor.u32 %v7861_v31, %v5803_v29  ;;  %2475 = vmatpush.bf16.msra.mxu1 %v5548_v34  ;;  %v7745_v34 = vld [vmem:[#allocation5 + $0x1c4] sm:$0xf] }
  0x35   :  { %v7925_v33 = vld [vmem:[#allocation5 + $0x75c] sm:$0xf0] }
  0x36   :  { %v5259_v36 = vld [vmem:[#allocation5 + $0x100] sm:$0xf]  ;;  %v6060_v39 = vor.u32 %v7925_v33, %v6059_v32  ;;  %2488 = vmatpush.bf16.msra.mxu2 %v5804_v35  ;;  %v5357_v35 = vld [vmem:[#allocation5 + $0x1e0] sm:$0xf0] }
  0x37   :  { %v7725_v37 = vld [vmem:[#allocation5 + $0x11c] sm:$0xf0] }
  0x38   :  { %v5515_v38 = vld [vmem:[#allocation5 + $0x300] sm:$0xf]  ;;  %v5260_v45 = vor.u32 %v7725_v37, %v5259_v36  ;;  %2501 = vmatpush.bf16.msra.mxu3 %v6060_v39  ;;  %v5613_v39 = vld [vmem:[#allocation5 + $0x3e0] sm:$0xf0] }
  0x39   :  { %v7789_v40 = vld [vmem:[#allocation5 + $0x31c] sm:$0xf0] }
  0x3a   :  { %v5771_v41 = vld [vmem:[#allocation5 + $0x500] sm:$0xf]  ;;  %v5516_v46 = vor.u32 %v7789_v40, %v5515_v38  ;;  %2463 = vmatpush.bf16.msra.mxu0 %v5260_v45  ;;  %v7809_v38 = vld [vmem:[#allocation5 + $0x3c4] sm:$0xf] }
  0x3b   :  { %v7853_v42 = vld [vmem:[#allocation5 + $0x51c] sm:$0xf0] }
  0x3c   :  { %v6027_v43 = vld [vmem:[#allocation5 + $0x700] sm:$0xf]  ;;  %v5772_v47 = vor.u32 %v7853_v42, %v5771_v41  ;;  %2476 = vmatpush.bf16.msra.mxu1 %v5516_v46 }
  0x3d   :  { %v7917_v44 = vld [vmem:[#allocation5 + $0x71c] sm:$0xf0] }
  0x3e   :  { %v5227_v48 = vld [vmem:[#allocation5 + $0xc0] sm:$0xf]  ;;  %v6028_v51 = vor.u32 %v7917_v44, %v6027_v43  ;;  %2489 = vmatpush.bf16.msra.mxu2 %v5772_v47  ;;  %v5360_v43 = vor.u32 %v7745_v34, %v5357_v35  ;;  %v5616_v47 = vor.u32 %v7809_v38, %v5613_v39  ;;  %v5485_v34 = vld [vmem:[#allocation5 + $0x2e0] sm:$0xf0] }
  0x3f   :  { %v7717_v49 = vld [vmem:[#allocation5 + $0xdc] sm:$0xf0] }
  0x40   :  { %v5483_v50 = vld [vmem:[#allocation5 + $0x2c0] sm:$0xf]  ;;  %v5228_v57 = vor.u32 %v7717_v49, %v5227_v48  ;;  %2502 = vmatpush.bf16.msra.mxu3 %v6028_v51  ;;  %v7737_v49 = vld [vmem:[#allocation5 + $0x184] sm:$0xf] }
  0x41   :  { %v7781_v52 = vld [vmem:[#allocation5 + $0x2dc] sm:$0xf0]  ;;  %v7801_v51 = vld [vmem:[#allocation5 + $0x384] sm:$0xf] }
  0x42   :  { %v5739_v53 = vld [vmem:[#allocation5 + $0x4c0] sm:$0xf]  ;;  %v5484_v58 = vor.u32 %v7781_v52, %v5483_v50  ;;  %2464 = vmatpush.bf16.msra.mxu0 %v5228_v57  ;;  %v5325_v50 = vld [vmem:[#allocation5 + $0x1a0] sm:$0xf0] }
  0x43   :  { %v7845_v54 = vld [vmem:[#allocation5 + $0x4dc] sm:$0xf0]  ;;  %v5581_v52 = vld [vmem:[#allocation5 + $0x3a0] sm:$0xf0] }
  0x44   :  { %v5995_v55 = vld [vmem:[#allocation5 + $0x6c0] sm:$0xf]  ;;  %v5740_v59 = vor.u32 %v7845_v54, %v5739_v53  ;;  %2477 = vmatpush.bf16.msra.mxu1 %v5484_v58 }
  0x45   :  { %v7909_v56 = vld [vmem:[#allocation5 + $0x6dc] sm:$0xf0] }
  0x46   :  { %v5195_v60 = vld [vmem:[#allocation5 + $0x80] sm:$0xf]  ;;  %v5996_v63 = vor.u32 %v7909_v56, %v5995_v55  ;;  %2490 = vmatpush.bf16.msra.mxu2 %v5740_v59  ;;  %v5328_v56 = vor.u32 %v7737_v49, %v5325_v50 }
  0x47   :  { %v7709_v61 = vld [vmem:[#allocation5 + $0x9c] sm:$0xf0] }
  0x48   :  { %v5451_v62 = vld [vmem:[#allocation5 + $0x280] sm:$0xf]  ;;  %v5196_v5 = vor.u32 %v7709_v61, %v5195_v60  ;;  %2503 = vmatpush.bf16.msra.mxu3 %v5996_v63  ;;  %v5584_v60 = vor.u32 %v7801_v51, %v5581_v52  ;;  %v7729_v61 = vld [vmem:[#allocation5 + $0x144] sm:$0xf] }
  0x49   :  { %v7773_v0 = vld [vmem:[#allocation5 + $0x29c] sm:$0xf0]  ;;  %v7793_v63 = vld [vmem:[#allocation5 + $0x344] sm:$0xf] }
  0x4a   :  { %v5707_v1 = vld [vmem:[#allocation5 + $0x480] sm:$0xf]  ;;  %v5452_v6 = vor.u32 %v7773_v0, %v5451_v62  ;;  %2465 = vmatpush.bf16.msra.mxu0 %v5196_v5  ;;  %v5293_v62 = vld [vmem:[#allocation5 + $0x160] sm:$0xf0] }
  0x4b   :  { %v7837_v2 = vld [vmem:[#allocation5 + $0x49c] sm:$0xf0]  ;;  %v5549_v0 = vld [vmem:[#allocation5 + $0x360] sm:$0xf0]  ;;  %v5296_v5 = vor.u32 %v7729_v61, %v5293_v62 }
  0x4c   :  { %v5963_v3 = vld [vmem:[#allocation5 + $0x680] sm:$0xf]  ;;  %v5708_v7 = vor.u32 %v7837_v2, %v5707_v1  ;;  %2478 = vmatpush.bf16.msra.mxu1 %v5452_v6 }
  0x4d   :  { %v7901_v4 = vld [vmem:[#allocation5 + $0x69c] sm:$0xf0] }
  0x4e   :  { %v5163_v8 = vld [vmem:[#allocation5 + $0x40] sm:$0xf]  ;;  %v5964_v11 = vor.u32 %v7901_v4, %v5963_v3  ;;  %2491 = vmatpush.bf16.msra.mxu2 %v5708_v7  ;;  %v114_v3 = vld [vmem:[#allocation3] sm:$0xff]  ;;  %v115_v4 = vld [vmem:[#allocation3 + $0x8] sm:$0xff] }
  0x4f   :  { %v7701_v9 = vld [vmem:[#allocation5 + $0x5c] sm:$0xf0] }
  0x50   :  { %v5419_v10 = vld [vmem:[#allocation5 + $0x240] sm:$0xf]  ;;  %v5164_v17 = vor.u32 %v7701_v9, %v5163_v8  ;;  %2504 = vmatpush.bf16.msra.mxu3 %v5964_v11  ;;  %v522_v9 = vunpack.c.l.b16 %v114_v3  ;;  %v523_v11 = vunpack.c.h.b16 %v114_v3  ;;  %v116_v3 = vld [vmem:[#allocation3 + $0x10] sm:$0xff] }
  0x51   :  { %v7765_v12 = vld [vmem:[#allocation5 + $0x25c] sm:$0xf0] }
  0x52   :  { %v5675_v13 = vld [vmem:[#allocation5 + $0x440] sm:$0xf]  ;;  %v5420_v20 = vor.u32 %v7765_v12, %v5419_v10  ;;  %2466 = vmatpush.bf16.msra.mxu0 %v5164_v17  ;;  %v524_v10 = vunpack.c.l.b16 %v115_v4  ;;  %v5552_v12 = vor.u32 %v7793_v63, %v5549_v0  ;;  %v7785_v17 = vld [vmem:[#allocation5 + $0x304] sm:$0xf] }
  0x53   :  { %v7829_v14 = vld [vmem:[#allocation5 + $0x45c] sm:$0xf0] }
  0x54   :  { %v5931_v15 = vld [vmem:[#allocation5 + $0x640] sm:$0xf]  ;;  %v5676_v21 = vor.u32 %v7829_v14, %v5675_v13  ;;  %2479 = vmatpush.bf16.msra.mxu1 %v5420_v20  ;;  %v7721_v14 = vld [vmem:[#allocation5 + $0x104] sm:$0xf]  ;;  %v8572_v20 = vpack.c.b16 %v524_v10, %v524_v10 }
  0x55   :  { %v7893_v16 = vld [vmem:[#allocation5 + $0x65c] sm:$0xf0]  ;;  %v7937_v10 = vld [vmem:[#allocation5 + $0x7c4] sm:$0xf] }
  0x56   :  { %v5131_v18 = vld [vmem:[#allocation5] sm:$0xf]  ;;  %v5932_v25 = vor.u32 %v7893_v16, %v5931_v15  ;;  %2492 = vmatpush.bf16.msra.mxu2 %v5676_v21  ;;  %v5261_v15 = vld [vmem:[#allocation5 + $0x120] sm:$0xf0]  ;;  %v525_v16 = vunpack.c.h.b16 %v115_v4  ;;  %v8574_v21 = vpack.c.b16 %v523_v11, %v523_v11 }
  0x57   :  { %v7693_v19 = vld [vmem:[#allocation5 + $0x1c] sm:$0xf0] }
  0x58   :  { %v5387_v22 = vld [vmem:[#allocation5 + $0x200] sm:$0xf]  ;;  %v5132_v32 = vor.u32 %v7693_v19, %v5131_v18  ;;  %2505 = vmatpush.bf16.msra.mxu3 %v5932_v25  ;;  %v5517_v18 = vld [vmem:[#allocation5 + $0x320] sm:$0xf0]  ;;  %v8570_v19 = vpack.c.b16 %v522_v9, %v522_v9  ;;  %v5264_v25 = vor.u32 %v7721_v14, %v5261_v15  ;;  %v526_v15 = vunpack.c.l.b16 %v116_v3 }
  0x59   :  { %v7757_v23 = vld [vmem:[#allocation5 + $0x21c] sm:$0xf0]  ;;  %v5869_v9 = vld [vmem:[#allocation5 + $0x5e0] sm:$0xf0] }
  0x5a   :  { %v5643_v24 = vld [vmem:[#allocation5 + $0x400] sm:$0xf]  ;;  %v5388_v36 = vor.u32 %v7757_v23, %v5387_v22  ;;  %2467 = vmatpush.bf16.msra.mxu0 %v5132_v32  ;;  %v8576_v23 = vpack.c.b16 %v525_v16, %v525_v16  ;;  %v5229_v32 = vld [vmem:[#allocation5 + $0xe0] sm:$0xf0] }
  0x5b   :  { %v7821_v26 = vld [vmem:[#allocation5 + $0x41c] sm:$0xf0]  ;;  %v6381_v14 = vld [vmem:[#allocation5 + $0x9e0] sm:$0xf0] }
  0x5c   :  { %v5899_v27 = vld [vmem:[#allocation5 + $0x600] sm:$0xf]  ;;  %v5644_v37 = vor.u32 %v7821_v26, %v5643_v24  ;;  %2480 = vmatpush.bf16.msra.mxu1 %v5388_v36 }
  0x5d   :  { %v7885_v28 = vld [vmem:[#allocation5 + $0x61c] sm:$0xf0]  ;;  %2468 = vmatmul.bf16.vlgmr.msra.gmra.mxu0 %v8570_v19 }
  0x5e   :  { %v6379_v29 = vld [vmem:[#allocation5 + $0x9c0] sm:$0xf]  ;;  %v5900_v40 = vor.u32 %v7885_v28, %v5899_v27  ;;  %2493 = vmatpush.bf16.msra.mxu2 %v5644_v37 }
  0x5f   :  { %v8005_v30 = vld [vmem:[#allocation5 + $0x9dc] sm:$0xf0]  ;;  %2481 = vmatmul.bf16.vlgmr.msra.gmra.mxu1 %v8574_v21 }
  0x60   :  { %v6635_v31 = vld [vmem:[#allocation5 + $0xbc0] sm:$0xf]  ;;  %v6380_v41 = vor.u32 %v8005_v30, %v6379_v29  ;;  %2506 = vmatpush.bf16.msra.mxu3 %v5900_v40  ;;  %v5520_v29 = vor.u32 %v7785_v17, %v5517_v18  ;;  %v8065_v18 = vld [vmem:[#allocation5 + $0xbc4] sm:$0xf] }
  0x61   :  { %v8069_v33 = vld [vmem:[#allocation5 + $0xbdc] sm:$0xf0]  ;;  %2494 = vmatmul.bf16.vlgmr.msra.gmra.mxu2 %v8572_v20 }
  0x62   :  { %v6636_v42 = vor.u32 %v8069_v33, %v6635_v31  ;;  %v6347_v44 = vld [vmem:[#allocation5 + $0x980] sm:$0xf]  ;;  %2512 = vmatpush.bf16.msrb.mxu0 %v6380_v41  ;;  %2538 = vmatpush.bf16.msrb.mxu2 %v5360_v43  ;;  %v7713_v31 = vld [vmem:[#allocation5 + $0xc4] sm:$0xf] }
  0x63   :  { %v7997_v45 = vld [vmem:[#allocation5 + $0x99c] sm:$0xf0]  ;;  %v7777_v33 = vld [vmem:[#allocation5 + $0x2c4] sm:$0xf]  ;;  %2507 = vmatmul.bf16.vlgmr.msra.gmra.mxu3 %v8576_v23  ;;  %v5232_v37 = vor.u32 %v7713_v31, %v5229_v32 }
  0x64   :  { %v6603_v46 = vld [vmem:[#allocation5 + $0xb80] sm:$0xf]  ;;  %v6348_v53 = vor.u32 %v7997_v45, %v6347_v44  ;;  %2525 = vmatpush.bf16.msrb.mxu1 %v6636_v42  ;;  %2551 = vmatpush.bf16.msrb.mxu3 %v5616_v47  ;;  %v5488_v41 = vor.u32 %v7777_v33, %v5485_v34  ;;  %v7705_v43 = vld [vmem:[#allocation5 + $0x84] sm:$0xf] }
  0x65   :  { %v8061_v48 = vld [vmem:[#allocation5 + $0xb9c] sm:$0xf0]  ;;  %v5197_v44 = vld [vmem:[#allocation5 + $0xa0] sm:$0xf0] }
  0x66   :  { %v6315_v54 = vld [vmem:[#allocation5 + $0x940] sm:$0xf]  ;;  %v6604_v55 = vor.u32 %v8061_v48, %v6603_v46  ;;  %2513 = vmatpush.bf16.msrb.mxu0 %v6348_v53  ;;  %2539 = vmatpush.bf16.msrb.mxu2 %v5328_v56  ;;  %v7769_v45 = vld [vmem:[#allocation5 + $0x284] sm:$0xf]  ;;  %v5200_v49 = vor.u32 %v7705_v43, %v5197_v44 }
  0x67   :  { %v7989_v57 = vld [vmem:[#allocation5 + $0x95c] sm:$0xf0]  ;;  %v5453_v46 = vld [vmem:[#allocation5 + $0x2a0] sm:$0xf0] }
  0x68   :  { %v6571_v58 = vld [vmem:[#allocation5 + $0xb40] sm:$0xf]  ;;  %v6316_v1 = vor.u32 %v7989_v57, %v6315_v54  ;;  %2526 = vmatpush.bf16.msrb.mxu1 %v6604_v55  ;;  %2552 = vmatpush.bf16.msrb.mxu3 %v5584_v60  ;;  %v5456_v53 = vor.u32 %v7769_v45, %v5453_v46  ;;  %v7697_v55 = vld [vmem:[#allocation5 + $0x44] sm:$0xf] }
  0x69   :  { %v8053_v59 = vld [vmem:[#allocation5 + $0xb5c] sm:$0xf0]  ;;  %v5165_v56 = vld [vmem:[#allocation5 + $0x60] sm:$0xf0] }
  0x6a   :  { %v6572_v2 = vor.u32 %v8053_v59, %v6571_v58  ;;  %v6283_v6 = vld [vmem:[#allocation5 + $0x900] sm:$0xf]  ;;  %2514 = vmatpush.bf16.msrb.mxu0 %v6316_v1  ;;  %2540 = vmatpush.bf16.msrb.mxu2 %v5296_v5  ;;  %v7761_v57 = vld [vmem:[#allocation5 + $0x244] sm:$0xf]  ;;  %v5168_v0 = vor.u32 %v7697_v55, %v5165_v56 }
  0x6b   :  { %v7981_v7 = vld [vmem:[#allocation5 + $0x91c] sm:$0xf0]  ;;  %v5421_v58 = vld [vmem:[#allocation5 + $0x260] sm:$0xf0] }
  0x6c   :  { %v6539_v8 = vld [vmem:[#allocation5 + $0xb00] sm:$0xf]  ;;  %v6284_v22 = vor.u32 %v7981_v7, %v6283_v6  ;;  %2527 = vmatpush.bf16.msrb.mxu1 %v6572_v2  ;;  %2553 = vmatpush.bf16.msrb.mxu3 %v5552_v12  ;;  %v7689_v2 = vld [vmem:[#allocation5 + $0x4] sm:$0xf]  ;;  %v5424_v4 = vor.u32 %v7761_v57, %v5421_v58 }
  0x6d   :  { %v8045_v13 = vld [vmem:[#allocation5 + $0xb1c] sm:$0xf0]  ;;  %v5133_v5 = vld [vmem:[#allocation5 + $0x20] sm:$0xf0] }
  0x6e   :  { %v6540_v24 = vor.u32 %v8045_v13, %v6539_v8  ;;  %v6251_v26 = vld [vmem:[#allocation5 + $0x8c0] sm:$0xf]  ;;  %2515 = vmatpush.bf16.msrb.mxu0 %v6284_v22  ;;  %2541 = vmatpush.bf16.msrb.mxu2 %v5264_v25  ;;  %v7753_v6 = vld [vmem:[#allocation5 + $0x204] sm:$0xf]  ;;  %v5136_v17 = vor.u32 %v7689_v2, %v5133_v5 }
  0x6f   :  { %v7973_v27 = vld [vmem:[#allocation5 + $0x8dc] sm:$0xf0]  ;;  %v5389_v7 = vld [vmem:[#allocation5 + $0x220] sm:$0xf0] }
  0x70   :  { %v6507_v28 = vld [vmem:[#allocation5 + $0xac0] sm:$0xf]  ;;  %v6252_v35 = vor.u32 %v7973_v27, %v6251_v26  ;;  %2528 = vmatpush.bf16.msrb.mxu1 %v6540_v24  ;;  %2554 = vmatpush.bf16.msrb.mxu3 %v5520_v29  ;;  %v7873_v8 = vld [vmem:[#allocation5 + $0x5c4] sm:$0xf]  ;;  %v527_v24 = vunpack.c.h.b16 %v116_v3  ;;  %v5392_v25 = vor.u32 %v7753_v6, %v5389_v7 }
  0x71   :  { %v8037_v30 = vld [vmem:[#allocation5 + $0xadc] sm:$0xf0]  ;;  %v6125_v12 = vld [vmem:[#allocation5 + $0x7e0] sm:$0xf0]  ;;  %v5872_v26 = vor.u32 %v7873_v8, %v5869_v9 }
  0x72   :  { %v6508_v36 = vor.u32 %v8037_v30, %v6507_v28  ;;  %v6219_v38 = vld [vmem:[#allocation5 + $0x880] sm:$0xf]  ;;  %2516 = vmatpush.bf16.msrb.mxu0 %v6252_v35  ;;  %2542 = vmatpush.bf16.msrb.mxu2 %v5232_v37  ;;  %v8001_v13 = vld [vmem:[#allocation5 + $0x9c4] sm:$0xf]  ;;  %v6128_v27 = vor.u32 %v7937_v10, %v6125_v12 }
  0x73   :  { %v7965_v39 = vld [vmem:[#allocation5 + $0x89c] sm:$0xf0]  ;;  %v6637_v22 = vld [vmem:[#allocation5 + $0xbe0] sm:$0xf0]  ;;  %v6384_v28 = vor.u32 %v8001_v13, %v6381_v14 }
  0x74   :  { %v6475_v40 = vld [vmem:[#allocation5 + $0xa80] sm:$0xf]  ;;  %v6220_v47 = vor.u32 %v7965_v39, %v6219_v38  ;;  %2529 = vmatpush.bf16.msrb.mxu1 %v6508_v36  ;;  %2555 = vmatpush.bf16.msrb.mxu3 %v5488_v41  ;;  %v7865_v29 = vld [vmem:[#allocation5 + $0x584] sm:$0xf]  ;;  %v6640_v32 = vor.u32 %v8065_v18, %v6637_v22  ;;  %v8582_v36 = vpack.c.b16 %v526_v15, %v526_v15 }
  0x75   :  { %v8029_v42 = vld [vmem:[#allocation5 + $0xa9c] sm:$0xf0]  ;;  %v5837_v30 = vld [vmem:[#allocation5 + $0x5a0] sm:$0xf0]  ;;  %v8584_v39 = vpack.c.b16 %v527_v24, %v527_v24 }
  0x76   :  { %v6476_v48 = vor.u32 %v8029_v42, %v6475_v40  ;;  %v6187_v50 = vld [vmem:[#allocation5 + $0x840] sm:$0xf]  ;;  %2517 = vmatpush.bf16.msrb.mxu0 %v6220_v47  ;;  %2543 = vmatpush.bf16.msrb.mxu2 %v5200_v49  ;;  %v7929_v31 = vld [vmem:[#allocation5 + $0x784] sm:$0xf]  ;;  %v5840_v40 = vor.u32 %v7865_v29, %v5837_v30 }
  0x77   :  { %v7957_v51 = vld [vmem:[#allocation5 + $0x85c] sm:$0xf0]  ;;  %v6093_v33 = vld [vmem:[#allocation5 + $0x7a0] sm:$0xf0] }
  0x78   :  { %v6443_v52 = vld [vmem:[#allocation5 + $0xa40] sm:$0xf]  ;;  %v6188_v59 = vor.u32 %v7957_v51, %v6187_v50  ;;  %2530 = vmatpush.bf16.msrb.mxu1 %v6476_v48  ;;  %2556 = vmatpush.bf16.msrb.mxu3 %v5456_v53  ;;  %v7993_v34 = vld [vmem:[#allocation5 + $0x984] sm:$0xf]  ;;  %v6096_v41 = vor.u32 %v7929_v31, %v6093_v33 }
  0x79   :  { %v8021_v54 = vld [vmem:[#allocation5 + $0xa5c] sm:$0xf0]  ;;  %v6349_v35 = vld [vmem:[#allocation5 + $0x9a0] sm:$0xf0] }
  0x7a   :  { %v6155_v60 = vld [vmem:[#allocation5 + $0x800] sm:$0xf]  ;;  %v6444_v63 = vor.u32 %v8021_v54, %v6443_v52  ;;  %2518 = vmatpush.bf16.msrb.mxu0 %v6188_v59  ;;  %2544 = vmatpush.bf16.msrb.mxu2 %v5168_v0  ;;  %v8057_v37 = vld [vmem:[#allocation5 + $0xb84] sm:$0xf]  ;;  %v6352_v42 = vor.u32 %v7993_v34, %v6349_v35 }
  0x7b   :  { %v7949_v61 = vld [vmem:[#allocation5 + $0x81c] sm:$0xf0]  ;;  %v6605_v38 = vld [vmem:[#allocation5 + $0xba0] sm:$0xf0] }
  0x7c   :  { %v6411_v62 = vld [vmem:[#allocation5 + $0xa00] sm:$0xf]  ;;  %v6156_v11 = vor.u32 %v7949_v61, %v6155_v60  ;;  %2531 = vmatpush.bf16.msrb.mxu1 %v6444_v63  ;;  %2557 = vmatpush.bf16.msrb.mxu3 %v5424_v4  ;;  %v7857_v43 = vld [vmem:[#allocation5 + $0x544] sm:$0xf]  ;;  %v6608_v46 = vor.u32 %v8057_v37, %v6605_v38 }
  0x7d   :  { %v8013_v1 = vld [vmem:[#allocation5 + $0xa1c] sm:$0xf0]  ;;  %v5805_v44 = vld [vmem:[#allocation5 + $0x560] sm:$0xf0] }
  0x7e   :  { %v6412_v16 = vor.u32 %v8013_v1, %v6411_v62  ;;  %2519 = vmatpush.bf16.msrb.mxu0 %v6156_v11  ;;  %2545 = vmatpush.bf16.msrb.mxu2 %v5136_v17  ;;  %v7921_v45 = vld [vmem:[#allocation5 + $0x744] sm:$0xf]  ;;  %v5808_v52 = vor.u32 %v7857_v43, %v5805_v44 }
  0x7f   :  { %v6061_v47 = vld [vmem:[#allocation5 + $0x760] sm:$0xf0] }
  0x80   :  { %2532 = vmatpush.bf16.msrb.mxu1 %v6412_v16  ;;  %2558 = vmatpush.bf16.msrb.mxu3 %v5392_v25  ;;  %v7985_v48 = vld [vmem:[#allocation5 + $0x944] sm:$0xf]  ;;  %v6064_v53 = vor.u32 %v7921_v45, %v6061_v47 }
  0x81   :  { %2520 = vmatmul.bf16.vlgmr.msrb.gmra.mxu0 %v8582_v36  ;;  %v6317_v49 = vld [vmem:[#allocation5 + $0x960] sm:$0xf0]  ;;  %2546 = vmatmul.bf16.vlgmr.msrb.gmra.mxu2 %v8570_v19 }
  0x82   :  { %2564 = vmatpush.bf16.msra.mxu0 %v5872_v26  ;;  %2590 = vmatpush.bf16.msra.mxu2 %v6384_v28  ;;  %v8049_v50 = vld [vmem:[#allocation5 + $0xb44] sm:$0xf]  ;;  %v6320_v54 = vor.u32 %v7985_v48, %v6317_v49 }
  0x83   :  { %v6573_v51 = vld [vmem:[#allocation5 + $0xb60] sm:$0xf0]  ;;  %2533 = vmatmul.bf16.vlgmr.msrb.gmra.mxu1 %v8584_v39  ;;  %2559 = vmatmul.bf16.vlgmr.msrb.gmra.mxu3 %v8574_v21 }
  0x84   :  { %2577 = vmatpush.bf16.msra.mxu1 %v6128_v27  ;;  %2603 = vmatpush.bf16.msra.mxu3 %v6640_v32  ;;  %v7849_v55 = vld [vmem:[#allocation5 + $0x504] sm:$0xf]  ;;  %v6576_v58 = vor.u32 %v8049_v50, %v6573_v51 }
  0x85   :  { %v5773_v56 = vld [vmem:[#allocation5 + $0x520] sm:$0xf0] }
  0x86   :  { %2565 = vmatpush.bf16.msra.mxu0 %v5840_v40  ;;  %2591 = vmatpush.bf16.msra.mxu2 %v6352_v42  ;;  %v7913_v57 = vld [vmem:[#allocation5 + $0x704] sm:$0xf]  ;;  %v5776_v0 = vor.u32 %v7849_v55, %v5773_v56  ;;  %v7750_v55 = vld [vmem:[#allocation5 + $0x1e4] sm:$0xf0] }
  0x87   :  { %v6029_v59 = vld [vmem:[#allocation5 + $0x720] sm:$0xf0]  ;;  %v5619_v56 = vld [vmem:[#allocation5 + $0x3c8] sm:$0xf] }
  0x88   :  { %2578 = vmatpush.bf16.msra.mxu1 %v6096_v41  ;;  %2604 = vmatpush.bf16.msra.mxu3 %v6608_v46  ;;  %v7977_v60 = vld [vmem:[#allocation5 + $0x904] sm:$0xf]  ;;  %v6032_v1 = vor.u32 %v7913_v57, %v6029_v59  ;;  %v5875_v59 = vld [vmem:[#allocation5 + $0x5c8] sm:$0xf] }
  0x89   :  { %v6285_v61 = vld [vmem:[#allocation5 + $0x920] sm:$0xf0] }
  0x8a   :  { %v8041_v62 = vld [vmem:[#allocation5 + $0xb04] sm:$0xf]  ;;  %2566 = vmatpush.bf16.msra.mxu0 %v5808_v52  ;;  %2592 = vmatpush.bf16.msra.mxu2 %v6320_v54  ;;  %v6288_v2 = vor.u32 %v7977_v60, %v6285_v61  ;;  %v5363_v54 = vld [vmem:[#allocation5 + $0x1c8] sm:$0xf] }
  0x8b   :  { %v6541_v63 = vld [vmem:[#allocation5 + $0xb20] sm:$0xf0]  ;;  %v7878_v60 = vld [vmem:[#allocation5 + $0x5e4] sm:$0xf0] }
  0x8c   :  { %2579 = vmatpush.bf16.msra.mxu1 %v6064_v53  ;;  %v7841_v3 = vld [vmem:[#allocation5 + $0x4c4] sm:$0xf]  ;;  %2605 = vmatpush.bf16.msra.mxu3 %v6576_v58  ;;  %v6544_v6 = vor.u32 %v8041_v62, %v6541_v63  ;;  %v7814_v58 = vld [vmem:[#allocation5 + $0x3e4] sm:$0xf0] }
  0x8d   :  { %v5741_v4 = vld [vmem:[#allocation5 + $0x4e0] sm:$0xf0]  ;;  %v6131_v63 = vld [vmem:[#allocation5 + $0x7c8] sm:$0xf] }
  0x8e   :  { %v7905_v5 = vld [vmem:[#allocation5 + $0x6c4] sm:$0xf]  ;;  %2567 = vmatpush.bf16.msra.mxu0 %v5776_v0  ;;  %v5744_v12 = vor.u32 %v7841_v3, %v5741_v4  ;;  %2593 = vmatpush.bf16.msra.mxu2 %v6288_v2  ;;  %v7942_v0 = vld [vmem:[#allocation5 + $0x7e4] sm:$0xf0]  ;;  %v5364_v2 = vor.u32 %v7750_v55, %v5363_v54  ;;  %v5620_v3 = vor.u32 %v7814_v58, %v5619_v56 }
  0x8f   :  { %v5997_v7 = vld [vmem:[#allocation5 + $0x6e0] sm:$0xf0]  ;;  %v5876_v4 = vor.u32 %v7878_v60, %v5875_v59  ;;  %v6003_v54 = vld [vmem:[#allocation5 + $0x6c8] sm:$0xf] }
  0x90   :  { %v7969_v8 = vld [vmem:[#allocation5 + $0x8c4] sm:$0xf]  ;;  %2580 = vmatpush.bf16.msra.mxu1 %v6032_v1  ;;  %v6000_v13 = vor.u32 %v7905_v5, %v5997_v7  ;;  %2606 = vmatpush.bf16.msra.mxu3 %v6544_v6  ;;  %v5331_v5 = vld [vmem:[#allocation5 + $0x188] sm:$0xf] }
  0x91   :  { %v6253_v9 = vld [vmem:[#allocation5 + $0x8e0] sm:$0xf0]  ;;  %v7742_v6 = vld [vmem:[#allocation5 + $0x1a4] sm:$0xf0] }
  0x92   :  { %v8033_v10 = vld [vmem:[#allocation5 + $0xac4] sm:$0xf]  ;;  %v6256_v14 = vor.u32 %v7969_v8, %v6253_v9  ;;  %2568 = vmatpush.bf16.msra.mxu0 %v5744_v12  ;;  %v5587_v7 = vld [vmem:[#allocation5 + $0x388] sm:$0xf]  ;;  %v6132_v8 = vor.u32 %v7942_v0, %v6131_v63 }
  0x93   :  { %v6509_v11 = vld [vmem:[#allocation5 + $0xae0] sm:$0xf0]  ;;  %v7806_v9 = vld [vmem:[#allocation5 + $0x3a4] sm:$0xf0] }
  0x94   :  { %v7833_v15 = vld [vmem:[#allocation5 + $0x484] sm:$0xf]  ;;  %v6512_v18 = vor.u32 %v8033_v10, %v6509_v11  ;;  %2581 = vmatpush.bf16.msra.mxu1 %v6000_v13  ;;  %2594 = vmatpush.bf16.msra.mxu2 %v6256_v14  ;;  %v5843_v10 = vld [vmem:[#allocation5 + $0x588] sm:$0xf]  ;;  %v5332_v14 = vor.u32 %v7742_v6, %v5331_v5 }
  0x95   :  { %v5709_v16 = vld [vmem:[#allocation5 + $0x4a0] sm:$0xf0]  ;;  %v7870_v11 = vld [vmem:[#allocation5 + $0x5a4] sm:$0xf0] }
  0x96   :  { %v7897_v17 = vld [vmem:[#allocation5 + $0x684] sm:$0xf]  ;;  %v5712_v28 = vor.u32 %v7833_v15, %v5709_v16  ;;  %2607 = vmatpush.bf16.msra.mxu3 %v6512_v18  ;;  %v6099_v12 = vld [vmem:[#allocation5 + $0x788] sm:$0xf]  ;;  %v5588_v15 = vor.u32 %v7806_v9, %v5587_v7  ;;  %v5844_v16 = vor.u32 %v7870_v11, %v5843_v10 }
  0x97   :  { %v5965_v22 = vld [vmem:[#allocation5 + $0x6a0] sm:$0xf0]  ;;  %v7934_v13 = vld [vmem:[#allocation5 + $0x7a4] sm:$0xf0] }
  0x98   :  { %v7961_v24 = vld [vmem:[#allocation5 + $0x884] sm:$0xf]  ;;  %v5968_v29 = vor.u32 %v7897_v17, %v5965_v22  ;;  %2569 = vmatpush.bf16.msra.mxu0 %v5712_v28  ;;  %v5299_v17 = vld [vmem:[#allocation5 + $0x148] sm:$0xf] }
  0x99   :  { %v6221_v25 = vld [vmem:[#allocation5 + $0x8a0] sm:$0xf0]  ;;  %v7734_v18 = vld [vmem:[#allocation5 + $0x164] sm:$0xf0] }
  0x9a   :  { %v8025_v26 = vld [vmem:[#allocation5 + $0xa84] sm:$0xf]  ;;  %v6224_v30 = vor.u32 %v7961_v24, %v6221_v25  ;;  %2582 = vmatpush.bf16.msra.mxu1 %v5968_v29  ;;  %v5555_v22 = vld [vmem:[#allocation5 + $0x348] sm:$0xf]  ;;  %v6100_v24 = vor.u32 %v7934_v13, %v6099_v12 }
  0x9b   :  { %v6477_v27 = vld [vmem:[#allocation5 + $0xaa0] sm:$0xf0]  ;;  %v7798_v25 = vld [vmem:[#allocation5 + $0x364] sm:$0xf0] }
  0x9c   :  { %v7825_v31 = vld [vmem:[#allocation5 + $0x444] sm:$0xf]  ;;  %v6480_v34 = vor.u32 %v8025_v26, %v6477_v27  ;;  %2595 = vmatpush.bf16.msra.mxu2 %v6224_v30  ;;  %v5811_v26 = vld [vmem:[#allocation5 + $0x548] sm:$0xf]  ;;  %v5300_v30 = vor.u32 %v7734_v18, %v5299_v17 }
  0x9d   :  { %v5677_v32 = vld [vmem:[#allocation5 + $0x460] sm:$0xf0]  ;;  %v7862_v27 = vld [vmem:[#allocation5 + $0x564] sm:$0xf0] }
  0x9e   :  { %v7889_v33 = vld [vmem:[#allocation5 + $0x644] sm:$0xf]  ;;  %v5680_v42 = vor.u32 %v7825_v31, %v5677_v32  ;;  %2608 = vmatpush.bf16.msra.mxu3 %v6480_v34  ;;  %v6067_v28 = vld [vmem:[#allocation5 + $0x748] sm:$0xf]  ;;  %v5556_v31 = vor.u32 %v7798_v25, %v5555_v22  ;;  %v5812_v32 = vor.u32 %v7862_v27, %v5811_v26 }
  0x9f   :  { %v5933_v35 = vld [vmem:[#allocation5 + $0x660] sm:$0xf0]  ;;  %v7926_v29 = vld [vmem:[#allocation5 + $0x764] sm:$0xf0] }
  0xa0   :  { %v7953_v37 = vld [vmem:[#allocation5 + $0x844] sm:$0xf]  ;;  %v5936_v45 = vor.u32 %v7889_v33, %v5933_v35  ;;  %2570 = vmatpush.bf16.msra.mxu0 %v5680_v42  ;;  %v5267_v33 = vld [vmem:[#allocation5 + $0x108] sm:$0xf] }
  0xa1   :  { %v6189_v38 = vld [vmem:[#allocation5 + $0x860] sm:$0xf0]  ;;  %v7726_v34 = vld [vmem:[#allocation5 + $0x124] sm:$0xf0] }
  0xa2   :  { %v8017_v40 = vld [vmem:[#allocation5 + $0xa44] sm:$0xf]  ;;  %v6192_v46 = vor.u32 %v7953_v37, %v6189_v38  ;;  %2583 = vmatpush.bf16.msra.mxu1 %v5936_v45  ;;  %v5523_v35 = vld [vmem:[#allocation5 + $0x308] sm:$0xf]  ;;  %v6068_v37 = vor.u32 %v7926_v29, %v6067_v28 }
  0xa3   :  { %v6445_v41 = vld [vmem:[#allocation5 + $0xa60] sm:$0xf0]  ;;  %v7790_v38 = vld [vmem:[#allocation5 + $0x324] sm:$0xf0] }
  0xa4   :  { %v7817_v43 = vld [vmem:[#allocation5 + $0x404] sm:$0xf]  ;;  %v6448_v50 = vor.u32 %v8017_v40, %v6445_v41  ;;  %2596 = vmatpush.bf16.msra.mxu2 %v6192_v46  ;;  %v5779_v40 = vld [vmem:[#allocation5 + $0x508] sm:$0xf]  ;;  %v5524_v45 = vor.u32 %v7790_v38, %v5523_v35  ;;  %v7746_v38 = vld [vmem:[#allocation5 + $0x1cc] sm:$0xf] }
  0xa5   :  { %v5645_v44 = vld [vmem:[#allocation5 + $0x420] sm:$0xf0]  ;;  %v7854_v41 = vld [vmem:[#allocation5 + $0x524] sm:$0xf0] }
  0xa6   :  { %v7881_v47 = vld [vmem:[#allocation5 + $0x604] sm:$0xf]  ;;  %v5648_v57 = vor.u32 %v7817_v43, %v5645_v44  ;;  %2609 = vmatpush.bf16.msra.mxu3 %v6448_v50  ;;  %v6035_v42 = vld [vmem:[#allocation5 + $0x708] sm:$0xf]  ;;  %v5268_v44 = vor.u32 %v7726_v34, %v5267_v33  ;;  %v5780_v46 = vor.u32 %v7854_v41, %v5779_v40  ;;  %v5365_v40 = vld [vmem:[#allocation5 + $0x1e8] sm:$0xf0] }
  0xa7   :  { %v5901_v48 = vld [vmem:[#allocation5 + $0x620] sm:$0xf0]  ;;  %v7918_v43 = vld [vmem:[#allocation5 + $0x724] sm:$0xf0] }
  0xa8   :  { %v7945_v49 = vld [vmem:[#allocation5 + $0x804] sm:$0xf]  ;;  %v5904_v61 = vor.u32 %v7881_v47, %v5901_v48  ;;  %2571 = vmatpush.bf16.msra.mxu0 %v5648_v57  ;;  %v5235_v47 = vld [vmem:[#allocation5 + $0xc8] sm:$0xf]  ;;  %v6036_v50 = vor.u32 %v7918_v43, %v6035_v42  ;;  %v7810_v43 = vld [vmem:[#allocation5 + $0x3cc] sm:$0xf] }
  0xa9   :  { %v6157_v51 = vld [vmem:[#allocation5 + $0x820] sm:$0xf0]  ;;  %v7718_v48 = vld [vmem:[#allocation5 + $0xe4] sm:$0xf0] }
  0xaa   :  { %v8009_v52 = vld [vmem:[#allocation5 + $0xa04] sm:$0xf]  ;;  %v6160_v62 = vor.u32 %v7945_v49, %v6157_v51  ;;  %2584 = vmatpush.bf16.msra.mxu1 %v5904_v61  ;;  %v5491_v49 = vld [vmem:[#allocation5 + $0x2c8] sm:$0xf]  ;;  %v5236_v56 = vor.u32 %v7718_v48, %v5235_v47  ;;  %v5368_v48 = vor.u32 %v7746_v38, %v5365_v40 }
  0xab   :  { %v6413_v53 = vld [vmem:[#allocation5 + $0xa20] sm:$0xf0]  ;;  %2572 = vmatmul.bf16.vlgmr.msra.gmra.mxu0 %v8572_v20  ;;  %v7782_v51 = vld [vmem:[#allocation5 + $0x2e4] sm:$0xf0] }
  0xac   :  { %v6416_v1 = vor.u32 %v8009_v52, %v6413_v53  ;;  %2597 = vmatpush.bf16.msra.mxu2 %v6160_v62  ;;  %2616 = vmatpush.bf16.msrb.mxu0 %v5364_v2  ;;  %v5747_v52 = vld [vmem:[#allocation5 + $0x4c8] sm:$0xf]  ;;  %v5492_v57 = vor.u32 %v7782_v51, %v5491_v49 }
  0xad   :  { %2585 = vmatmul.bf16.vlgmr.msra.gmra.mxu1 %v8576_v23  ;;  %v7846_v53 = vld [vmem:[#allocation5 + $0x4e4] sm:$0xf0] }
  0xae   :  { %2610 = vmatpush.bf16.msra.mxu3 %v6416_v1  ;;  %2629 = vmatpush.bf16.msrb.mxu1 %v5620_v3  ;;  %v7910_v55 = vld [vmem:[#allocation5 + $0x6e4] sm:$0xf0]  ;;  %v5748_v58 = vor.u32 %v7846_v53, %v5747_v52 }
  0xaf   :  { %2598 = vmatmul.bf16.vlgmr.msra.gmra.mxu2 %v8582_v36  ;;  %v5203_v59 = vld [vmem:[#allocation5 + $0x88] sm:$0xf]  ;;  %v6004_v62 = vor.u32 %v7910_v55, %v6003_v54  ;;  %v7738_v54 = vld [vmem:[#allocation5 + $0x18c] sm:$0xf] }
  0xb0   :  { %2642 = vmatpush.bf16.msrb.mxu2 %v5876_v4  ;;  %2617 = vmatpush.bf16.msrb.mxu0 %v5332_v14  ;;  %v7710_v60 = vld [vmem:[#allocation5 + $0xa4] sm:$0xf0]  ;;  %v5333_v55 = vld [vmem:[#allocation5 + $0x1a8] sm:$0xf0] }
  0xb1   :  { %2611 = vmatmul.bf16.vlgmr.msra.gmra.mxu3 %v8584_v39  ;;  %v5459_v61 = vld [vmem:[#allocation5 + $0x288] sm:$0xf]  ;;  %v5204_v4 = vor.u32 %v7710_v60, %v5203_v59  ;;  %v5336_v60 = vor.u32 %v7738_v54, %v5333_v55 }
  0xb2   :  { %2655 = vmatpush.bf16.msrb.mxu3 %v6132_v8  ;;  %2630 = vmatpush.bf16.msrb.mxu1 %v5588_v15  ;;  %v7774_v63 = vld [vmem:[#allocation5 + $0x2a4] sm:$0xf0] }
  0xb3   :  { %v5715_v0 = vld [vmem:[#allocation5 + $0x488] sm:$0xf]  ;;  %v5460_v5 = vor.u32 %v7774_v63, %v5459_v61 }
  0xb4   :  { %2643 = vmatpush.bf16.msrb.mxu2 %v5844_v16  ;;  %2618 = vmatpush.bf16.msrb.mxu0 %v5300_v30  ;;  %v7838_v1 = vld [vmem:[#allocation5 + $0x4a4] sm:$0xf0] }
  0xb5   :  { %v5971_v2 = vld [vmem:[#allocation5 + $0x688] sm:$0xf]  ;;  %v5716_v6 = vor.u32 %v7838_v1, %v5715_v0 }
  0xb6   :  { %2656 = vmatpush.bf16.msrb.mxu3 %v6100_v24  ;;  %2631 = vmatpush.bf16.msrb.mxu1 %v5556_v31  ;;  %v7902_v3 = vld [vmem:[#allocation5 + $0x6a4] sm:$0xf0] }
  0xb7   :  { %v5171_v7 = vld [vmem:[#allocation5 + $0x48] sm:$0xf]  ;;  %v5972_v10 = vor.u32 %v7902_v3, %v5971_v2  ;;  %v7730_v2 = vld [vmem:[#allocation5 + $0x14c] sm:$0xf] }
  0xb8   :  { %2644 = vmatpush.bf16.msrb.mxu2 %v5812_v32  ;;  %2619 = vmatpush.bf16.msrb.mxu0 %v5268_v44  ;;  %v7702_v8 = vld [vmem:[#allocation5 + $0x64] sm:$0xf0]  ;;  %v5621_v44 = vld [vmem:[#allocation5 + $0x3e8] sm:$0xf0] }
  0xb9   :  { %v5427_v9 = vld [vmem:[#allocation5 + $0x248] sm:$0xf]  ;;  %v5172_v16 = vor.u32 %v7702_v8, %v5171_v7  ;;  %v5624_v52 = vor.u32 %v7810_v43, %v5621_v44  ;;  %v5301_v3 = vld [vmem:[#allocation5 + $0x168] sm:$0xf0] }
  0xba   :  { %2657 = vmatpush.bf16.msrb.mxu3 %v6068_v37  ;;  %2632 = vmatpush.bf16.msrb.mxu1 %v5524_v45  ;;  %v7766_v11 = vld [vmem:[#allocation5 + $0x264] sm:$0xf0]  ;;  %v5304_v8 = vor.u32 %v7730_v2, %v5301_v3  ;;  %v7706_v44 = vld [vmem:[#allocation5 + $0x8c] sm:$0xf] }
  0xbb   :  { %v5683_v12 = vld [vmem:[#allocation5 + $0x448] sm:$0xf]  ;;  %v5428_v22 = vor.u32 %v7766_v11, %v5427_v9  ;;  %v7690_v3 = vld [vmem:[#allocation5 + $0xc] sm:$0xf] }
  0xbc   :  { %2645 = vmatpush.bf16.msrb.mxu2 %v5780_v46  ;;  %2620 = vmatpush.bf16.msrb.mxu0 %v5236_v56  ;;  %v7830_v13 = vld [vmem:[#allocation5 + $0x464] sm:$0xf0]  ;;  %v7802_v56 = vld [vmem:[#allocation5 + $0x38c] sm:$0xf] }
  0xbd   :  { %v5939_v14 = vld [vmem:[#allocation5 + $0x648] sm:$0xf]  ;;  %v5684_v24 = vor.u32 %v7830_v13, %v5683_v12 }
  0xbe   :  { %2658 = vmatpush.bf16.msrb.mxu3 %v6036_v50  ;;  %2633 = vmatpush.bf16.msrb.mxu1 %v5492_v57  ;;  %v7894_v15 = vld [vmem:[#allocation5 + $0x664] sm:$0xf0]  ;;  %v5589_v57 = vld [vmem:[#allocation5 + $0x3a8] sm:$0xf0] }
  0xbf   :  { %v5139_v17 = vld [vmem:[#allocation5 + $0x8] sm:$0xf]  ;;  %v5940_v28 = vor.u32 %v7894_v15, %v5939_v14  ;;  %v5592_v0 = vor.u32 %v7802_v56, %v5589_v57  ;;  %v7722_v14 = vld [vmem:[#allocation5 + $0x10c] sm:$0xf] }
  0xc0   :  { %2646 = vmatpush.bf16.msrb.mxu2 %v5748_v58  ;;  %2621 = vmatpush.bf16.msrb.mxu0 %v5204_v4  ;;  %v7694_v18 = vld [vmem:[#allocation5 + $0x24] sm:$0xf0]  ;;  %v7794_v4 = vld [vmem:[#allocation5 + $0x34c] sm:$0xf] }
  0xc1   :  { %v5395_v25 = vld [vmem:[#allocation5 + $0x208] sm:$0xf]  ;;  %v5140_v35 = vor.u32 %v7694_v18, %v5139_v17  ;;  %v5269_v15 = vld [vmem:[#allocation5 + $0x128] sm:$0xf0] }
  0xc2   :  { %2659 = vmatpush.bf16.msrb.mxu3 %v6004_v62  ;;  %2634 = vmatpush.bf16.msrb.mxu1 %v5460_v5  ;;  %v7758_v26 = vld [vmem:[#allocation5 + $0x224] sm:$0xf0]  ;;  %v5557_v5 = vld [vmem:[#allocation5 + $0x368] sm:$0xf0] }
  0xc3   :  { %v5651_v27 = vld [vmem:[#allocation5 + $0x408] sm:$0xf]  ;;  %v5396_v41 = vor.u32 %v7758_v26, %v5395_v25  ;;  %v5560_v12 = vor.u32 %v7794_v4, %v5557_v5  ;;  %v5525_v17 = vld [vmem:[#allocation5 + $0x328] sm:$0xf0] }
  0xc4   :  { %2647 = vmatpush.bf16.msrb.mxu2 %v5716_v6  ;;  %v7822_v29 = vld [vmem:[#allocation5 + $0x424] sm:$0xf0]  ;;  %2622 = vmatpush.bf16.msrb.mxu0 %v5172_v16  ;;  %v7786_v16 = vld [vmem:[#allocation5 + $0x30c] sm:$0xf] }
  0xc5   :  { %v5907_v30 = vld [vmem:[#allocation5 + $0x608] sm:$0xf]  ;;  %v5652_v42 = vor.u32 %v7822_v29, %v5651_v27  ;;  %v7698_v56 = vld [vmem:[#allocation5 + $0x4c] sm:$0xf] }
  0xc6   :  { %2660 = vmatpush.bf16.msrb.mxu3 %v5972_v10  ;;  %v7886_v31 = vld [vmem:[#allocation5 + $0x624] sm:$0xf0]  ;;  %2635 = vmatpush.bf16.msrb.mxu1 %v5428_v22  ;;  %v5173_v57 = vld [vmem:[#allocation5 + $0x68] sm:$0xf0] }
  0xc7   :  { %v6387_v32 = vld [vmem:[#allocation5 + $0x9c8] sm:$0xf]  ;;  %v5908_v45 = vor.u32 %v7886_v31, %v5907_v30  ;;  %v7714_v30 = vld [vmem:[#allocation5 + $0xcc] sm:$0xf] }
  0xc8   :  { %v8006_v33 = vld [vmem:[#allocation5 + $0x9e4] sm:$0xf0]  ;;  %2648 = vmatpush.bf16.msrb.mxu2 %v5684_v24  ;;  %2623 = vmatpush.bf16.msrb.mxu0 %v5140_v35  ;;  %v5272_v24 = vor.u32 %v7722_v14, %v5269_v15  ;;  %v5237_v31 = vld [vmem:[#allocation5 + $0xe8] sm:$0xf0] }
  0xc9   :  { %v6643_v34 = vld [vmem:[#allocation5 + $0xbc8] sm:$0xf]  ;;  %v6388_v46 = vor.u32 %v8006_v33, %v6387_v32  ;;  %v7778_v32 = vld [vmem:[#allocation5 + $0x2cc] sm:$0xf] }
  0xca   :  { %v8070_v37 = vld [vmem:[#allocation5 + $0xbe4] sm:$0xf0]  ;;  %2661 = vmatpush.bf16.msrb.mxu3 %v5940_v28  ;;  %2636 = vmatpush.bf16.msrb.mxu1 %v5396_v41  ;;  %v5528_v28 = vor.u32 %v7786_v16, %v5525_v17  ;;  %v5493_v33 = vld [vmem:[#allocation5 + $0x2e8] sm:$0xf0] }
  0xcb   :  { %v6644_v47 = vor.u32 %v8070_v37, %v6643_v34  ;;  %v6355_v49 = vld [vmem:[#allocation5 + $0x988] sm:$0xf]  ;;  %2624 = vmatmul.bf16.vlgmr.msrb.gmra.mxu0 %v8570_v19  ;;  %v5240_v37 = vor.u32 %v7714_v30, %v5237_v31  ;;  %v5141_v5 = vld [vmem:[#allocation5 + $0x28] sm:$0xf0] }
  0xcc   :  { %v7998_v50 = vld [vmem:[#allocation5 + $0x9a4] sm:$0xf0]  ;;  %2649 = vmatpush.bf16.msrb.mxu2 %v5652_v42  ;;  %2668 = vmatpush.bf16.msra.mxu0 %v6388_v46  ;;  %v5496_v42 = vor.u32 %v7778_v32, %v5493_v33  ;;  %v7770_v46 = vld [vmem:[#allocation5 + $0x28c] sm:$0xf]  ;;  %v5144_v16 = vor.u32 %v7690_v3, %v5141_v5 }
  0xcd   :  { %v6611_v51 = vld [vmem:[#allocation5 + $0xb88] sm:$0xf]  ;;  %v6356_v58 = vor.u32 %v7998_v50, %v6355_v49  ;;  %2637 = vmatmul.bf16.vlgmr.msrb.gmra.mxu1 %v8574_v21  ;;  %v6389_v14 = vld [vmem:[#allocation5 + $0x9e8] sm:$0xf0] }
  0xce   :  { %v8062_v53 = vld [vmem:[#allocation5 + $0xba4] sm:$0xf0]  ;;  %2662 = vmatpush.bf16.msrb.mxu3 %v5908_v45  ;;  %2681 = vmatpush.bf16.msra.mxu1 %v6644_v47  ;;  %v5205_v45 = vld [vmem:[#allocation5 + $0xa8] sm:$0xf0] }
  0xcf   :  { %v6612_v59 = vor.u32 %v8062_v53, %v6611_v51  ;;  %v6323_v61 = vld [vmem:[#allocation5 + $0x948] sm:$0xf]  ;;  %2650 = vmatmul.bf16.vlgmr.msrb.gmra.mxu2 %v8572_v20  ;;  %v5461_v47 = vld [vmem:[#allocation5 + $0x2a8] sm:$0xf0]  ;;  %v5208_v50 = vor.u32 %v7706_v44, %v5205_v45 }
  0xd0   :  { %2694 = vmatpush.bf16.msra.mxu2 %v5368_v48  ;;  %v7990_v62 = vld [vmem:[#allocation5 + $0x964] sm:$0xf0]  ;;  %2669 = vmatpush.bf16.msra.mxu0 %v6356_v58  ;;  %v5464_v54 = vor.u32 %v7770_v46, %v5461_v47  ;;  %v7762_v58 = vld [vmem:[#allocation5 + $0x24c] sm:$0xf] }
  0xd1   :  { %v6579_v63 = vld [vmem:[#allocation5 + $0xb48] sm:$0xf]  ;;  %v6324_v6 = vor.u32 %v7990_v62, %v6323_v61  ;;  %2663 = vmatmul.bf16.vlgmr.msrb.gmra.mxu3 %v8576_v23  ;;  %v8066_v17 = vld [vmem:[#allocation5 + $0xbcc] sm:$0xf] }
  0xd2   :  { %2707 = vmatpush.bf16.msra.mxu3 %v5624_v52  ;;  %v8054_v1 = vld [vmem:[#allocation5 + $0xb64] sm:$0xf0]  ;;  %2682 = vmatpush.bf16.msra.mxu1 %v6612_v59  ;;  %v5429_v59 = vld [vmem:[#allocation5 + $0x268] sm:$0xf0] }
  0xd3   :  { %v6580_v7 = vor.u32 %v8054_v1, %v6579_v63  ;;  %v6291_v9 = vld [vmem:[#allocation5 + $0x908] sm:$0xf]  ;;  %v5432_v4 = vor.u32 %v7762_v58, %v5429_v59  ;;  %v6101_v31 = vld [vmem:[#allocation5 + $0x7a8] sm:$0xf0] }
  0xd4   :  { %2695 = vmatpush.bf16.msra.mxu2 %v5336_v60  ;;  %v7982_v10 = vld [vmem:[#allocation5 + $0x924] sm:$0xf0]  ;;  %2670 = vmatpush.bf16.msra.mxu0 %v6324_v6  ;;  %v7754_v6 = vld [vmem:[#allocation5 + $0x20c] sm:$0xf] }
  0xd5   :  { %v6547_v11 = vld [vmem:[#allocation5 + $0xb08] sm:$0xf]  ;;  %v6292_v18 = vor.u32 %v7982_v10, %v6291_v9  ;;  %v5877_v9 = vld [vmem:[#allocation5 + $0x5e8] sm:$0xf0] }
  0xd6   :  { %2708 = vmatpush.bf16.msra.mxu3 %v5592_v0  ;;  %v8046_v13 = vld [vmem:[#allocation5 + $0xb24] sm:$0xf0]  ;;  %2683 = vmatpush.bf16.msra.mxu1 %v6580_v7  ;;  %v5176_v0 = vor.u32 %v7698_v56, %v5173_v57  ;;  %v5397_v7 = vld [vmem:[#allocation5 + $0x228] sm:$0xf0] }
  0xd7   :  { %v6548_v22 = vor.u32 %v8046_v13, %v6547_v11  ;;  %v6259_v25 = vld [vmem:[#allocation5 + $0x8c8] sm:$0xf]  ;;  %v7938_v10 = vld [vmem:[#allocation5 + $0x7cc] sm:$0xf] }
  0xd8   :  { %2696 = vmatpush.bf16.msra.mxu2 %v5304_v8  ;;  %v7974_v26 = vld [vmem:[#allocation5 + $0x8e4] sm:$0xf0]  ;;  %2671 = vmatpush.bf16.msra.mxu0 %v6292_v18  ;;  %v7874_v8 = vld [vmem:[#allocation5 + $0x5cc] sm:$0xf] }
  0xd9   :  { %v6515_v27 = vld [vmem:[#allocation5 + $0xac8] sm:$0xf]  ;;  %v6260_v34 = vor.u32 %v7974_v26, %v6259_v25  ;;  %v8002_v13 = vld [vmem:[#allocation5 + $0x9cc] sm:$0xf] }
  0xda   :  { %2709 = vmatpush.bf16.msra.mxu3 %v5560_v12  ;;  %v8038_v29 = vld [vmem:[#allocation5 + $0xae4] sm:$0xf0]  ;;  %2684 = vmatpush.bf16.msra.mxu1 %v6548_v22  ;;  %v6133_v12 = vld [vmem:[#allocation5 + $0x7e8] sm:$0xf0]  ;;  %v5400_v22 = vor.u32 %v7754_v6, %v5397_v7  ;;  %v6392_v26 = vor.u32 %v8002_v13, %v6389_v14 }
  0xdb   :  { %v6516_v35 = vor.u32 %v8038_v29, %v6515_v27  ;;  %v6227_v38 = vld [vmem:[#allocation5 + $0x888] sm:$0xf]  ;;  %v6645_v18 = vld [vmem:[#allocation5 + $0xbe8] sm:$0xf0]  ;;  %v6136_v25 = vor.u32 %v7938_v10, %v6133_v12 }
  0xdc   :  { %2697 = vmatpush.bf16.msra.mxu2 %v5272_v24  ;;  %v7966_v40 = vld [vmem:[#allocation5 + $0x8a4] sm:$0xf0]  ;;  %2672 = vmatpush.bf16.msra.mxu0 %v6260_v34  ;;  %v5880_v24 = vor.u32 %v7874_v8, %v5877_v9  ;;  %v7866_v27 = vld [vmem:[#allocation5 + $0x58c] sm:$0xf]  ;;  %v6648_v30 = vor.u32 %v8066_v17, %v6645_v18 }
  0xdd   :  { %v6483_v41 = vld [vmem:[#allocation5 + $0xa88] sm:$0xf]  ;;  %v6228_v48 = vor.u32 %v7966_v40, %v6227_v38  ;;  %v7930_v29 = vld [vmem:[#allocation5 + $0x78c] sm:$0xf] }
  0xde   :  { %2710 = vmatpush.bf16.msra.mxu3 %v5528_v28  ;;  %v8030_v43 = vld [vmem:[#allocation5 + $0xaa4] sm:$0xf0]  ;;  %2685 = vmatpush.bf16.msra.mxu1 %v6516_v35  ;;  %v5845_v28 = vld [vmem:[#allocation5 + $0x5a8] sm:$0xf0]  ;;  %v6104_v38 = vor.u32 %v7930_v29, %v6101_v31  ;;  %v2482_v31 = vpop.f32.mrf.mxu1 }
  0xdf   :  { %v6484_v49 = vor.u32 %v8030_v43, %v6483_v41  ;;  %v6195_v51 = vld [vmem:[#allocation5 + $0x848] sm:$0xf]  ;;  %v7994_v32 = vld [vmem:[#allocation5 + $0x98c] sm:$0xf] }
  0xe0   :  { %2698 = vmatpush.bf16.msra.mxu2 %v5240_v37  ;;  %v7958_v52 = vld [vmem:[#allocation5 + $0x864] sm:$0xf0]  ;;  %2673 = vmatpush.bf16.msra.mxu0 %v6228_v48  ;;  %v6357_v33 = vld [vmem:[#allocation5 + $0x9a8] sm:$0xf0]  ;;  %v5848_v37 = vor.u32 %v7866_v27, %v5845_v28  ;;  %v2469_v28 = vpop.f32.mrf.mxu0 }
  0xe1   :  { %v6451_v53 = vld [vmem:[#allocation5 + $0xa48] sm:$0xf]  ;;  %v6196_v60 = vor.u32 %v7958_v52, %v6195_v51  ;;  %v8058_v34 = vld [vmem:[#allocation5 + $0xb8c] sm:$0xf]  ;;  %v6360_v40 = vor.u32 %v7994_v32, %v6357_v33 }
  0xe2   :  { %2711 = vmatpush.bf16.msra.mxu3 %v5496_v42  ;;  %v8022_v55 = vld [vmem:[#allocation5 + $0xa64] sm:$0xf0]  ;;  %2686 = vmatpush.bf16.msra.mxu1 %v6484_v49  ;;  %v6613_v35 = vld [vmem:[#allocation5 + $0xba8] sm:$0xf0] }
  0xe3   :  { %v6163_v61 = vld [vmem:[#allocation5 + $0x808] sm:$0xf]  ;;  %v6452_v63 = vor.u32 %v8022_v55, %v6451_v53  ;;  %v7858_v41 = vld [vmem:[#allocation5 + $0x54c] sm:$0xf]  ;;  %v6616_v44 = vor.u32 %v8058_v34, %v6613_v35 }
  0xe4   :  { %v7950_v62 = vld [vmem:[#allocation5 + $0x824] sm:$0xf0]  ;;  %2699 = vmatpush.bf16.msra.mxu2 %v5208_v50  ;;  %2674 = vmatpush.bf16.msra.mxu0 %v6196_v60  ;;  %v5813_v42 = vld [vmem:[#allocation5 + $0x568] sm:$0xf0] }
  0xe5   :  { %v6419_v1 = vld [vmem:[#allocation5 + $0xa08] sm:$0xf]  ;;  %v6164_v11 = vor.u32 %v7950_v62, %v6163_v61  ;;  %v7922_v43 = vld [vmem:[#allocation5 + $0x74c] sm:$0xf]  ;;  %v5816_v50 = vor.u32 %v7858_v41, %v5813_v42 }
  0xe6   :  { %v8014_v2 = vld [vmem:[#allocation5 + $0xa24] sm:$0xf0]  ;;  %2712 = vmatpush.bf16.msra.mxu3 %v5464_v54  ;;  %2687 = vmatpush.bf16.msra.mxu1 %v6452_v63  ;;  %v6069_v45 = vld [vmem:[#allocation5 + $0x768] sm:$0xf0] }
  0xe7   :  { %v6420_v15 = vor.u32 %v8014_v2, %v6419_v1  ;;  %v7986_v46 = vld [vmem:[#allocation5 + $0x94c] sm:$0xf]  ;;  %v6072_v51 = vor.u32 %v7922_v43, %v6069_v45 }
  0xe8   :  { %2700 = vmatpush.bf16.msra.mxu2 %v5176_v0  ;;  %2675 = vmatpush.bf16.msra.mxu0 %v6164_v11  ;;  %v6325_v47 = vld [vmem:[#allocation5 + $0x968] sm:$0xf0] }
  0xe9   :  { %v8050_v48 = vld [vmem:[#allocation5 + $0xb4c] sm:$0xf]  ;;  %v6328_v52 = vor.u32 %v7986_v46, %v6325_v47 }
  0xea   :  { %2713 = vmatpush.bf16.msra.mxu3 %v5432_v4  ;;  %2688 = vmatpush.bf16.msra.mxu1 %v6420_v15  ;;  %v6581_v49 = vld [vmem:[#allocation5 + $0xb68] sm:$0xf0]  ;;  %v8602_v4 = vld [vmem:[#allocation7] sm:$0xff] }
  0xeb   :  { %2676 = vmatmul.bf16.vlgmr.msra.gmra.mxu0 %v8582_v36  ;;  %v7850_v53 = vld [vmem:[#allocation5 + $0x50c] sm:$0xf]  ;;  %v6584_v56 = vor.u32 %v8050_v48, %v6581_v49  ;;  %v503_v12 = vperm.slane %v8602_v4, 0 }
  0xec   :  { %2701 = vmatpush.bf16.msra.mxu2 %v5144_v16  ;;  %2720 = vmatpush.bf16.msrb.mxu0 %v5880_v24  ;;  %v5781_v54 = vld [vmem:[#allocation5 + $0x528] sm:$0xf0] }
  0xed   :  { %2689 = vmatmul.bf16.vlgmr.msra.gmra.mxu1 %v8584_v39  ;;  %v7914_v55 = vld [vmem:[#allocation5 + $0x70c] sm:$0xf]  ;;  %v5784_v62 = vor.u32 %v7850_v53, %v5781_v54 }
  0xee   :  { %2714 = vmatpush.bf16.msra.mxu3 %v5400_v22  ;;  %2733 = vmatpush.bf16.msrb.mxu1 %v6136_v25  ;;  %v6037_v57 = vld [vmem:[#allocation5 + $0x728] sm:$0xf0] }
  0xef   :  { %2702 = vmatmul.bf16.vlgmr.msra.gmra.mxu2 %v8570_v19  ;;  %v7978_v58 = vld [vmem:[#allocation5 + $0x90c] sm:$0xf]  ;;  %v6040_v0 = vor.u32 %v7914_v55, %v6037_v57 }
  0xf0   :  { %2746 = vmatpush.bf16.msrb.mxu2 %v6392_v26  ;;  %2721 = vmatpush.bf16.msrb.mxu0 %v5848_v37  ;;  %v6293_v59 = vld [vmem:[#allocation5 + $0x928] sm:$0xf0] }
  0xf1   :  { %2715 = vmatmul.bf16.vlgmr.msra.gmra.mxu3 %v8574_v21  ;;  %v8042_v60 = vld [vmem:[#allocation5 + $0xb0c] sm:$0xf]  ;;  %v6296_v1 = vor.u32 %v7978_v58, %v6293_v59  ;;  %v2495_v58 = vpop.f32.mrf.mxu2  ;;  %v5371_v59 = vld [vmem:[#allocation5 + $0x1d0] sm:$0xf] }
  0xf2   :  { %2759 = vmatpush.bf16.msrb.mxu3 %v6648_v30  ;;  %2734 = vmatpush.bf16.msrb.mxu1 %v6104_v38  ;;  %v6549_v61 = vld [vmem:[#allocation5 + $0xb28] sm:$0xf0]  ;;  %v2470_v30 = vadd.f32 %v2469_v28, %v503_v12  ;;  %v7935_v28 = vld [vmem:[#allocation5 + $0x7ac] sm:$0xf0] }
  0xf3   :  { %v7842_v63 = vld [vmem:[#allocation5 + $0x4cc] sm:$0xf]  ;;  %v6552_v5 = vor.u32 %v8042_v60, %v6549_v61  ;;  %v7751_v60 = vld [vmem:[#allocation5 + $0x1ec] sm:$0xf0] }
  0xf4   :  { %2747 = vmatpush.bf16.msrb.mxu2 %v6360_v40  ;;  %2722 = vmatpush.bf16.msrb.mxu0 %v5816_v50  ;;  %v5749_v2 = vld [vmem:[#allocation5 + $0x4e8] sm:$0xf0]  ;;  %v2483_v43 = vadd.f32 %v2482_v31, %v2470_v30  ;;  %v5627_v61 = vld [vmem:[#allocation5 + $0x3d0] sm:$0xf] }
  0xf5   :  { %v7906_v3 = vld [vmem:[#allocation5 + $0x6cc] sm:$0xf]  ;;  %v5752_v11 = vor.u32 %v7842_v63, %v5749_v2  ;;  %v2471_v63 = vpop.f32.mrf.mxu0  ;;  %v7815_v2 = vld [vmem:[#allocation5 + $0x3ec] sm:$0xf0] }
  0xf6   :  { %2760 = vmatpush.bf16.msrb.mxu3 %v6616_v44  ;;  %2735 = vmatpush.bf16.msrb.mxu1 %v6072_v51  ;;  %v6005_v6 = vld [vmem:[#allocation5 + $0x6e8] sm:$0xf0]  ;;  %v5243_v63 = vld [vmem:[#allocation5 + $0xd0] sm:$0xf] }
  0xf7   :  { %v7970_v7 = vld [vmem:[#allocation5 + $0x8cc] sm:$0xf]  ;;  %v6008_v13 = vor.u32 %v7906_v3, %v6005_v6  ;;  %v5883_v3 = vld [vmem:[#allocation5 + $0x5d0] sm:$0xf]  ;;  %v2484_v6 = vpop.f32.mrf.mxu1 }
  0xf8   :  { %2748 = vmatpush.bf16.msrb.mxu2 %v6328_v52  ;;  %v6261_v8 = vld [vmem:[#allocation5 + $0x8e8] sm:$0xf0]  ;;  %2723 = vmatpush.bf16.msrb.mxu0 %v5784_v62  ;;  %v2496_v62 = vadd.f32 %v2495_v58, %v2483_v43  ;;  %v6075_v43 = vld [vmem:[#allocation5 + $0x750] sm:$0xf] }
  0xf9   :  { %v8034_v9 = vld [vmem:[#allocation5 + $0xacc] sm:$0xf]  ;;  %v6264_v14 = vor.u32 %v7970_v7, %v6261_v8  ;;  %v2497_v30 = vpop.f32.mrf.mxu2  ;;  %v7847_v6 = vld [vmem:[#allocation5 + $0x4ec] sm:$0xf0] }
  0xfa   :  { %2761 = vmatpush.bf16.msrb.mxu3 %v6584_v56  ;;  %v6517_v10 = vld [vmem:[#allocation5 + $0xae8] sm:$0xf0]  ;;  %2736 = vmatpush.bf16.msrb.mxu1 %v6040_v0  ;;  %v2508_v0 = vpop.f32.mrf.mxu3 }
  0xfb   :  { %v7834_v15 = vld [vmem:[#allocation5 + $0x48c] sm:$0xf]  ;;  %v6520_v18 = vor.u32 %v8034_v9, %v6517_v10  ;;  %v6139_v9 = vld [vmem:[#allocation5 + $0x7d0] sm:$0xf] }
  0xfc   :  { %2749 = vmatpush.bf16.msrb.mxu2 %v6296_v1  ;;  %v5717_v16 = vld [vmem:[#allocation5 + $0x4a8] sm:$0xf0]  ;;  %2724 = vmatpush.bf16.msrb.mxu0 %v5752_v11  ;;  %v7943_v10 = vld [vmem:[#allocation5 + $0x7ec] sm:$0xf0]  ;;  %v2509_v11 = vadd.f32 %v2508_v0, %v2496_v62 }
  0xfd   :  { %v7898_v17 = vld [vmem:[#allocation5 + $0x68c] sm:$0xf]  ;;  %v5720_v29 = vor.u32 %v7834_v15, %v5717_v16  ;;  %v5339_v16 = vld [vmem:[#allocation5 + $0x190] sm:$0xf] }
  0xfe   :  { %2762 = vmatpush.bf16.msrb.mxu3 %v6552_v5  ;;  %v5973_v22 = vld [vmem:[#allocation5 + $0x6a8] sm:$0xf0]  ;;  %2737 = vmatpush.bf16.msrb.mxu1 %v6008_v13  ;;  %v7879_v5 = vld [vmem:[#allocation5 + $0x5ec] sm:$0xf0]  ;;  %v5372_v13 = vor.u32 %v7751_v60, %v5371_v59 }
  0xff   :  { %v7962_v24 = vld [vmem:[#allocation5 + $0x88c] sm:$0xf]  ;;  %v5976_v32 = vor.u32 %v7898_v17, %v5973_v22  ;;  %v5884_v15 = vor.u32 %v7879_v5, %v5883_v3  ;;  %v7743_v17 = vld [vmem:[#allocation5 + $0x1ac] sm:$0xf0]  ;;  %v6140_v22 = vor.u32 %v7943_v10, %v6139_v9  ;;  %v504_v10 = vperm.slane %v8602_v4, 1 }
 0x100   :  { %v6229_v25 = vld [vmem:[#allocation5 + $0x8a8] sm:$0xf0]  ;;  %2750 = vmatpush.bf16.msrb.mxu2 %v6264_v14  ;;  %2725 = vmatpush.bf16.msrb.mxu0 %v5720_v29  ;;  %v5628_v14 = vor.u32 %v7815_v2, %v5627_v61  ;;  %v5340_v29 = vor.u32 %v7743_v17, %v5339_v16  ;;  %v2534_v60 = vpop.f32.mrf.mxu1  ;;  %v7719_v0 = vld [vmem:[#allocation5 + $0xec] sm:$0xf0] }
 0x101   :  { %v8026_v26 = vld [vmem:[#allocation5 + $0xa8c] sm:$0xf]  ;;  %v6232_v33 = vor.u32 %v7962_v24, %v6229_v25  ;;  %v7807_v24 = vld [vmem:[#allocation5 + $0x3ac] sm:$0xf0] }
 0x102   :  { %v6485_v27 = vld [vmem:[#allocation5 + $0xaa8] sm:$0xf0]  ;;  %2763 = vmatpush.bf16.msrb.mxu3 %v6520_v18  ;;  %2738 = vmatpush.bf16.msrb.mxu1 %v5976_v32  ;;  %v5595_v18 = vld [vmem:[#allocation5 + $0x390] sm:$0xf] }
 0x103   :  { %v7826_v34 = vld [vmem:[#allocation5 + $0x44c] sm:$0xf]  ;;  %v6488_v38 = vor.u32 %v8026_v26, %v6485_v27  ;;  %v5851_v25 = vld [vmem:[#allocation5 + $0x590] sm:$0xf]  ;;  %v5596_v31 = vor.u32 %v7807_v24, %v5595_v18 }
 0x104   :  { %v5685_v35 = vld [vmem:[#allocation5 + $0x468] sm:$0xf0]  ;;  %2751 = vmatpush.bf16.msrb.mxu2 %v6232_v33  ;;  %v7871_v26 = vld [vmem:[#allocation5 + $0x5ac] sm:$0xf0] }
 0x105   :  { %v7890_v37 = vld [vmem:[#allocation5 + $0x64c] sm:$0xf]  ;;  %v5688_v46 = vor.u32 %v7826_v34, %v5685_v35  ;;  %v6107_v27 = vld [vmem:[#allocation5 + $0x790] sm:$0xf]  ;;  %v5852_v32 = vor.u32 %v7871_v26, %v5851_v25  ;;  %v2547_v25 = vpop.f32.mrf.mxu2 }
 0x106   :  { %v5941_v40 = vld [vmem:[#allocation5 + $0x668] sm:$0xf0]  ;;  %2764 = vmatpush.bf16.msrb.mxu3 %v6488_v38  ;;  %v5307_v33 = vld [vmem:[#allocation5 + $0x150] sm:$0xf]  ;;  %v6108_v38 = vor.u32 %v7935_v28, %v6107_v27  ;;  %v2548_v28 = vadd.f32 %v2547_v25, %v504_v10  ;;  %v7803_v25 = vld [vmem:[#allocation5 + $0x394] sm:$0xf] }
 0x107   :  { %v7954_v41 = vld [vmem:[#allocation5 + $0x84c] sm:$0xf]  ;;  %v5944_v49 = vor.u32 %v7890_v37, %v5941_v40  ;;  %2726 = vmatpush.bf16.msrb.mxu0 %v5688_v46  ;;  %v7735_v34 = vld [vmem:[#allocation5 + $0x16c] sm:$0xf0]  ;;  %v2510_v37 = vpop.f32.mrf.mxu3 }
 0x108   :  { %v6197_v42 = vld [vmem:[#allocation5 + $0x868] sm:$0xf0]  ;;  %v5563_v35 = vld [vmem:[#allocation5 + $0x350] sm:$0xf] }
 0x109   :  { %v8018_v44 = vld [vmem:[#allocation5 + $0xa4c] sm:$0xf]  ;;  %v6200_v50 = vor.u32 %v7954_v41, %v6197_v42  ;;  %2739 = vmatpush.bf16.msrb.mxu1 %v5944_v49  ;;  %v7799_v40 = vld [vmem:[#allocation5 + $0x36c] sm:$0xf0] }
 0x10a   :  { %v6453_v45 = vld [vmem:[#allocation5 + $0xa68] sm:$0xf0]  ;;  %v5819_v41 = vld [vmem:[#allocation5 + $0x550] sm:$0xf]  ;;  %v5564_v46 = vor.u32 %v7799_v40, %v5563_v35 }
 0x10b   :  { %v7818_v47 = vld [vmem:[#allocation5 + $0x40c] sm:$0xf]  ;;  %v6456_v54 = vor.u32 %v8018_v44, %v6453_v45  ;;  %2752 = vmatpush.bf16.msrb.mxu2 %v6200_v50  ;;  %v7863_v42 = vld [vmem:[#allocation5 + $0x56c] sm:$0xf0]  ;;  %v5308_v45 = vor.u32 %v7735_v34, %v5307_v33 }
 0x10c   :  { %v5653_v48 = vld [vmem:[#allocation5 + $0x428] sm:$0xf0]  ;;  %v7927_v44 = vld [vmem:[#allocation5 + $0x76c] sm:$0xf0] }
 0x10d   :  { %v7882_v51 = vld [vmem:[#allocation5 + $0x60c] sm:$0xf]  ;;  %v5656_v1 = vor.u32 %v7818_v47, %v5653_v48  ;;  %2765 = vmatpush.bf16.msrb.mxu3 %v6456_v54  ;;  %v5820_v47 = vor.u32 %v7863_v42, %v5819_v41  ;;  %v5275_v48 = vld [vmem:[#allocation5 + $0x110] sm:$0xf] }
 0x10e   :  { %v5909_v52 = vld [vmem:[#allocation5 + $0x628] sm:$0xf0]  ;;  %v7727_v49 = vld [vmem:[#allocation5 + $0x12c] sm:$0xf0] }
 0x10f   :  { %v7946_v53 = vld [vmem:[#allocation5 + $0x80c] sm:$0xf]  ;;  %v5912_v7 = vor.u32 %v7882_v51, %v5909_v52  ;;  %2727 = vmatpush.bf16.msrb.mxu0 %v5656_v1  ;;  %v5531_v50 = vld [vmem:[#allocation5 + $0x310] sm:$0xf]  ;;  %v6076_v51 = vor.u32 %v7927_v44, %v6075_v43  ;;  %v5276_v58 = vor.u32 %v7727_v49, %v5275_v48 }
 0x110   :  { %v6165_v55 = vld [vmem:[#allocation5 + $0x828] sm:$0xf0]  ;;  %v7791_v52 = vld [vmem:[#allocation5 + $0x32c] sm:$0xf0] }
 0x111   :  { %v8010_v56 = vld [vmem:[#allocation5 + $0xa0c] sm:$0xf]  ;;  %v6168_v8 = vor.u32 %v7946_v53, %v6165_v55  ;;  %2740 = vmatpush.bf16.msrb.mxu1 %v5912_v7  ;;  %v5787_v53 = vld [vmem:[#allocation5 + $0x510] sm:$0xf]  ;;  %v5532_v61 = vor.u32 %v7791_v52, %v5531_v50 }
 0x112   :  { %v6421_v57 = vld [vmem:[#allocation5 + $0xa28] sm:$0xf0]  ;;  %2728 = vmatmul.bf16.vlgmr.msrb.gmra.mxu0 %v8572_v20  ;;  %v7855_v54 = vld [vmem:[#allocation5 + $0x52c] sm:$0xf0] }
 0x113   :  { %v6424_v12 = vor.u32 %v8010_v56, %v6421_v57  ;;  %2753 = vmatpush.bf16.msrb.mxu2 %v6168_v8  ;;  %2772 = vmatpush.bf16.msra.mxu0 %v5372_v13  ;;  %v6043_v55 = vld [vmem:[#allocation5 + $0x710] sm:$0xf]  ;;  %v2521_v57 = vpop.f32.mrf.mxu0  ;;  %v5788_v62 = vor.u32 %v7855_v54, %v5787_v53 }
 0x114   :  { %2741 = vmatmul.bf16.vlgmr.msrb.gmra.mxu1 %v8576_v23  ;;  %v7919_v56 = vld [vmem:[#allocation5 + $0x72c] sm:$0xf0]  ;;  %v2522_v59 = vadd.f32 %v2521_v57, %v2509_v11  ;;  %v5244_v11 = vor.u32 %v7719_v0, %v5243_v63 }
 0x115   :  { %2766 = vmatpush.bf16.msrb.mxu3 %v6424_v12  ;;  %2785 = vmatpush.bf16.msra.mxu1 %v5628_v14  ;;  %v5499_v1 = vld [vmem:[#allocation5 + $0x2d0] sm:$0xf]  ;;  %v6044_v2 = vor.u32 %v7919_v56, %v6043_v55 }
 0x116   :  { %2754 = vmatmul.bf16.vlgmr.msrb.gmra.mxu2 %v8582_v36  ;;  %v7783_v3 = vld [vmem:[#allocation5 + $0x2ec] sm:$0xf0]  ;;  %v8609_v7 = vadd.f32 %v2534_v60, %v2522_v59  ;;  %v2549_v59 = vpop.f32.mrf.mxu2 }
 0x117   :  { %2798 = vmatpush.bf16.msra.mxu2 %v5884_v15  ;;  %2773 = vmatpush.bf16.msra.mxu0 %v5340_v29  ;;  %v5755_v5 = vld [vmem:[#allocation5 + $0x4d0] sm:$0xf]  ;;  %v5500_v12 = vor.u32 %v7783_v3, %v5499_v1  ;;  %v2560_v29 = vpop.f32.mrf.mxu3  ;;  %v5373_v3 = vld [vmem:[#allocation5 + $0x1f0] sm:$0xf0] }
 0x118   :  { %2767 = vmatmul.bf16.vlgmr.msrb.gmra.mxu3 %v8584_v39  ;;  %v6011_v8 = vld [vmem:[#allocation5 + $0x6d0] sm:$0xf]  ;;  %v5756_v13 = vor.u32 %v7847_v6, %v5755_v5  ;;  %v8612_v40 = vadd.f32 %v2560_v29, %v2548_v28  ;;  %vm3084_vm0 = vcmp.gt.f32.partialorder %v8609_v7, 0.0 }
 0x119   :  { %2811 = vmatpush.bf16.msra.mxu3 %v6140_v22  ;;  %2786 = vmatpush.bf16.msra.mxu1 %v5596_v31  ;;  %v7911_v9 = vld [vmem:[#allocation5 + $0x6ec] sm:$0xf0] }
 0x11a   :  { %v5211_v14 = vld [vmem:[#allocation5 + $0x90] sm:$0xf]  ;;  %v6012_v17 = vor.u32 %v7911_v9, %v6011_v8  ;;  %v7811_v8 = vld [vmem:[#allocation5 + $0x3d4] sm:$0xf] }
 0x11b   :  { %2799 = vmatpush.bf16.msra.mxu2 %v5852_v32  ;;  %2774 = vmatpush.bf16.msra.mxu0 %v5308_v45  ;;  %v7711_v15 = vld [vmem:[#allocation5 + $0xac] sm:$0xf0]  ;;  %v2523_v30 = vpop.f32.mrf.mxu0  ;;  %v2536_v32 = vpop.f32.mrf.mxu1  ;;  %v5629_v9 = vld [vmem:[#allocation5 + $0x3f0] sm:$0xf0] }
 0x11c   :  { %v5467_v16 = vld [vmem:[#allocation5 + $0x290] sm:$0xf]  ;;  %v5212_v31 = vor.u32 %v7711_v15, %v5211_v14 }
 0x11d   :  { %2812 = vmatpush.bf16.msra.mxu3 %v6108_v38  ;;  %2787 = vmatpush.bf16.msra.mxu1 %v5564_v46  ;;  %v7775_v18 = vld [vmem:[#allocation5 + $0x2ac] sm:$0xf0] }
 0x11e   :  { %v5723_v22 = vld [vmem:[#allocation5 + $0x490] sm:$0xf]  ;;  %v5468_v33 = vor.u32 %v7775_v18, %v5467_v16 }
 0x11f   :  { %2800 = vmatpush.bf16.msra.mxu2 %v5820_v47  ;;  %2775 = vmatpush.bf16.msra.mxu0 %v5276_v58  ;;  %v7839_v24 = vld [vmem:[#allocation5 + $0x4ac] sm:$0xf0]  ;;  %v2562_v63 = vpop.f32.mrf.mxu3 }
 0x120   :  { %v5979_v26 = vld [vmem:[#allocation5 + $0x690] sm:$0xf]  ;;  %v5724_v34 = vor.u32 %v7839_v24, %v5723_v22  ;;  %v7739_v22 = vld [vmem:[#allocation5 + $0x194] sm:$0xf] }
 0x121   :  { %2813 = vmatpush.bf16.msra.mxu3 %v6076_v51  ;;  %2788 = vmatpush.bf16.msra.mxu1 %v5532_v61  ;;  %v7903_v27 = vld [vmem:[#allocation5 + $0x6ac] sm:$0xf0]  ;;  %v5341_v24 = vld [vmem:[#allocation5 + $0x1b0] sm:$0xf0] }
 0x122   :  { %v5179_v35 = vld [vmem:[#allocation5 + $0x50] sm:$0xf]  ;;  %v5980_v41 = vor.u32 %v7903_v27, %v5979_v26  ;;  %v5597_v26 = vld [vmem:[#allocation5 + $0x3b0] sm:$0xf0]  ;;  %v5344_v29 = vor.u32 %v7739_v22, %v5341_v24 }
 0x123   :  { %2801 = vmatpush.bf16.msra.mxu2 %v5788_v62  ;;  %2776 = vmatpush.bf16.msra.mxu0 %v5244_v11  ;;  %v7703_v37 = vld [vmem:[#allocation5 + $0x6c] sm:$0xf0]  ;;  %v7771_v24 = vld [vmem:[#allocation5 + $0x294] sm:$0xf] }
 0x124   :  { %v5435_v38 = vld [vmem:[#allocation5 + $0x250] sm:$0xf]  ;;  %v5180_v47 = vor.u32 %v7703_v37, %v5179_v35  ;;  %v7731_v35 = vld [vmem:[#allocation5 + $0x154] sm:$0xf] }
 0x125   :  { %2814 = vmatpush.bf16.msra.mxu3 %v6044_v2  ;;  %2789 = vmatpush.bf16.msra.mxu1 %v5500_v12  ;;  %v7767_v42 = vld [vmem:[#allocation5 + $0x26c] sm:$0xf0]  ;;  %v7747_v2 = vld [vmem:[#allocation5 + $0x1d4] sm:$0xf] }
 0x126   :  { %v5691_v43 = vld [vmem:[#allocation5 + $0x450] sm:$0xf]  ;;  %v5436_v50 = vor.u32 %v7767_v42, %v5435_v38  ;;  %v5309_v37 = vld [vmem:[#allocation5 + $0x170] sm:$0xf0] }
 0x127   :  { %2802 = vmatpush.bf16.msra.mxu2 %v5756_v13  ;;  %v7831_v44 = vld [vmem:[#allocation5 + $0x46c] sm:$0xf0]  ;;  %2777 = vmatpush.bf16.msra.mxu0 %v5212_v31  ;;  %v5376_v13 = vor.u32 %v7747_v2, %v5373_v3  ;;  %v7795_v38 = vld [vmem:[#allocation5 + $0x354] sm:$0xf] }
 0x128   :  { %v5947_v45 = vld [vmem:[#allocation5 + $0x650] sm:$0xf]  ;;  %v5692_v51 = vor.u32 %v7831_v44, %v5691_v43  ;;  %v5312_v44 = vor.u32 %v7731_v35, %v5309_v37  ;;  %v5245_v2 = vld [vmem:[#allocation5 + $0xf0] sm:$0xf0] }
 0x129   :  { %2815 = vmatpush.bf16.msra.mxu3 %v6012_v17  ;;  %v7895_v46 = vld [vmem:[#allocation5 + $0x66c] sm:$0xf0]  ;;  %2790 = vmatpush.bf16.msra.mxu1 %v5468_v33  ;;  %v5632_v17 = vor.u32 %v7811_v8, %v5629_v9  ;;  %v5600_v33 = vor.u32 %v7803_v25, %v5597_v26  ;;  %v7779_v3 = vld [vmem:[#allocation5 + $0x2d4] sm:$0xf] }
 0x12a   :  { %v5147_v48 = vld [vmem:[#allocation5 + $0x10] sm:$0xf]  ;;  %v5948_v55 = vor.u32 %v7895_v46, %v5947_v45  ;;  %v5469_v25 = vld [vmem:[#allocation5 + $0x2b0] sm:$0xf0] }
 0x12b   :  { %v7695_v49 = vld [vmem:[#allocation5 + $0x2c] sm:$0xf0]  ;;  %2803 = vmatpush.bf16.msra.mxu2 %v5724_v34  ;;  %2778 = vmatpush.bf16.msra.mxu0 %v5180_v47  ;;  %v5472_v35 = vor.u32 %v7771_v24, %v5469_v25 }
 0x12c   :  { %v5403_v52 = vld [vmem:[#allocation5 + $0x210] sm:$0xf]  ;;  %v5148_v0 = vor.u32 %v7695_v49, %v5147_v48 }
 0x12d   :  { %v7759_v53 = vld [vmem:[#allocation5 + $0x22c] sm:$0xf0]  ;;  %2816 = vmatpush.bf16.msra.mxu3 %v5980_v41  ;;  %2791 = vmatpush.bf16.msra.mxu1 %v5436_v50  ;;  %v5565_v41 = vld [vmem:[#allocation5 + $0x370] sm:$0xf0] }
 0x12e   :  { %v5659_v54 = vld [vmem:[#allocation5 + $0x410] sm:$0xf]  ;;  %v5404_v5 = vor.u32 %v7759_v53, %v5403_v52  ;;  %v5568_v48 = vor.u32 %v7795_v38, %v5565_v41  ;;  %v7723_v50 = vld [vmem:[#allocation5 + $0x114] sm:$0xf] }
 0x12f   :  { %v7823_v56 = vld [vmem:[#allocation5 + $0x42c] sm:$0xf0]  ;;  %2804 = vmatpush.bf16.msra.mxu2 %v5692_v51  ;;  %2779 = vmatpush.bf16.msra.mxu0 %v5148_v0  ;;  %v5277_v51 = vld [vmem:[#allocation5 + $0x130] sm:$0xf0] }
 0x130   :  { %v5915_v57 = vld [vmem:[#allocation5 + $0x610] sm:$0xf]  ;;  %v5660_v6 = vor.u32 %v7823_v56, %v5659_v54  ;;  %v7787_v52 = vld [vmem:[#allocation5 + $0x314] sm:$0xf] }
 0x131   :  { %v7887_v58 = vld [vmem:[#allocation5 + $0x62c] sm:$0xf0]  ;;  %2817 = vmatpush.bf16.msra.mxu3 %v5948_v55  ;;  %2792 = vmatpush.bf16.msra.mxu1 %v5404_v5  ;;  %v5533_v53 = vld [vmem:[#allocation5 + $0x330] sm:$0xf0]  ;;  %v2573_v55 = vpop.f32.mrf.mxu0 }
 0x132   :  { %v6395_v60 = vld [vmem:[#allocation5 + $0x9d0] sm:$0xf]  ;;  %v5916_v10 = vor.u32 %v7887_v58, %v5915_v57  ;;  %2780 = vmatmul.bf16.vlgmr.msra.gmra.mxu0 %v8570_v19  ;;  %v5280_v57 = vor.u32 %v7723_v50, %v5277_v51  ;;  %v5536_v63 = vor.u32 %v7787_v52, %v5533_v53  ;;  %v5501_v5 = vld [vmem:[#allocation5 + $0x2f0] sm:$0xf0] }
 0x133   :  { %v8007_v61 = vld [vmem:[#allocation5 + $0x9ec] sm:$0xf0]  ;;  %2805 = vmatpush.bf16.msra.mxu2 %v5660_v6  ;;  %v7699_v38 = vld [vmem:[#allocation5 + $0x54] sm:$0xf] }
 0x134   :  { %v6651_v62 = vld [vmem:[#allocation5 + $0xbd0] sm:$0xf]  ;;  %v6396_v11 = vor.u32 %v8007_v61, %v6395_v60  ;;  %2793 = vmatmul.bf16.vlgmr.msra.gmra.mxu1 %v8574_v21  ;;  %v2574_v61 = vadd.f32 %v2573_v55, %v8612_v40  ;;  %v5504_v40 = vor.u32 %v7779_v3, %v5501_v5  ;;  %v2612_v22 = vpop.f32.mrf.mxu3  ;;  %v5181_v41 = vld [vmem:[#allocation5 + $0x70] sm:$0xf0] }
 0x135   :  { %v8071_v1 = vld [vmem:[#allocation5 + $0xbec] sm:$0xf0]  ;;  %2818 = vmatpush.bf16.msra.mxu3 %v5916_v10  ;;  %v7691_v51 = vld [vmem:[#allocation5 + $0x14] sm:$0xf] }
 0x136   :  { %v6652_v12 = vor.u32 %v8071_v1, %v6651_v62  ;;  %v6363_v14 = vld [vmem:[#allocation5 + $0x990] sm:$0xf]  ;;  %2824 = vmatpush.bf16.msrb.mxu0 %v6396_v11  ;;  %2806 = vmatmul.bf16.vlgmr.msra.gmra.mxu2 %v8572_v20  ;;  %v2586_v62 = vpop.f32.mrf.mxu1  ;;  %v7715_v1 = vld [vmem:[#allocation5 + $0xd4] sm:$0xf] }
 0x137   :  { %v7999_v15 = vld [vmem:[#allocation5 + $0x9ac] sm:$0xf0]  ;;  %2850 = vmatpush.bf16.msrb.mxu2 %v5376_v13  ;;  %v2587_v6 = vadd.f32 %v2586_v62, %v2574_v61  ;;  %v5248_v10 = vor.u32 %v7715_v1, %v5245_v2  ;;  %v7755_v55 = vld [vmem:[#allocation5 + $0x214] sm:$0xf] }
 0x138   :  { %v6619_v16 = vld [vmem:[#allocation5 + $0xb90] sm:$0xf]  ;;  %v6364_v27 = vor.u32 %v7999_v15, %v6363_v14  ;;  %2837 = vmatpush.bf16.msrb.mxu1 %v6652_v12  ;;  %2819 = vmatmul.bf16.vlgmr.msra.gmra.mxu3 %v8576_v23  ;;  %v2599_v14 = vpop.f32.mrf.mxu2  ;;  %v6141_v62 = vld [vmem:[#allocation5 + $0x7f0] sm:$0xf0] }
 0x139   :  { %v8063_v18 = vld [vmem:[#allocation5 + $0xbac] sm:$0xf0]  ;;  %2863 = vmatpush.bf16.msrb.mxu3 %v5632_v17  ;;  %v5213_v17 = vld [vmem:[#allocation5 + $0xb0] sm:$0xf0] }
 0x13a   :  { %v6620_v28 = vor.u32 %v8063_v18, %v6619_v16  ;;  %v6331_v30 = vld [vmem:[#allocation5 + $0x950] sm:$0xf]  ;;  %2825 = vmatpush.bf16.msrb.mxu0 %v6364_v27  ;;  %v7707_v16 = vld [vmem:[#allocation5 + $0x94] sm:$0xf]  ;;  %v2600_v18 = vadd.f32 %v2599_v14, %v2587_v6 }
 0x13b   :  { %v7991_v31 = vld [vmem:[#allocation5 + $0x96c] sm:$0xf0]  ;;  %2851 = vmatpush.bf16.msrb.mxu2 %v5344_v29  ;;  %v8067_v3 = vld [vmem:[#allocation5 + $0xbd4] sm:$0xf] }
 0x13c   :  { %v6587_v32 = vld [vmem:[#allocation5 + $0xb50] sm:$0xf]  ;;  %v6332_v42 = vor.u32 %v7991_v31, %v6331_v30  ;;  %2838 = vmatpush.bf16.msrb.mxu1 %v6620_v28  ;;  %v8619_v27 = vadd.f32 %v2612_v22, %v2600_v18  ;;  %v2575_v28 = vpop.f32.mrf.mxu0  ;;  %v5216_v30 = vor.u32 %v7707_v16, %v5213_v17  ;;  %v6653_v5 = vld [vmem:[#allocation5 + $0xbf0] sm:$0xf0] }
 0x13d   :  { %v8055_v34 = vld [vmem:[#allocation5 + $0xb6c] sm:$0xf0]  ;;  %2864 = vmatpush.bf16.msrb.mxu3 %v5600_v33  ;;  %v6656_v14 = vor.u32 %v8067_v3, %v6653_v5  ;;  %v6365_v16 = vld [vmem:[#allocation5 + $0x9b0] sm:$0xf0] }
 0x13e   :  { %v6588_v43 = vor.u32 %v8055_v34, %v6587_v32  ;;  %v6299_v45 = vld [vmem:[#allocation5 + $0x910] sm:$0xf]  ;;  %2826 = vmatpush.bf16.msrb.mxu0 %v6332_v42  ;;  %v2588_v34 = vpop.f32.mrf.mxu1  ;;  %v7763_v42 = vld [vmem:[#allocation5 + $0x254] sm:$0xf]  ;;  %vm3085_vm1 = vcmp.gt.f32.partialorder %v8619_v27, 0.0 }
 0x13f   :  { %v7983_v46 = vld [vmem:[#allocation5 + $0x92c] sm:$0xf0]  ;;  %2852 = vmatpush.bf16.msrb.mxu2 %v5312_v44  ;;  %v8059_v17 = vld [vmem:[#allocation5 + $0xb94] sm:$0xf] }
 0x140   :  { %v6555_v47 = vld [vmem:[#allocation5 + $0xb10] sm:$0xf]  ;;  %v6300_v54 = vor.u32 %v7983_v46, %v6299_v45  ;;  %2839 = vmatpush.bf16.msrb.mxu1 %v6588_v43  ;;  %v5437_v43 = vld [vmem:[#allocation5 + $0x270] sm:$0xf0]  ;;  %v2601_v52 = vpop.f32.mrf.mxu2 }
 0x141   :  { %v8047_v49 = vld [vmem:[#allocation5 + $0xb2c] sm:$0xf0]  ;;  %2865 = vmatpush.bf16.msrb.mxu3 %v5568_v48  ;;  %v5184_v48 = vor.u32 %v7699_v38, %v5181_v41  ;;  %v5440_v53 = vor.u32 %v7763_v42, %v5437_v43  ;;  %v6621_v18 = vld [vmem:[#allocation5 + $0xbb0] sm:$0xf0]  ;;  %v505_v38 = vperm.slane %v8602_v4, 2 }
 0x142   :  { %v6556_v56 = vor.u32 %v8047_v49, %v6555_v47  ;;  %v6267_v58 = vld [vmem:[#allocation5 + $0x8d0] sm:$0xf]  ;;  %2827 = vmatpush.bf16.msrb.mxu0 %v6300_v54  ;;  %v5149_v54 = vld [vmem:[#allocation5 + $0x30] sm:$0xf0] }
 0x143   :  { %v7975_v59 = vld [vmem:[#allocation5 + $0x8ec] sm:$0xf0]  ;;  %2853 = vmatpush.bf16.msrb.mxu2 %v5280_v57  ;;  %v2614_v57 = vpop.f32.mrf.mxu3  ;;  %v5152_v2 = vor.u32 %v7691_v51, %v5149_v54  ;;  %v5821_v28 = vld [vmem:[#allocation5 + $0x570] sm:$0xf0] }
 0x144   :  { %v6523_v60 = vld [vmem:[#allocation5 + $0xad0] sm:$0xf]  ;;  %v6268_v8 = vor.u32 %v7975_v59, %v6267_v58  ;;  %2840 = vmatpush.bf16.msrb.mxu1 %v6556_v56  ;;  %v5405_v56 = vld [vmem:[#allocation5 + $0x230] sm:$0xf0] }
 0x145   :  { %v8039_v0 = vld [vmem:[#allocation5 + $0xaec] sm:$0xf0]  ;;  %2866 = vmatpush.bf16.msrb.mxu3 %v5536_v63  ;;  %v7875_v58 = vld [vmem:[#allocation5 + $0x5d4] sm:$0xf]  ;;  %v5408_v6 = vor.u32 %v7755_v55, %v5405_v56 }
 0x146   :  { %v6524_v9 = vor.u32 %v8039_v0, %v6523_v60  ;;  %v6235_v11 = vld [vmem:[#allocation5 + $0x890] sm:$0xf]  ;;  %2828 = vmatpush.bf16.msrb.mxu0 %v6268_v8  ;;  %v5885_v59 = vld [vmem:[#allocation5 + $0x5f0] sm:$0xf0] }
 0x147   :  { %v7967_v12 = vld [vmem:[#allocation5 + $0x8ac] sm:$0xf0]  ;;  %2854 = vmatpush.bf16.msrb.mxu2 %v5248_v10  ;;  %v7939_v60 = vld [vmem:[#allocation5 + $0x7d4] sm:$0xf]  ;;  %v5888_v8 = vor.u32 %v7875_v58, %v5885_v59 }
 0x148   :  { %v6491_v13 = vld [vmem:[#allocation5 + $0xa90] sm:$0xf]  ;;  %v6236_v26 = vor.u32 %v7967_v12, %v6235_v11  ;;  %2841 = vmatpush.bf16.msrb.mxu1 %v6524_v9  ;;  %v8003_v63 = vld [vmem:[#allocation5 + $0x9d4] sm:$0xf]  ;;  %v6144_v9 = vor.u32 %v7939_v60, %v6141_v62  ;;  %v2625_v52 = vpop.f32.mrf.mxu0 }
 0x149   :  { %v8031_v15 = vld [vmem:[#allocation5 + $0xaac] sm:$0xf0]  ;;  %2867 = vmatpush.bf16.msrb.mxu3 %v5504_v40  ;;  %v6397_v0 = vld [vmem:[#allocation5 + $0x9f0] sm:$0xf0]  ;;  %v2626_v54 = vadd.f32 %v2625_v52, %v505_v38 }
 0x14a   :  { %v6492_v29 = vor.u32 %v8031_v15, %v6491_v13  ;;  %v6203_v31 = vld [vmem:[#allocation5 + $0x850] sm:$0xf]  ;;  %2829 = vmatpush.bf16.msrb.mxu0 %v6236_v26  ;;  %v6400_v10 = vor.u32 %v8003_v63, %v6397_v0  ;;  %v7867_v11 = vld [vmem:[#allocation5 + $0x594] sm:$0xf]  ;;  %v2638_v55 = vpop.f32.mrf.mxu1 }
 0x14b   :  { %v7959_v32 = vld [vmem:[#allocation5 + $0x86c] sm:$0xf0]  ;;  %2855 = vmatpush.bf16.msrb.mxu2 %v5216_v30  ;;  %v5853_v12 = vld [vmem:[#allocation5 + $0x5b0] sm:$0xf0]  ;;  %v6624_v30 = vor.u32 %v8059_v17, %v6621_v18  ;;  %v2639_v0 = vadd.f32 %v2638_v55, %v2626_v54  ;;  %v5379_v55 = vld [vmem:[#allocation5 + $0x1d8] sm:$0xf] }
 0x14c   :  { %v6459_v33 = vld [vmem:[#allocation5 + $0xa50] sm:$0xf]  ;;  %v6204_v44 = vor.u32 %v7959_v32, %v6203_v31  ;;  %2842 = vmatpush.bf16.msrb.mxu1 %v6492_v29  ;;  %v7931_v13 = vld [vmem:[#allocation5 + $0x794] sm:$0xf]  ;;  %v5856_v22 = vor.u32 %v7867_v11, %v5853_v12 }
 0x14d   :  { %v8023_v37 = vld [vmem:[#allocation5 + $0xa6c] sm:$0xf0]  ;;  %2868 = vmatpush.bf16.msrb.mxu3 %v5472_v35  ;;  %v6109_v40 = vld [vmem:[#allocation5 + $0x7b0] sm:$0xf0] }
 0x14e   :  { %v6171_v45 = vld [vmem:[#allocation5 + $0x810] sm:$0xf]  ;;  %v6460_v47 = vor.u32 %v8023_v37, %v6459_v33  ;;  %2830 = vmatpush.bf16.msrb.mxu0 %v6204_v44  ;;  %v7995_v15 = vld [vmem:[#allocation5 + $0x994] sm:$0xf]  ;;  %v6112_v24 = vor.u32 %v7931_v13, %v6109_v40 }
 0x14f   :  { %v7951_v46 = vld [vmem:[#allocation5 + $0x82c] sm:$0xf0]  ;;  %2856 = vmatpush.bf16.msrb.mxu2 %v5184_v48  ;;  %v6368_v25 = vor.u32 %v7995_v15, %v6365_v16  ;;  %v7859_v26 = vld [vmem:[#allocation5 + $0x554] sm:$0xf] }
 0x150   :  { %v6427_v49 = vld [vmem:[#allocation5 + $0xa10] sm:$0xf]  ;;  %v6172_v61 = vor.u32 %v7951_v46, %v6171_v45  ;;  %2843 = vmatpush.bf16.msrb.mxu1 %v6460_v47  ;;  %v7923_v29 = vld [vmem:[#allocation5 + $0x754] sm:$0xf]  ;;  %v5824_v37 = vor.u32 %v7859_v26, %v5821_v28  ;;  %v2627_v18 = vpop.f32.mrf.mxu0 }
 0x151   :  { %v8015_v50 = vld [vmem:[#allocation5 + $0xa2c] sm:$0xf0]  ;;  %2869 = vmatpush.bf16.msrb.mxu3 %v5440_v53  ;;  %v6077_v31 = vld [vmem:[#allocation5 + $0x770] sm:$0xf0] }
 0x152   :  { %v6428_v1 = vor.u32 %v8015_v50, %v6427_v49  ;;  %2831 = vmatpush.bf16.msrb.mxu0 %v6172_v61  ;;  %v7987_v32 = vld [vmem:[#allocation5 + $0x954] sm:$0xf]  ;;  %v6080_v41 = vor.u32 %v7923_v29, %v6077_v31  ;;  %v2651_v40 = vpop.f32.mrf.mxu2 }
 0x153   :  { %2857 = vmatpush.bf16.msrb.mxu2 %v5152_v2  ;;  %v6333_v33 = vld [vmem:[#allocation5 + $0x970] sm:$0xf0]  ;;  %v2652_v17 = vadd.f32 %v2651_v40, %v2639_v0  ;;  %v6147_v0 = vld [vmem:[#allocation5 + $0x7d8] sm:$0xf] }
 0x154   :  { %2844 = vmatpush.bf16.msrb.mxu1 %v6428_v1  ;;  %v8051_v34 = vld [vmem:[#allocation5 + $0xb54] sm:$0xf]  ;;  %v6336_v42 = vor.u32 %v7987_v32, %v6333_v33  ;;  %v6115_v40 = vld [vmem:[#allocation5 + $0x798] sm:$0xf] }
 0x155   :  { %2870 = vmatpush.bf16.msrb.mxu3 %v5408_v6  ;;  %2832 = vmatmul.bf16.vlgmr.msrb.gmra.mxu0 %v8582_v36  ;;  %v6589_v35 = vld [vmem:[#allocation5 + $0xb70] sm:$0xf0] }
 0x156   :  { %2876 = vmatpush.bf16.msra.mxu0 %v5888_v8  ;;  %2858 = vmatmul.bf16.vlgmr.msrb.gmra.mxu2 %v8570_v19  ;;  %v7851_v43 = vld [vmem:[#allocation5 + $0x514] sm:$0xf]  ;;  %v6592_v46 = vor.u32 %v8051_v34, %v6589_v35 }
 0x157   :  { %2902 = vmatpush.bf16.msra.mxu2 %v6400_v10  ;;  %2845 = vmatmul.bf16.vlgmr.msrb.gmra.mxu1 %v8584_v39  ;;  %v5789_v44 = vld [vmem:[#allocation5 + $0x530] sm:$0xf0] }
 0x158   :  { %2889 = vmatpush.bf16.msra.mxu1 %v6144_v9  ;;  %2871 = vmatmul.bf16.vlgmr.msrb.gmra.mxu3 %v8574_v21  ;;  %v7915_v45 = vld [vmem:[#allocation5 + $0x714] sm:$0xf]  ;;  %v5792_v53 = vor.u32 %v7851_v43, %v5789_v44 }
 0x159   :  { %2915 = vmatpush.bf16.msra.mxu3 %v6656_v14  ;;  %v6045_v47 = vld [vmem:[#allocation5 + $0x730] sm:$0xf0] }
 0x15a   :  { %2877 = vmatpush.bf16.msra.mxu0 %v5856_v22  ;;  %v7979_v48 = vld [vmem:[#allocation5 + $0x914] sm:$0xf]  ;;  %v6048_v4 = vor.u32 %v7915_v45, %v6045_v47  ;;  %v2664_v22 = vpop.f32.mrf.mxu3  ;;  %v2653_v54 = vpop.f32.mrf.mxu2 }
 0x15b   :  { %2903 = vmatpush.bf16.msra.mxu2 %v6368_v25  ;;  %v6301_v49 = vld [vmem:[#allocation5 + $0x930] sm:$0xf0]  ;;  %v2640_v25 = vpop.f32.mrf.mxu1  ;;  %v8626_v32 = vadd.f32 %v2664_v22, %v2652_v17  ;;  %v5315_v22 = vld [vmem:[#allocation5 + $0x158] sm:$0xf] }
 0x15c   :  { %2890 = vmatpush.bf16.msra.mxu1 %v6112_v24  ;;  %v8043_v50 = vld [vmem:[#allocation5 + $0xb14] sm:$0xf]  ;;  %v6304_v56 = vor.u32 %v7979_v48, %v6301_v49  ;;  %v5571_v25 = vld [vmem:[#allocation5 + $0x358] sm:$0xf] }
 0x15d   :  { %2916 = vmatpush.bf16.msra.mxu3 %v6624_v30  ;;  %v6557_v51 = vld [vmem:[#allocation5 + $0xb30] sm:$0xf0] }
 0x15e   :  { %2878 = vmatpush.bf16.msra.mxu0 %v5824_v37  ;;  %v7843_v57 = vld [vmem:[#allocation5 + $0x4d4] sm:$0xf]  ;;  %v6560_v60 = vor.u32 %v8043_v50, %v6557_v51 }
 0x15f   :  { %2904 = vmatpush.bf16.msra.mxu2 %v6336_v42  ;;  %v5757_v58 = vld [vmem:[#allocation5 + $0x4f0] sm:$0xf0] }
 0x160   :  { %2891 = vmatpush.bf16.msra.mxu1 %v6080_v41  ;;  %v7907_v59 = vld [vmem:[#allocation5 + $0x6d4] sm:$0xf]  ;;  %v5760_v3 = vor.u32 %v7843_v57, %v5757_v58 }
 0x161   :  { %2917 = vmatpush.bf16.msra.mxu3 %v6592_v46  ;;  %v6013_v61 = vld [vmem:[#allocation5 + $0x6f0] sm:$0xf0] }
 0x162   :  { %v7971_v62 = vld [vmem:[#allocation5 + $0x8d4] sm:$0xf]  ;;  %2879 = vmatpush.bf16.msra.mxu0 %v5792_v53  ;;  %v6016_v5 = vor.u32 %v7907_v59, %v6013_v61  ;;  %v2666_v57 = vpop.f32.mrf.mxu3  ;;  %v7816_v59 = vld [vmem:[#allocation5 + $0x3f4] sm:$0xf0] }
 0x163   :  { %v6269_v63 = vld [vmem:[#allocation5 + $0x8f0] sm:$0xf0]  ;;  %2905 = vmatpush.bf16.msra.mxu2 %v6304_v56  ;;  %v5635_v56 = vld [vmem:[#allocation5 + $0x3d8] sm:$0xf] }
 0x164   :  { %v8035_v1 = vld [vmem:[#allocation5 + $0xad4] sm:$0xf]  ;;  %2892 = vmatpush.bf16.msra.mxu1 %v6048_v4  ;;  %v6272_v6 = vor.u32 %v7971_v62, %v6269_v63  ;;  %v7752_v4 = vld [vmem:[#allocation5 + $0x1f4] sm:$0xf0] }
 0x165   :  { %v6525_v2 = vld [vmem:[#allocation5 + $0xaf0] sm:$0xf0]  ;;  %2918 = vmatpush.bf16.msra.mxu3 %v6560_v60  ;;  %v5891_v60 = vld [vmem:[#allocation5 + $0x5d8] sm:$0xf] }
 0x166   :  { %v7835_v8 = vld [vmem:[#allocation5 + $0x494] sm:$0xf]  ;;  %v6528_v11 = vor.u32 %v8035_v1, %v6525_v2  ;;  %2880 = vmatpush.bf16.msra.mxu0 %v5760_v3  ;;  %v7880_v61 = vld [vmem:[#allocation5 + $0x5f4] sm:$0xf0]  ;;  %v5380_v3 = vor.u32 %v7752_v4, %v5379_v55 }
 0x167   :  { %v5725_v9 = vld [vmem:[#allocation5 + $0x4b0] sm:$0xf0]  ;;  %2906 = vmatpush.bf16.msra.mxu2 %v6272_v6  ;;  %v7944_v1 = vld [vmem:[#allocation5 + $0x7f4] sm:$0xf0]  ;;  %v5892_v6 = vor.u32 %v7880_v61, %v5891_v60 }
 0x168   :  { %v7899_v10 = vld [vmem:[#allocation5 + $0x694] sm:$0xf]  ;;  %v5728_v24 = vor.u32 %v7835_v8, %v5725_v9  ;;  %2893 = vmatpush.bf16.msra.mxu1 %v6016_v5  ;;  %v5636_v5 = vor.u32 %v7816_v59, %v5635_v56  ;;  %v5347_v8 = vld [vmem:[#allocation5 + $0x198] sm:$0xf] }
 0x169   :  { %v5981_v12 = vld [vmem:[#allocation5 + $0x6b0] sm:$0xf0]  ;;  %2919 = vmatpush.bf16.msra.mxu3 %v6528_v11  ;;  %v7744_v9 = vld [vmem:[#allocation5 + $0x1b4] sm:$0xf0]  ;;  %v6148_v11 = vor.u32 %v7944_v1, %v6147_v0  ;;  %v8635_v0 = vld [vmem:[#allocation7] sm:$0xff] }
 0x16a   :  { %v7963_v13 = vld [vmem:[#allocation5 + $0x894] sm:$0xf]  ;;  %v5984_v26 = vor.u32 %v7899_v10, %v5981_v12  ;;  %2881 = vmatpush.bf16.msra.mxu0 %v5728_v24  ;;  %v5603_v10 = vld [vmem:[#allocation5 + $0x398] sm:$0xf] }
 0x16b   :  { %v6237_v14 = vld [vmem:[#allocation5 + $0x8b0] sm:$0xf0]  ;;  %v7808_v12 = vld [vmem:[#allocation5 + $0x3b4] sm:$0xf0] }
 0x16c   :  { %v8027_v15 = vld [vmem:[#allocation5 + $0xa94] sm:$0xf]  ;;  %v6240_v28 = vor.u32 %v7963_v13, %v6237_v14  ;;  %2894 = vmatpush.bf16.msra.mxu1 %v5984_v26  ;;  %v5859_v13 = vld [vmem:[#allocation5 + $0x598] sm:$0xf]  ;;  %v5604_v17 = vor.u32 %v7808_v12, %v5603_v10 }
 0x16d   :  { %v6493_v16 = vld [vmem:[#allocation5 + $0xab0] sm:$0xf0]  ;;  %v7872_v14 = vld [vmem:[#allocation5 + $0x5b4] sm:$0xf0] }
 0x16e   :  { %v7827_v29 = vld [vmem:[#allocation5 + $0x454] sm:$0xf]  ;;  %v6496_v33 = vor.u32 %v8027_v15, %v6493_v16  ;;  %2907 = vmatpush.bf16.msra.mxu2 %v6240_v28  ;;  %v7936_v15 = vld [vmem:[#allocation5 + $0x7b4] sm:$0xf0]  ;;  %v5348_v16 = vor.u32 %v7744_v9, %v5347_v8  ;;  %v5860_v18 = vor.u32 %v7872_v14, %v5859_v13 }
 0x16f   :  { %v5693_v30 = vld [vmem:[#allocation5 + $0x470] sm:$0xf0]  ;;  %v7736_v24 = vld [vmem:[#allocation5 + $0x174] sm:$0xf0]  ;;  %v6116_v26 = vor.u32 %v7936_v15, %v6115_v40 }
 0x170   :  { %v7891_v31 = vld [vmem:[#allocation5 + $0x654] sm:$0xf]  ;;  %v5696_v42 = vor.u32 %v7827_v29, %v5693_v30  ;;  %2920 = vmatpush.bf16.msra.mxu3 %v6496_v33  ;;  %v7800_v28 = vld [vmem:[#allocation5 + $0x374] sm:$0xf0] }
 0x171   :  { %v5949_v34 = vld [vmem:[#allocation5 + $0x670] sm:$0xf0]  ;;  %v5827_v29 = vld [vmem:[#allocation5 + $0x558] sm:$0xf] }
 0x172   :  { %v7955_v35 = vld [vmem:[#allocation5 + $0x854] sm:$0xf]  ;;  %v5952_v45 = vor.u32 %v7891_v31, %v5949_v34  ;;  %2882 = vmatpush.bf16.msra.mxu0 %v5696_v42  ;;  %v7864_v30 = vld [vmem:[#allocation5 + $0x574] sm:$0xf0]  ;;  %v5316_v34 = vor.u32 %v7736_v24, %v5315_v22  ;;  %v2703_v13 = vpop.f32.mrf.mxu2 }
 0x173   :  { %v6205_v37 = vld [vmem:[#allocation5 + $0x870] sm:$0xf0]  ;;  %v6083_v31 = vld [vmem:[#allocation5 + $0x758] sm:$0xf] }
 0x174   :  { %v8019_v38 = vld [vmem:[#allocation5 + $0xa54] sm:$0xf]  ;;  %v6208_v46 = vor.u32 %v7955_v35, %v6205_v37  ;;  %2895 = vmatpush.bf16.msra.mxu1 %v5952_v45  ;;  %v7928_v33 = vld [vmem:[#allocation5 + $0x774] sm:$0xf0]  ;;  %v5572_v35 = vor.u32 %v7800_v28, %v5571_v25  ;;  %v5828_v37 = vor.u32 %v7864_v30, %v5827_v29 }
 0x175   :  { %v6461_v41 = vld [vmem:[#allocation5 + $0xa70] sm:$0xf0]  ;;  %v5539_v42 = vld [vmem:[#allocation5 + $0x318] sm:$0xf] }
 0x176   :  { %v7819_v43 = vld [vmem:[#allocation5 + $0x414] sm:$0xf]  ;;  %v6464_v50 = vor.u32 %v8019_v38, %v6461_v41  ;;  %2908 = vmatpush.bf16.msra.mxu2 %v6208_v46  ;;  %v5283_v38 = vld [vmem:[#allocation5 + $0x118] sm:$0xf] }
 0x177   :  { %v5661_v44 = vld [vmem:[#allocation5 + $0x430] sm:$0xf0]  ;;  %v7728_v41 = vld [vmem:[#allocation5 + $0x134] sm:$0xf0] }
 0x178   :  { %v7883_v47 = vld [vmem:[#allocation5 + $0x614] sm:$0xf]  ;;  %v5664_v58 = vor.u32 %v7819_v43, %v5661_v44  ;;  %2921 = vmatpush.bf16.msra.mxu3 %v6464_v50  ;;  %v6084_v43 = vor.u32 %v7928_v33, %v6083_v31  ;;  %v7792_v44 = vld [vmem:[#allocation5 + $0x334] sm:$0xf0]  ;;  %v5284_v50 = vor.u32 %v7728_v41, %v5283_v38 }
 0x179   :  { %v5917_v48 = vld [vmem:[#allocation5 + $0x630] sm:$0xf0]  ;;  %v5795_v45 = vld [vmem:[#allocation5 + $0x518] sm:$0xf] }
 0x17a   :  { %v7947_v49 = vld [vmem:[#allocation5 + $0x814] sm:$0xf]  ;;  %v5920_v62 = vor.u32 %v7883_v47, %v5917_v48  ;;  %2883 = vmatpush.bf16.msra.mxu0 %v5664_v58  ;;  %v7856_v46 = vld [vmem:[#allocation5 + $0x534] sm:$0xf0] }
 0x17b   :  { %v6173_v51 = vld [vmem:[#allocation5 + $0x830] sm:$0xf0]  ;;  %v6051_v47 = vld [vmem:[#allocation5 + $0x718] sm:$0xf]  ;;  %v5796_v54 = vor.u32 %v7856_v46, %v5795_v45 }
 0x17c   :  { %v8011_v52 = vld [vmem:[#allocation5 + $0xa14] sm:$0xf]  ;;  %v6176_v63 = vor.u32 %v7947_v49, %v6173_v51  ;;  %2896 = vmatpush.bf16.msra.mxu1 %v5920_v62  ;;  %v7920_v48 = vld [vmem:[#allocation5 + $0x734] sm:$0xf0]  ;;  %v2677_v49 = vpop.f32.mrf.mxu0 }
 0x17d   :  { %v6429_v53 = vld [vmem:[#allocation5 + $0xa30] sm:$0xf0]  ;;  %2884 = vmatmul.bf16.vlgmr.msra.gmra.mxu0 %v8572_v20  ;;  %v2678_v51 = vadd.f32 %v2677_v49, %v8626_v32  ;;  %v5251_v55 = vld [vmem:[#allocation5 + $0xd8] sm:$0xf]  ;;  %v6052_v57 = vor.u32 %v7920_v48, %v6051_v47  ;;  %v506_v32 = vperm.slane %v8635_v0, 3 }
 0x17e   :  { %v6432_v2 = vor.u32 %v8011_v52, %v6429_v53  ;;  %2909 = vmatpush.bf16.msra.mxu2 %v6176_v63  ;;  %2928 = vmatpush.bf16.msrb.mxu0 %v5380_v3  ;;  %v2690_v52 = vpop.f32.mrf.mxu1  ;;  %v5540_v53 = vor.u32 %v7792_v44, %v5539_v42  ;;  %v7720_v4 = vld [vmem:[#allocation5 + $0xf4] sm:$0xf0] }
 0x17f   :  { %2897 = vmatmul.bf16.vlgmr.msra.gmra.mxu1 %v8576_v23  ;;  %v5507_v56 = vld [vmem:[#allocation5 + $0x2d8] sm:$0xf]  ;;  %v8633_v61 = vadd.f32 %v2690_v52, %v2678_v51  ;;  %v5252_v1 = vor.u32 %v7720_v4, %v5251_v55  ;;  %v2704_v15 = vadd.f32 %v2703_v13, %v506_v32  ;;  %v7812_v32 = vld [vmem:[#allocation5 + $0x3dc] sm:$0xf] }
 0x180   :  { %2922 = vmatpush.bf16.msra.mxu3 %v6432_v2  ;;  %2941 = vmatpush.bf16.msrb.mxu1 %v5636_v5  ;;  %v7784_v58 = vld [vmem:[#allocation5 + $0x2f4] sm:$0xf0]  ;;  %v7740_v13 = vld [vmem:[#allocation5 + $0x19c] sm:$0xf] }
 0x181   :  { %2910 = vmatmul.bf16.vlgmr.msra.gmra.mxu2 %v8582_v36  ;;  %v5763_v59 = vld [vmem:[#allocation5 + $0x4d8] sm:$0xf]  ;;  %v5508_v2 = vor.u32 %v7784_v58, %v5507_v56  ;;  %vm3086_vm2 = vcmp.gt.f32.partialorder %v8633_v61, 0.0 }
 0x182   :  { %2954 = vmatpush.bf16.msrb.mxu2 %v5892_v6  ;;  %2929 = vmatpush.bf16.msrb.mxu0 %v5348_v16  ;;  %v7848_v60 = vld [vmem:[#allocation5 + $0x4f4] sm:$0xf0]  ;;  %v2716_v16 = vpop.f32.mrf.mxu3 }
 0x183   :  { %2923 = vmatmul.bf16.vlgmr.msra.gmra.mxu3 %v8584_v39  ;;  %v6019_v62 = vld [vmem:[#allocation5 + $0x6d8] sm:$0xf]  ;;  %v5764_v3 = vor.u32 %v7848_v60, %v5763_v59  ;;  %v8638_v30 = vadd.f32 %v2716_v16, %v2704_v15  ;;  %v7748_v59 = vld [vmem:[#allocation5 + $0x1dc] sm:$0xf] }
 0x184   :  { %2967 = vmatpush.bf16.msrb.mxu3 %v6148_v11  ;;  %2942 = vmatpush.bf16.msrb.mxu1 %v5604_v17  ;;  %v7912_v63 = vld [vmem:[#allocation5 + $0x6f4] sm:$0xf0]  ;;  %v2679_v17 = vpop.f32.mrf.mxu0  ;;  %v5381_v60 = vld [vmem:[#allocation5 + $0x1f8] sm:$0xf0] }
 0x185   :  { %v5219_v5 = vld [vmem:[#allocation5 + $0x98] sm:$0xf]  ;;  %v6020_v9 = vor.u32 %v7912_v63, %v6019_v62  ;;  %v5605_v15 = vld [vmem:[#allocation5 + $0x3b8] sm:$0xf0] }
 0x186   :  { %2955 = vmatpush.bf16.msrb.mxu2 %v5860_v18  ;;  %2930 = vmatpush.bf16.msrb.mxu0 %v5316_v34  ;;  %v7712_v6 = vld [vmem:[#allocation5 + $0xb4] sm:$0xf0]  ;;  %v2692_v22 = vpop.f32.mrf.mxu1 }
 0x187   :  { %v5475_v8 = vld [vmem:[#allocation5 + $0x298] sm:$0xf]  ;;  %v5220_v18 = vor.u32 %v7712_v6, %v5219_v5  ;;  %v5384_v6 = vor.u32 %v7748_v59, %v5381_v60  ;;  %v7716_v60 = vld [vmem:[#allocation5 + $0xdc] sm:$0xf] }
 0x188   :  { %2968 = vmatpush.bf16.msrb.mxu3 %v6116_v26  ;;  %2943 = vmatpush.bf16.msrb.mxu1 %v5572_v35  ;;  %v7776_v10 = vld [vmem:[#allocation5 + $0x2b4] sm:$0xf0] }
 0x189   :  { %v5731_v11 = vld [vmem:[#allocation5 + $0x498] sm:$0xf]  ;;  %v5476_v24 = vor.u32 %v7776_v10, %v5475_v8 }
 0x18a   :  { %2956 = vmatpush.bf16.msrb.mxu2 %v5828_v37  ;;  %2931 = vmatpush.bf16.msrb.mxu0 %v5284_v50  ;;  %v7840_v12 = vld [vmem:[#allocation5 + $0x4b4] sm:$0xf0]  ;;  %v2718_v56 = vpop.f32.mrf.mxu3 }
 0x18b   :  { %v5987_v14 = vld [vmem:[#allocation5 + $0x698] sm:$0xf]  ;;  %v5732_v25 = vor.u32 %v7840_v12, %v5731_v11 }
 0x18c   :  { %2969 = vmatpush.bf16.msrb.mxu3 %v6084_v43  ;;  %2944 = vmatpush.bf16.msrb.mxu1 %v5540_v53  ;;  %v7904_v40 = vld [vmem:[#allocation5 + $0x6b4] sm:$0xf0]  ;;  %v2705_v53 = vpop.f32.mrf.mxu2 }
 0x18d   :  { %v5187_v26 = vld [vmem:[#allocation5 + $0x58] sm:$0xf]  ;;  %v5988_v31 = vor.u32 %v7904_v40, %v5987_v14  ;;  %v5349_v14 = vld [vmem:[#allocation5 + $0x1b8] sm:$0xf0] }
 0x18e   :  { %2957 = vmatpush.bf16.msrb.mxu2 %v5796_v54  ;;  %2932 = vmatpush.bf16.msrb.mxu0 %v5252_v1  ;;  %v7704_v28 = vld [vmem:[#allocation5 + $0x74] sm:$0xf0]  ;;  %v5637_v1 = vld [vmem:[#allocation5 + $0x3f8] sm:$0xf0] }
 0x18f   :  { %v5443_v29 = vld [vmem:[#allocation5 + $0x258] sm:$0xf]  ;;  %v5188_v41 = vor.u32 %v7704_v28, %v5187_v26  ;;  %v5640_v11 = vor.u32 %v7812_v32, %v5637_v1  ;;  %v7804_v40 = vld [vmem:[#allocation5 + $0x39c] sm:$0xf] }
 0x190   :  { %2970 = vmatpush.bf16.msrb.mxu3 %v6052_v57  ;;  %2945 = vmatpush.bf16.msrb.mxu1 %v5508_v2  ;;  %v7768_v33 = vld [vmem:[#allocation5 + $0x274] sm:$0xf0]  ;;  %v5608_v26 = vor.u32 %v7804_v40, %v5605_v15  ;;  %v5509_v32 = vld [vmem:[#allocation5 + $0x2f8] sm:$0xf0] }
 0x191   :  { %v5699_v34 = vld [vmem:[#allocation5 + $0x458] sm:$0xf]  ;;  %v5444_v44 = vor.u32 %v7768_v33, %v5443_v29  ;;  %v7732_v29 = vld [vmem:[#allocation5 + $0x15c] sm:$0xf] }
 0x192   :  { %2958 = vmatpush.bf16.msrb.mxu2 %v5764_v3  ;;  %v7832_v35 = vld [vmem:[#allocation5 + $0x474] sm:$0xf0]  ;;  %2933 = vmatpush.bf16.msrb.mxu0 %v5220_v18  ;;  %v5352_v18 = vor.u32 %v7740_v13, %v5349_v14  ;;  %v7796_v33 = vld [vmem:[#allocation5 + $0x35c] sm:$0xf] }
 0x193   :  { %v5955_v37 = vld [vmem:[#allocation5 + $0x658] sm:$0xf]  ;;  %v5700_v45 = vor.u32 %v7832_v35, %v5699_v34  ;;  %v5573_v34 = vld [vmem:[#allocation5 + $0x378] sm:$0xf0] }
 0x194   :  { %2971 = vmatpush.bf16.msrb.mxu3 %v6020_v9  ;;  %v7896_v38 = vld [vmem:[#allocation5 + $0x674] sm:$0xf0]  ;;  %2946 = vmatpush.bf16.msrb.mxu1 %v5476_v24  ;;  %v5221_v13 = vld [vmem:[#allocation5 + $0xb8] sm:$0xf0] }
 0x195   :  { %v5155_v42 = vld [vmem:[#allocation5 + $0x18] sm:$0xf]  ;;  %v5956_v49 = vor.u32 %v7896_v38, %v5955_v37  ;;  %v7772_v15 = vld [vmem:[#allocation5 + $0x29c] sm:$0xf] }
 0x196   :  { %v7696_v43 = vld [vmem:[#allocation5 + $0x34] sm:$0xf0]  ;;  %2959 = vmatpush.bf16.msrb.mxu2 %v5732_v25  ;;  %2934 = vmatpush.bf16.msrb.mxu0 %v5188_v41 }
 0x197   :  { %v5411_v46 = vld [vmem:[#allocation5 + $0x218] sm:$0xf]  ;;  %v5156_v57 = vor.u32 %v7696_v43, %v5155_v42 }
 0x198   :  { %v7760_v47 = vld [vmem:[#allocation5 + $0x234] sm:$0xf0]  ;;  %2972 = vmatpush.bf16.msrb.mxu3 %v5988_v31  ;;  %2947 = vmatpush.bf16.msrb.mxu1 %v5444_v44  ;;  %v5317_v31 = vld [vmem:[#allocation5 + $0x178] sm:$0xf0]  ;;  %v5576_v44 = vor.u32 %v7796_v33, %v5573_v34 }
 0x199   :  { %v5667_v48 = vld [vmem:[#allocation5 + $0x418] sm:$0xf]  ;;  %v5412_v62 = vor.u32 %v7760_v47, %v5411_v46  ;;  %v5320_v38 = vor.u32 %v7732_v29, %v5317_v31  ;;  %v7724_v46 = vld [vmem:[#allocation5 + $0x11c] sm:$0xf] }
 0x19a   :  { %v7824_v50 = vld [vmem:[#allocation5 + $0x434] sm:$0xf0]  ;;  %2960 = vmatpush.bf16.msrb.mxu2 %v5700_v45  ;;  %2935 = vmatpush.bf16.msrb.mxu0 %v5156_v57  ;;  %v5285_v47 = vld [vmem:[#allocation5 + $0x138] sm:$0xf0]  ;;  %v2742_v57 = vpop.f32.mrf.mxu1 }
 0x19b   :  { %v5923_v51 = vld [vmem:[#allocation5 + $0x618] sm:$0xf]  ;;  %v5668_v63 = vor.u32 %v7824_v50, %v5667_v48  ;;  %v7788_v48 = vld [vmem:[#allocation5 + $0x31c] sm:$0xf]  ;;  %v5288_v53 = vor.u32 %v7724_v46, %v5285_v47  ;;  %v2768_v40 = vpop.f32.mrf.mxu3 }
 0x19c   :  { %v7888_v52 = vld [vmem:[#allocation5 + $0x634] sm:$0xf0]  ;;  %2973 = vmatpush.bf16.msrb.mxu3 %v5956_v49  ;;  %2948 = vmatpush.bf16.msrb.mxu1 %v5412_v62  ;;  %v5541_v49 = vld [vmem:[#allocation5 + $0x338] sm:$0xf0] }
 0x19d   :  { %v6403_v54 = vld [vmem:[#allocation5 + $0x9d8] sm:$0xf]  ;;  %v5924_v2 = vor.u32 %v7888_v52, %v5923_v51  ;;  %2936 = vmatmul.bf16.vlgmr.msrb.gmra.mxu0 %v8570_v19  ;;  %v2729_v51 = vpop.f32.mrf.mxu0  ;;  %v5253_v62 = vld [vmem:[#allocation5 + $0xf8] sm:$0xf0] }
 0x19e   :  { %v8008_v55 = vld [vmem:[#allocation5 + $0x9f4] sm:$0xf0]  ;;  %2961 = vmatpush.bf16.msrb.mxu2 %v5668_v63  ;;  %v2730_v56 = vadd.f32 %v2729_v51, %v8638_v30  ;;  %v7780_v63 = vld [vmem:[#allocation5 + $0x2dc] sm:$0xf] }
 0x19f   :  { %v6659_v4 = vld [vmem:[#allocation5 + $0xbd8] sm:$0xf]  ;;  %v6404_v3 = vor.u32 %v8008_v55, %v6403_v54  ;;  %2949 = vmatmul.bf16.vlgmr.msrb.gmra.mxu1 %v8574_v21  ;;  %v5512_v30 = vor.u32 %v7780_v63, %v5509_v32 }
 0x1a0   :  { %v8072_v58 = vld [vmem:[#allocation5 + $0xbf4] sm:$0xf0]  ;;  %2974 = vmatpush.bf16.msrb.mxu3 %v5924_v2  ;;  %v2743_v1 = vadd.f32 %v2742_v57, %v2730_v56  ;;  %v5893_v56 = vld [vmem:[#allocation5 + $0x5f8] sm:$0xf0] }
 0x1a1   :  { %v6660_v5 = vor.u32 %v8072_v58, %v6659_v4  ;;  %v6371_v8 = vld [vmem:[#allocation5 + $0x998] sm:$0xf]  ;;  %2980 = vmatpush.bf16.msra.mxu0 %v6404_v3  ;;  %2962 = vmatmul.bf16.vlgmr.msrb.gmra.mxu2 %v8572_v20  ;;  %v5544_v58 = vor.u32 %v7788_v48, %v5541_v49  ;;  %v7692_v49 = vld [vmem:[#allocation5 + $0x1c] sm:$0xf] }
 0x1a2   :  { %v8000_v9 = vld [vmem:[#allocation5 + $0x9b4] sm:$0xf0]  ;;  %3006 = vmatpush.bf16.msra.mxu2 %v5384_v6  ;;  %v2744_v31 = vpop.f32.mrf.mxu1  ;;  %v7940_v57 = vld [vmem:[#allocation5 + $0x7dc] sm:$0xf] }
 0x1a3   :  { %v6627_v10 = vld [vmem:[#allocation5 + $0xb98] sm:$0xf]  ;;  %v6372_v16 = vor.u32 %v8000_v9, %v6371_v8  ;;  %2993 = vmatpush.bf16.msra.mxu1 %v6660_v5  ;;  %2975 = vmatmul.bf16.vlgmr.msrb.gmra.mxu3 %v8576_v23  ;;  %v5256_v5 = vor.u32 %v7716_v60, %v5253_v62  ;;  %v8004_v60 = vld [vmem:[#allocation5 + $0x9dc] sm:$0xf] }
 0x1a4   :  { %v8064_v12 = vld [vmem:[#allocation5 + $0xbb4] sm:$0xf0]  ;;  %3019 = vmatpush.bf16.msra.mxu3 %v5640_v11  ;;  %v6405_v62 = vld [vmem:[#allocation5 + $0x9f8] sm:$0xf0] }
 0x1a5   :  { %v6628_v17 = vor.u32 %v8064_v12, %v6627_v10  ;;  %v6339_v22 = vld [vmem:[#allocation5 + $0x958] sm:$0xf]  ;;  %2981 = vmatpush.bf16.msra.mxu0 %v6372_v16  ;;  %v2755_v10 = vpop.f32.mrf.mxu2  ;;  %v7708_v12 = vld [vmem:[#allocation5 + $0x9c] sm:$0xf] }
 0x1a6   :  { %v7992_v24 = vld [vmem:[#allocation5 + $0x974] sm:$0xf0]  ;;  %3007 = vmatpush.bf16.msra.mxu2 %v5352_v18  ;;  %v2756_v14 = vadd.f32 %v2755_v10, %v2743_v1  ;;  %v5477_v16 = vld [vmem:[#allocation5 + $0x2b8] sm:$0xf0] }
 0x1a7   :  { %v6595_v25 = vld [vmem:[#allocation5 + $0xb58] sm:$0xf]  ;;  %v6340_v35 = vor.u32 %v7992_v24, %v6339_v22  ;;  %2994 = vmatpush.bf16.msra.mxu1 %v6628_v17  ;;  %v2731_v22 = vpop.f32.mrf.mxu0  ;;  %v5480_v33 = vor.u32 %v7772_v15, %v5477_v16  ;;  %v8068_v1 = vld [vmem:[#allocation5 + $0xbdc] sm:$0xf] }
 0x1a8   :  { %v8056_v28 = vld [vmem:[#allocation5 + $0xb74] sm:$0xf0]  ;;  %3020 = vmatpush.bf16.msra.mxu3 %v5608_v26  ;;  %v8645_v18 = vadd.f32 %v2768_v40, %v2756_v14  ;;  %v5861_v10 = vld [vmem:[#allocation5 + $0x5b8] sm:$0xf0] }
 0x1a9   :  { %v6596_v37 = vor.u32 %v8056_v28, %v6595_v25  ;;  %v6307_v41 = vld [vmem:[#allocation5 + $0x918] sm:$0xf]  ;;  %2982 = vmatpush.bf16.msra.mxu0 %v6340_v35  ;;  %v5224_v25 = vor.u32 %v7708_v12, %v5221_v13  ;;  %v7700_v35 = vld [vmem:[#allocation5 + $0x5c] sm:$0xf] }
 0x1aa   :  { %v7984_v42 = vld [vmem:[#allocation5 + $0x934] sm:$0xf0]  ;;  %3008 = vmatpush.bf16.msra.mxu2 %v5320_v38  ;;  %v7764_v38 = vld [vmem:[#allocation5 + $0x25c] sm:$0xf]  ;;  %vm3087_vm3 = vcmp.gt.f32.partialorder %v8645_v18, 0.0 }
 0x1ab   :  { %v6563_v43 = vld [vmem:[#allocation5 + $0xb18] sm:$0xf]  ;;  %v6308_v50 = vor.u32 %v7984_v42, %v6307_v41  ;;  %2995 = vmatpush.bf16.msra.mxu1 %v6596_v37  ;;  %v5189_v37 = vld [vmem:[#allocation5 + $0x78] sm:$0xf0] }
 0x1ac   :  { %v8048_v45 = vld [vmem:[#allocation5 + $0xb34] sm:$0xf0]  ;;  %3021 = vmatpush.bf16.msra.mxu3 %v5576_v44  ;;  %v5445_v41 = vld [vmem:[#allocation5 + $0x278] sm:$0xf0]  ;;  %v5192_v46 = vor.u32 %v7700_v35, %v5189_v37 }
 0x1ad   :  { %v6564_v52 = vor.u32 %v8048_v45, %v6563_v43  ;;  %v6275_v54 = vld [vmem:[#allocation5 + $0x8d8] sm:$0xf]  ;;  %2983 = vmatpush.bf16.msra.mxu0 %v6308_v50  ;;  %v2757_v50 = vpop.f32.mrf.mxu2  ;;  %v5448_v51 = vor.u32 %v7764_v38, %v5445_v41  ;;  %v6117_v12 = vld [vmem:[#allocation5 + $0x7b8] sm:$0xf0]  ;;  %v507_v38 = vperm.slane %v8635_v0, 4 }
 0x1ae   :  { %v7976_v55 = vld [vmem:[#allocation5 + $0x8f4] sm:$0xf0]  ;;  %3009 = vmatpush.bf16.msra.mxu2 %v5288_v53  ;;  %v7756_v53 = vld [vmem:[#allocation5 + $0x21c] sm:$0xf] }
 0x1af   :  { %v6531_v4 = vld [vmem:[#allocation5 + $0xad8] sm:$0xf]  ;;  %v6276_v2 = vor.u32 %v7976_v55, %v6275_v54  ;;  %2996 = vmatpush.bf16.msra.mxu1 %v6564_v52  ;;  %v5157_v52 = vld [vmem:[#allocation5 + $0x38] sm:$0xf0]  ;;  %v2770_v55 = vpop.f32.mrf.mxu3 }
 0x1b0   :  { %v8040_v59 = vld [vmem:[#allocation5 + $0xaf4] sm:$0xf0]  ;;  %3022 = vmatpush.bf16.msra.mxu3 %v5544_v58  ;;  %v5413_v54 = vld [vmem:[#allocation5 + $0x238] sm:$0xf0]  ;;  %v5160_v32 = vor.u32 %v7692_v49, %v5157_v52 }
 0x1b1   :  { %v6532_v3 = vor.u32 %v8040_v59, %v6531_v4  ;;  %v6243_v6 = vld [vmem:[#allocation5 + $0x898] sm:$0xf]  ;;  %2984 = vmatpush.bf16.msra.mxu0 %v6276_v2  ;;  %v7876_v4 = vld [vmem:[#allocation5 + $0x5dc] sm:$0xf] }
 0x1b2   :  { %v7968_v8 = vld [vmem:[#allocation5 + $0x8b4] sm:$0xf0]  ;;  %3010 = vmatpush.bf16.msra.mxu2 %v5256_v5  ;;  %v6149_v59 = vld [vmem:[#allocation5 + $0x7f8] sm:$0xf0]  ;;  %v5896_v5 = vor.u32 %v7876_v4, %v5893_v56 }
 0x1b3   :  { %v6499_v9 = vld [vmem:[#allocation5 + $0xa98] sm:$0xf]  ;;  %v6244_v17 = vor.u32 %v7968_v8, %v6243_v6  ;;  %2997 = vmatpush.bf16.msra.mxu1 %v6532_v3  ;;  %v6661_v2 = vld [vmem:[#allocation5 + $0xbf8] sm:$0xf0]  ;;  %v5416_v3 = vor.u32 %v7756_v53, %v5413_v54  ;;  %v6152_v6 = vor.u32 %v7940_v57, %v6149_v59  ;;  %v6408_v8 = vor.u32 %v8004_v60, %v6405_v62  ;;  %v2794_v53 = vpop.f32.mrf.mxu1 }
 0x1b4   :  { %v8032_v11 = vld [vmem:[#allocation5 + $0xab4] sm:$0xf0]  ;;  %3023 = vmatpush.bf16.msra.mxu3 %v5512_v30  ;;  %v7932_v30 = vld [vmem:[#allocation5 + $0x79c] sm:$0xf] }
 0x1b5   :  { %v6500_v24 = vor.u32 %v8032_v11, %v6499_v9  ;;  %v6211_v26 = vld [vmem:[#allocation5 + $0x858] sm:$0xf]  ;;  %2985 = vmatpush.bf16.msra.mxu0 %v6244_v17  ;;  %v7868_v9 = vld [vmem:[#allocation5 + $0x59c] sm:$0xf]  ;;  %v6664_v11 = vor.u32 %v8068_v1, %v6661_v2  ;;  %v6120_v17 = vor.u32 %v7932_v30, %v6117_v12 }
 0x1b6   :  { %v7960_v28 = vld [vmem:[#allocation5 + $0x874] sm:$0xf0]  ;;  %3011 = vmatpush.bf16.msra.mxu2 %v5224_v25  ;;  %v7996_v13 = vld [vmem:[#allocation5 + $0x99c] sm:$0xf]  ;;  %v5864_v16 = vor.u32 %v7868_v9, %v5861_v10 }
 0x1b7   :  { %v6467_v29 = vld [vmem:[#allocation5 + $0xa58] sm:$0xf]  ;;  %v6212_v42 = vor.u32 %v7960_v28, %v6211_v26  ;;  %2998 = vmatpush.bf16.msra.mxu1 %v6500_v24  ;;  %v6373_v14 = vld [vmem:[#allocation5 + $0x9b8] sm:$0xf0] }
 0x1b8   :  { %v8024_v34 = vld [vmem:[#allocation5 + $0xa74] sm:$0xf0]  ;;  %3024 = vmatpush.bf16.msra.mxu3 %v5480_v33  ;;  %v8060_v40 = vld [vmem:[#allocation5 + $0xb9c] sm:$0xf]  ;;  %v6376_v22 = vor.u32 %v7996_v13, %v6373_v14 }
 0x1b9   :  { %v6179_v43 = vld [vmem:[#allocation5 + $0x818] sm:$0xf]  ;;  %v6468_v45 = vor.u32 %v8024_v34, %v6467_v29  ;;  %2986 = vmatpush.bf16.msra.mxu0 %v6212_v42  ;;  %v6629_v15 = vld [vmem:[#allocation5 + $0xbb8] sm:$0xf0]  ;;  %v2807_v12 = vpop.f32.mrf.mxu2 }
 0x1ba   :  { %v7952_v44 = vld [vmem:[#allocation5 + $0x834] sm:$0xf0]  ;;  %3012 = vmatpush.bf16.msra.mxu2 %v5192_v46  ;;  %v7860_v24 = vld [vmem:[#allocation5 + $0x55c] sm:$0xf]  ;;  %v6632_v28 = vor.u32 %v8060_v40, %v6629_v15 }
 0x1bb   :  { %v6435_v47 = vld [vmem:[#allocation5 + $0xa18] sm:$0xf]  ;;  %v6180_v58 = vor.u32 %v7952_v44, %v6179_v43  ;;  %2999 = vmatpush.bf16.msra.mxu1 %v6468_v45  ;;  %v5829_v25 = vld [vmem:[#allocation5 + $0x578] sm:$0xf0] }
 0x1bc   :  { %v8016_v48 = vld [vmem:[#allocation5 + $0xa34] sm:$0xf0]  ;;  %3025 = vmatpush.bf16.msra.mxu3 %v5448_v51  ;;  %v7924_v26 = vld [vmem:[#allocation5 + $0x75c] sm:$0xf]  ;;  %v5832_v37 = vor.u32 %v7860_v24, %v5829_v25  ;;  %v2781_v51 = vpop.f32.mrf.mxu0 }
 0x1bd   :  { %v6436_v63 = vor.u32 %v8016_v48, %v6435_v47  ;;  %2987 = vmatpush.bf16.msra.mxu0 %v6180_v58  ;;  %v6085_v29 = vld [vmem:[#allocation5 + $0x778] sm:$0xf0] }
 0x1be   :  { %3013 = vmatpush.bf16.msra.mxu2 %v5160_v32  ;;  %v7988_v31 = vld [vmem:[#allocation5 + $0x95c] sm:$0xf]  ;;  %v6088_v41 = vor.u32 %v7924_v26, %v6085_v29 }
 0x1bf   :  { %3000 = vmatpush.bf16.msra.mxu1 %v6436_v63  ;;  %v6341_v33 = vld [vmem:[#allocation5 + $0x978] sm:$0xf0] }
 0x1c0   :  { %3026 = vmatpush.bf16.msra.mxu3 %v5416_v3  ;;  %2988 = vmatmul.bf16.vlgmr.msra.gmra.mxu0 %v8582_v36  ;;  %v8052_v34 = vld [vmem:[#allocation5 + $0xb5c] sm:$0xf]  ;;  %v6344_v42 = vor.u32 %v7988_v31, %v6341_v33 }
 0x1c1   :  { %3032 = vmatpush.bf16.msrb.mxu0 %v5896_v5  ;;  %3014 = vmatmul.bf16.vlgmr.msra.gmra.mxu2 %v8570_v19  ;;  %v6597_v35 = vld [vmem:[#allocation5 + $0xb78] sm:$0xf0] }
 0x1c2   :  { %3058 = vmatpush.bf16.msrb.mxu2 %v6408_v8  ;;  %3001 = vmatmul.bf16.vlgmr.msra.gmra.mxu1 %v8584_v39  ;;  %v7852_v43 = vld [vmem:[#allocation5 + $0x51c] sm:$0xf]  ;;  %v6600_v46 = vor.u32 %v8052_v34, %v6597_v35 }
 0x1c3   :  { %3045 = vmatpush.bf16.msrb.mxu1 %v6152_v6  ;;  %3027 = vmatmul.bf16.vlgmr.msra.gmra.mxu3 %v8574_v21  ;;  %v5797_v44 = vld [vmem:[#allocation5 + $0x538] sm:$0xf0]  ;;  %v2782_v21 = vadd.f32 %v2781_v51, %v507_v38 }
 0x1c4   :  { %3071 = vmatpush.bf16.msrb.mxu3 %v6664_v11  ;;  %v7916_v45 = vld [vmem:[#allocation5 + $0x71c] sm:$0xf]  ;;  %v5800_v52 = vor.u32 %v7852_v43, %v5797_v44  ;;  %v2783_v15 = vpop.f32.mrf.mxu0 }
 0x1c5   :  { %3033 = vmatpush.bf16.msrb.mxu0 %v5864_v16  ;;  %v6053_v47 = vld [vmem:[#allocation5 + $0x738] sm:$0xf0]  ;;  %v2795_v62 = vadd.f32 %v2794_v53, %v2782_v21  ;;  %v2820_v16 = vpop.f32.mrf.mxu3  ;;  %v2809_v21 = vpop.f32.mrf.mxu2  ;;  %v6779_v53 = vld [vmem:[#allocation8 + $0xe0] sm:$0xf] }
 0x1c6   :  { %3059 = vmatpush.bf16.msrb.mxu2 %v6376_v22  ;;  %v7980_v48 = vld [vmem:[#allocation5 + $0x91c] sm:$0xf]  ;;  %v6056_v0 = vor.u32 %v7916_v45, %v6053_v47  ;;  %v2796_v22 = vpop.f32.mrf.mxu1  ;;  %v8119_v21 = vld [vmem:[#allocation8 + $0x16c] sm:$0xf0] }
 0x1c7   :  { %3046 = vmatpush.bf16.msrb.mxu1 %v6120_v17  ;;  %v6309_v19 = vld [vmem:[#allocation5 + $0x938] sm:$0xf0]  ;;  %v2808_v40 = vadd.f32 %v2807_v12, %v2795_v62  ;;  %v7163_v62 = vld [vmem:[#allocation8 + $0x3e0] sm:$0xf] }
 0x1c8   :  { %3072 = vmatpush.bf16.msrb.mxu3 %v6632_v28  ;;  %v8044_v49 = vld [vmem:[#allocation5 + $0xb1c] sm:$0xf]  ;;  %v6312_v54 = vor.u32 %v7980_v48, %v6309_v19  ;;  %v7147_v12 = vld [vmem:[#allocation8 + $0x3c0] sm:$0xf] }
 0x1c9   :  { %v6565_v50 = vld [vmem:[#allocation5 + $0xb38] sm:$0xf0]  ;;  %3034 = vmatpush.bf16.msrb.mxu0 %v5832_v37  ;;  %v8652_v31 = vadd.f32 %v2820_v16, %v2808_v40  ;;  %v6747_v16 = vld [vmem:[#allocation8 + $0xa0] sm:$0xf] }
 0x1ca   :  { %3060 = vmatpush.bf16.msrb.mxu2 %v6344_v42  ;;  %v7844_v55 = vld [vmem:[#allocation5 + $0x4dc] sm:$0xf]  ;;  %v6568_v57 = vor.u32 %v8044_v49, %v6565_v50  ;;  %v6875_v22 = vld [vmem:[#allocation8 + $0x1a0] sm:$0xf] }
 0x1cb   :  { %3047 = vmatpush.bf16.msrb.mxu1 %v6088_v41  ;;  %v5765_v4 = vld [vmem:[#allocation5 + $0x4f8] sm:$0xf0] }
 0x1cc   :  { %v7908_v56 = vld [vmem:[#allocation5 + $0x6dc] sm:$0xf]  ;;  %3073 = vmatpush.bf16.msrb.mxu3 %v6600_v46  ;;  %v5768_v1 = vor.u32 %v7844_v55, %v5765_v4 }
 0x1cd   :  { %v6021_v58 = vld [vmem:[#allocation5 + $0x6f8] sm:$0xf0]  ;;  %3035 = vmatpush.bf16.msrb.mxu0 %v5800_v52  ;;  %v2822_v55 = vpop.f32.mrf.mxu3 }
 0x1ce   :  { %v7972_v59 = vld [vmem:[#allocation5 + $0x8dc] sm:$0xf]  ;;  %3061 = vmatpush.bf16.msrb.mxu2 %v6312_v54  ;;  %v6024_v2 = vor.u32 %v7908_v56, %v6021_v58  ;;  %v6907_v54 = vld [vmem:[#allocation8 + $0x1e0] sm:$0xf]  ;;  %v8135_v56 = vld [vmem:[#allocation8 + $0x1ec] sm:$0xf0] }
 0x1cf   :  { %v6277_v60 = vld [vmem:[#allocation5 + $0x8f8] sm:$0xf0]  ;;  %3048 = vmatpush.bf16.msrb.mxu1 %v6056_v0  ;;  %v8103_v0 = vld [vmem:[#allocation8 + $0xec] sm:$0xf0] }
 0x1d0   :  { %v8036_v63 = vld [vmem:[#allocation5 + $0xadc] sm:$0xf]  ;;  %v6280_v3 = vor.u32 %v7972_v59, %v6277_v60  ;;  %3074 = vmatpush.bf16.msrb.mxu3 %v6568_v57  ;;  %v7035_v57 = vld [vmem:[#allocation8 + $0x2e0] sm:$0xf]  ;;  %v8167_v58 = vld [vmem:[#allocation8 + $0x2ec] sm:$0xf0] }
 0x1d1   :  { %v6533_v32 = vld [vmem:[#allocation5 + $0xaf8] sm:$0xf0]  ;;  %3036 = vmatpush.bf16.msrb.mxu0 %v5768_v1  ;;  %v6780_v1 = vor.u32 %v8103_v0, %v6779_v53  ;;  %v6971_v53 = vld [vmem:[#allocation8 + $0x260] sm:$0xf]  ;;  %v8151_v0 = vld [vmem:[#allocation8 + $0x26c] sm:$0xf0] }
 0x1d2   :  { %v7836_v5 = vld [vmem:[#allocation5 + $0x49c] sm:$0xf]  ;;  %v6536_v9 = vor.u32 %v8036_v63, %v6533_v32  ;;  %3062 = vmatpush.bf16.msrb.mxu2 %v6280_v3  ;;  %v8199_v63 = vld [vmem:[#allocation8 + $0x3ec] sm:$0xf0]  ;;  %v7036_v3 = vor.u32 %v8167_v58, %v7035_v57  ;;  %v6972_v57 = vor.u32 %v8151_v0, %v6971_v53  ;;  %v6699_v58 = vld [vmem:[#allocation8 + $0x40] sm:$0xf] }
 0x1d3   :  { %v5733_v6 = vld [vmem:[#allocation5 + $0x4b8] sm:$0xf0]  ;;  %3049 = vmatpush.bf16.msrb.mxu1 %v6024_v2  ;;  %v6908_v2 = vor.u32 %v8135_v56, %v6907_v54  ;;  %v7099_v54 = vld [vmem:[#allocation8 + $0x360] sm:$0xf]  ;;  %v8183_v55 = vld [vmem:[#allocation8 + $0x36c] sm:$0xf0] }
 0x1d4   :  { %v7900_v8 = vld [vmem:[#allocation5 + $0x69c] sm:$0xf]  ;;  %v5736_v17 = vor.u32 %v7836_v5, %v5733_v6  ;;  %3075 = vmatpush.bf16.msrb.mxu3 %v6536_v9  ;;  %v6763_v5 = vld [vmem:[#allocation8 + $0xc0] sm:$0xf]  ;;  %v8099_v6 = vld [vmem:[#allocation8 + $0xcc] sm:$0xf0]  ;;  %v7164_v9 = vor.u32 %v8199_v63, %v7163_v62  ;;  %v7100_v62 = vor.u32 %v8183_v55, %v7099_v54 }
 0x1d5   :  { %v5989_v10 = vld [vmem:[#allocation5 + $0x6b8] sm:$0xf0]  ;;  %v8115_v63 = vld [vmem:[#allocation8 + $0x14c] sm:$0xf0]  ;;  %v7547_v55 = vld [vmem:[#allocation8 + $0x6e0] sm:$0xf] }
 0x1d6   :  { %v7964_v30 = vld [vmem:[#allocation5 + $0x89c] sm:$0xf]  ;;  %v5992_v24 = vor.u32 %v7900_v8, %v5989_v10  ;;  %3037 = vmatpush.bf16.msrb.mxu0 %v5736_v17  ;;  %v6891_v8 = vld [vmem:[#allocation8 + $0x1c0] sm:$0xf]  ;;  %v8131_v10 = vld [vmem:[#allocation8 + $0x1cc] sm:$0xf0] }
 0x1d7   :  { %v6245_v11 = vld [vmem:[#allocation5 + $0x8b8] sm:$0xf0]  ;;  %v6892_v40 = vor.u32 %v8131_v10, %v6891_v8  ;;  %v8095_v17 = vld [vmem:[#allocation8 + $0xac] sm:$0xf0] }
 0x1d8   :  { %v8028_v13 = vld [vmem:[#allocation5 + $0xa9c] sm:$0xf]  ;;  %v6248_v25 = vor.u32 %v7964_v30, %v6245_v11  ;;  %3050 = vmatpush.bf16.msrb.mxu1 %v5992_v24  ;;  %v7019_v30 = vld [vmem:[#allocation8 + $0x2c0] sm:$0xf]  ;;  %v8163_v11 = vld [vmem:[#allocation8 + $0x2cc] sm:$0xf0] }
 0x1d9   :  { %v6501_v14 = vld [vmem:[#allocation5 + $0xab8] sm:$0xf0]  ;;  %v7020_v15 = vor.u32 %v8163_v11, %v7019_v30 }
 0x1da   :  { %v7828_v26 = vld [vmem:[#allocation5 + $0x45c] sm:$0xf]  ;;  %v6504_v33 = vor.u32 %v8028_v13, %v6501_v14  ;;  %3063 = vmatpush.bf16.msrb.mxu2 %v6248_v25  ;;  %v8195_v13 = vld [vmem:[#allocation8 + $0x3cc] sm:$0xf0]  ;;  %v6764_v14 = vor.u32 %v8099_v6, %v6763_v5 }
 0x1db   :  { %v5701_v28 = vld [vmem:[#allocation5 + $0x478] sm:$0xf0]  ;;  %v7148_v24 = vor.u32 %v8195_v13, %v7147_v12  ;;  %v8127_v25 = vld [vmem:[#allocation8 + $0x1ac] sm:$0xf0]  ;;  %v8664_v6 = vpop.f32.mrf.mxu3  ;;  %v6683_v13 = vld [vmem:[#allocation8 + $0x20] sm:$0xf] }
 0x1dc   :  { %v7892_v29 = vld [vmem:[#allocation5 + $0x65c] sm:$0xf]  ;;  %v5704_v42 = vor.u32 %v7828_v26, %v5701_v28  ;;  %3076 = vmatpush.bf16.msrb.mxu3 %v6504_v33  ;;  %v7003_v26 = vld [vmem:[#allocation8 + $0x2a0] sm:$0xf]  ;;  %v8159_v28 = vld [vmem:[#allocation8 + $0x2ac] sm:$0xf0] }
 0x1dd   :  { %v5957_v34 = vld [vmem:[#allocation5 + $0x678] sm:$0xf0]  ;;  %v8191_v33 = vld [vmem:[#allocation8 + $0x3ac] sm:$0xf0] }
 0x1de   :  { %v7956_v35 = vld [vmem:[#allocation5 + $0x85c] sm:$0xf]  ;;  %v5960_v45 = vor.u32 %v7892_v29, %v5957_v34  ;;  %3038 = vmatpush.bf16.msrb.mxu0 %v5704_v42  ;;  %v7131_v29 = vld [vmem:[#allocation8 + $0x3a0] sm:$0xf]  ;;  %v6748_v34 = vor.u32 %v8095_v17, %v6747_v16  ;;  %v8179_v5 = vld [vmem:[#allocation8 + $0x34c] sm:$0xf0] }
 0x1df   :  { %v6213_v37 = vld [vmem:[#allocation5 + $0x878] sm:$0xf0]  ;;  %v7132_v42 = vor.u32 %v8191_v33, %v7131_v29  ;;  %v8111_v16 = vld [vmem:[#allocation8 + $0x12c] sm:$0xf0]  ;;  %v6939_v17 = vld [vmem:[#allocation8 + $0x220] sm:$0xf] }
 0x1e0   :  { %v8020_v38 = vld [vmem:[#allocation5 + $0xa5c] sm:$0xf]  ;;  %v6216_v46 = vor.u32 %v7956_v35, %v6213_v37  ;;  %3051 = vmatpush.bf16.msrb.mxu1 %v5960_v45  ;;  %v6876_v35 = vor.u32 %v8127_v25, %v6875_v22  ;;  %v7004_v37 = vor.u32 %v8159_v28, %v7003_v26  ;;  %v7115_v45 = vld [vmem:[#allocation8 + $0x380] sm:$0xf]  ;;  %v8143_v22 = vld [vmem:[#allocation8 + $0x22c] sm:$0xf0] }
 0x1e1   :  { %v6469_v41 = vld [vmem:[#allocation5 + $0xa78] sm:$0xf0]  ;;  %v7067_v25 = vld [vmem:[#allocation8 + $0x320] sm:$0xf]  ;;  %v8175_v26 = vld [vmem:[#allocation8 + $0x32c] sm:$0xf0] }
 0x1e2   :  { %v7820_v43 = vld [vmem:[#allocation5 + $0x41c] sm:$0xf]  ;;  %v6472_v49 = vor.u32 %v8020_v38, %v6469_v41  ;;  %3064 = vmatpush.bf16.msrb.mxu2 %v6216_v46  ;;  %v6731_v38 = vld [vmem:[#allocation8 + $0x80] sm:$0xf]  ;;  %v8658_v46 = vpop.f32.mrf.mxu0  ;;  %v3094_v28 = vmul.f32 0.2, %v8633_v61 }
 0x1e3   :  { %v5669_v44 = vld [vmem:[#allocation5 + $0x438] sm:$0xf0]  ;;  %v6859_v41 = vld [vmem:[#allocation8 + $0x180] sm:$0xf] }
 0x1e4   :  { %v7884_v47 = vld [vmem:[#allocation5 + $0x61c] sm:$0xf]  ;;  %v5672_v4 = vor.u32 %v7820_v43, %v5669_v44  ;;  %3077 = vmatpush.bf16.msrb.mxu3 %v6472_v49  ;;  %v8123_v43 = vld [vmem:[#allocation8 + $0x18c] sm:$0xf0]  ;;  %v6987_v44 = vld [vmem:[#allocation8 + $0x280] sm:$0xf] }
 0x1e5   :  { %v5925_v48 = vld [vmem:[#allocation5 + $0x638] sm:$0xf0]  ;;  %v6715_v49 = vld [vmem:[#allocation8 + $0x60] sm:$0xf] }
 0x1e6   :  { %v7948_v19 = vld [vmem:[#allocation5 + $0x81c] sm:$0xf]  ;;  %v5928_v59 = vor.u32 %v7884_v47, %v5925_v48  ;;  %3039 = vmatpush.bf16.msrb.mxu0 %v5672_v4  ;;  %v8660_v47 = vpop.f32.mrf.mxu1  ;;  %v6860_v48 = vor.u32 %v8123_v43, %v6859_v41  ;;  %v6667_v33 = vld [vmem:[#allocation8] sm:$0xf]  ;;  %v7068_v41 = vor.u32 %v8175_v26, %v7067_v25  ;;  %v8139_v43 = vld [vmem:[#allocation8 + $0x20c] sm:$0xf0] }
 0x1e7   :  { %v6181_v50 = vld [vmem:[#allocation5 + $0x838] sm:$0xf0]  ;;  %v7243_v25 = vld [vmem:[#allocation8 + $0x480] sm:$0xf]  ;;  %v8219_v26 = vld [vmem:[#allocation8 + $0x48c] sm:$0xf0] }
 0x1e8   :  { %v8012_v51 = vld [vmem:[#allocation5 + $0xa1c] sm:$0xf]  ;;  %v6184_v60 = vor.u32 %v7948_v19, %v6181_v50  ;;  %3052 = vmatpush.bf16.msrb.mxu1 %v5928_v59  ;;  %v8087_v50 = vld [vmem:[#allocation8 + $0x6c] sm:$0xf0] }
 0x1e9   :  { %v6437_v52 = vld [vmem:[#allocation5 + $0xa38] sm:$0xf0]  ;;  %3040 = vmatmul.bf16.vlgmr.msrb.gmra.mxu0 %v8572_v20  ;;  %v8091_v20 = vld [vmem:[#allocation8 + $0x8c] sm:$0xf0]  ;;  %v6716_v4 = vor.u32 %v8087_v50, %v6715_v49  ;;  %v7419_v50 = vld [vmem:[#allocation8 + $0x5e0] sm:$0xf] }
 0x1ea   :  { %v6440_v32 = vor.u32 %v8012_v51, %v6437_v52  ;;  %3065 = vmatpush.bf16.msrb.mxu2 %v6184_v60  ;;  %4662 = vmatpush.bf16.msra.mxu0 %v6780_v1  ;;  %v6843_v51 = vld [vmem:[#allocation8 + $0x160] sm:$0xf]  ;;  %v8083_v59 = vld [vmem:[#allocation8 + $0x4c] sm:$0xf0]  ;;  %v2835_v8 = vpop.f32.mrf.mxu0 }
 0x1eb   :  { %3053 = vmatmul.bf16.vlgmr.msrb.gmra.mxu1 %v8576_v23  ;;  %v8155_v23 = vld [vmem:[#allocation8 + $0x28c] sm:$0xf0]  ;;  %v6844_v56 = vor.u32 %v8119_v21, %v6843_v51  ;;  %v6827_v60 = vld [vmem:[#allocation8 + $0x140] sm:$0xf]  ;;  %v6700_v10 = vor.u32 %v8083_v59, %v6699_v58 }
 0x1ec   :  { %3078 = vmatpush.bf16.msrb.mxu3 %v6440_v32  ;;  %4675 = vmatpush.bf16.msra.mxu1 %v6908_v2  ;;  %v6988_v19 = vor.u32 %v8155_v23, %v6987_v44  ;;  %v6955_v32 = vld [vmem:[#allocation8 + $0x240] sm:$0xf]  ;;  %v8147_v1 = vld [vmem:[#allocation8 + $0x24c] sm:$0xf0]  ;;  %v8662_v2 = vpop.f32.mrf.mxu2  ;;  %v6828_v11 = vor.u32 %v8115_v63, %v6827_v60 }
 0x1ed   :  { %3066 = vmatmul.bf16.vlgmr.msrb.gmra.mxu2 %v8582_v36  ;;  %v8187_v36 = vld [vmem:[#allocation8 + $0x38c] sm:$0xf0]  ;;  %v6956_v12 = vor.u32 %v8147_v1, %v6955_v32  ;;  %v7051_v44 = vld [vmem:[#allocation8 + $0x300] sm:$0xf] }
 0x1ee   :  { %4688 = vmatpush.bf16.msra.mxu2 %v7036_v3  ;;  %4663 = vmatpush.bf16.msra.mxu0 %v6764_v14  ;;  %v7116_v52 = vor.u32 %v8187_v36, %v7115_v45  ;;  %v7083_v3 = vld [vmem:[#allocation8 + $0x340] sm:$0xf]  ;;  %v2848_v30 = vpop.f32.mrf.mxu1  ;;  %v8079_v14 = vld [vmem:[#allocation8 + $0x2c] sm:$0xf0] }
 0x1ef   :  { %3079 = vmatmul.bf16.vlgmr.msrb.gmra.mxu3 %v8584_v39  ;;  %v6732_v39 = vor.u32 %v8091_v20, %v6731_v38  ;;  %v6684_v29 = vor.u32 %v8079_v14, %v6683_v13  ;;  %v6795_v38 = vld [vmem:[#allocation8 + $0x100] sm:$0xf]  ;;  %v8107_v20 = vld [vmem:[#allocation8 + $0x10c] sm:$0xf0] }
 0x1f0   :  { %4701 = vmatpush.bf16.msra.mxu3 %v7164_v9  ;;  %4676 = vmatpush.bf16.msra.mxu1 %v6892_v40  ;;  %v3092_v9 = vmul.f32 0.2, %v8609_v7  ;;  %v6811_v40 = vld [vmem:[#allocation8 + $0x120] sm:$0xf]  ;;  %v8171_v45 = vld [vmem:[#allocation8 + $0x30c] sm:$0xf0] }
 0x1f1   :  { %v7291_v36 = vld [vmem:[#allocation8 + $0x4e0] sm:$0xf]  ;;  %v8263_v51 = vld [vmem:[#allocation8 + $0x5ec] sm:$0xf0]  ;;  %v7052_v0 = vor.u32 %v8171_v45, %v7051_v44  ;;  %v2834_v45 = vadd.f32 %v8658_v46, %v8652_v31 }
 0x1f2   :  { %4689 = vmatpush.bf16.msra.mxu2 %v7020_v15  ;;  %4664 = vmatpush.bf16.msra.mxu0 %v6748_v34  ;;  %v7084_v15 = vor.u32 %v8179_v5, %v7083_v3  ;;  %v6812_v34 = vor.u32 %v8111_v16, %v6811_v40  ;;  %v3100_v53 = vsel %vm3084_vm0, %v8609_v7, %v3092_v9  ;;  %v7275_v59 = vld [vmem:[#allocation8 + $0x4c0] sm:$0xf]  ;;  %v8227_v60 = vld [vmem:[#allocation8 + $0x4cc] sm:$0xf0] }
 0x1f3   :  { %v7420_v58 = vor.u32 %v8263_v51, %v7419_v50  ;;  %v7403_v32 = vld [vmem:[#allocation8 + $0x5c0] sm:$0xf]  ;;  %v8259_v1 = vld [vmem:[#allocation8 + $0x5cc] sm:$0xf0]  ;;  %v8689_v3 = vpack.c.bf16 %v3100_v53, %v3100_v53  ;;  %v7276_v8 = vor.u32 %v8227_v60, %v7275_v59 }
 0x1f4   :  { %4702 = vmatpush.bf16.msra.mxu3 %v7148_v24  ;;  %4677 = vmatpush.bf16.msra.mxu1 %v6876_v35  ;;  %v3093_v24 = vmul.f32 0.2, %v8619_v27  ;;  %v6940_v35 = vor.u32 %v8143_v22, %v6939_v17  ;;  %v2861_v23 = vpop.f32.mrf.mxu2  ;;  %v7531_v9 = vld [vmem:[#allocation8 + $0x6c0] sm:$0xf]  ;;  %v8223_v13 = vld [vmem:[#allocation8 + $0x4ac] sm:$0xf0] }
 0x1f5   :  { %v7387_v14 = vld [vmem:[#allocation8 + $0x5a0] sm:$0xf]  ;;  %v8255_v40 = vld [vmem:[#allocation8 + $0x5ac] sm:$0xf0] }
 0x1f6   :  { %4690 = vmatpush.bf16.msra.mxu2 %v7004_v37  ;;  %4665 = vmatpush.bf16.msra.mxu0 %v6732_v39  ;;  %v8075_v37 = vld [vmem:[#allocation8 + $0xc] sm:$0xf0]  ;;  %v7515_v17 = vld [vmem:[#allocation8 + $0x6a0] sm:$0xf] }
 0x1f7   :  { %v8231_v39 = vld [vmem:[#allocation8 + $0x4ec] sm:$0xf0]  ;;  %v6668_v49 = vor.u32 %v8075_v37, %v6667_v33  ;;  %v7499_v37 = vld [vmem:[#allocation8 + $0x680] sm:$0xf] }
 0x1f8   :  { %4703 = vmatpush.bf16.msra.mxu3 %v7132_v42  ;;  %4678 = vmatpush.bf16.msra.mxu1 %v6860_v48  ;;  %v6923_v42 = vld [vmem:[#allocation8 + $0x200] sm:$0xf]  ;;  %v2874_v48 = vpop.f32.mrf.mxu3  ;;  %v7292_v54 = vor.u32 %v8231_v39, %v7291_v36  ;;  %v8287_v22 = vld [vmem:[#allocation8 + $0x6ac] sm:$0xf0] }
 0x1f9   :  { %v6924_v21 = vor.u32 %v8139_v43, %v6923_v42  ;;  %v7516_v33 = vor.u32 %v8287_v22, %v7515_v17  ;;  %v8215_v42 = vld [vmem:[#allocation8 + $0x46c] sm:$0xf0]  ;;  %v7355_v23 = vld [vmem:[#allocation8 + $0x560] sm:$0xf]  ;;  %v6781_v17 = vld [vmem:[#allocation8 + $0xf0] sm:$0xf0] }
 0x1fa   :  { %4691 = vmatpush.bf16.msra.mxu2 %v6988_v19  ;;  %4666 = vmatpush.bf16.msra.mxu0 %v6716_v4  ;;  %v3095_v19 = vmul.f32 0.2, %v8645_v18  ;;  %v8295_v4 = vld [vmem:[#allocation8 + $0x6ec] sm:$0xf0]  ;;  %v7211_v51 = vld [vmem:[#allocation8 + $0x440] sm:$0xf] }
 0x1fb   :  { %v7339_v53 = vld [vmem:[#allocation8 + $0x540] sm:$0xf] }
 0x1fc   :  { %4704 = vmatpush.bf16.msra.mxu3 %v7116_v52  ;;  %4679 = vmatpush.bf16.msra.mxu1 %v6844_v56  ;;  %v6796_v52 = vor.u32 %v8107_v20, %v6795_v38  ;;  %v3101_v56 = vsel %vm3085_vm1, %v8619_v27, %v3093_v24  ;;  %v3103_v63 = vsel %vm3087_vm3, %v8645_v18, %v3095_v19  ;;  %v8283_v38 = vld [vmem:[#allocation8 + $0x68c] sm:$0xf0]  ;;  %v2898_v44 = vpop.f32.mrf.mxu1  ;;  %v7483_v19 = vld [vmem:[#allocation8 + $0x660] sm:$0xf] }
 0x1fd   :  { %v7548_v27 = vor.u32 %v8295_v4, %v7547_v55  ;;  %v8695_v30 = vpack.c.bf16 %v3103_v63, %v3103_v63  ;;  %v7404_v18 = vor.u32 %v8259_v1, %v7403_v32  ;;  %v7500_v39 = vor.u32 %v8283_v38, %v7499_v37  ;;  %v8207_v63 = vld [vmem:[#allocation8 + $0x42c] sm:$0xf0]  ;;  %v7323_v1 = vld [vmem:[#allocation8 + $0x520] sm:$0xf] }
 0x1fe   :  { %4692 = vmatpush.bf16.msra.mxu2 %v6972_v57  ;;  %4667 = vmatpush.bf16.msra.mxu0 %v6700_v10  ;;  %v3102_v57 = vsel %vm3086_vm2, %v8633_v61, %v3094_v28  ;;  %v8691_v61 = vpack.c.bf16 %v3101_v56, %v3101_v56  ;;  %v8291_v10 = vld [vmem:[#allocation8 + $0x6cc] sm:$0xf0]  ;;  %v7371_v28 = vld [vmem:[#allocation8 + $0x580] sm:$0xf]  ;;  %v2847_v4 = vadd.f32 %v8660_v47, %v2834_v45  ;;  %v6765_v45 = vld [vmem:[#allocation8 + $0xd0] sm:$0xf0] }
 0x1ff   :  { %v8693_v5 = vpack.c.bf16 %v3102_v57, %v3102_v57  ;;  %v7467_v57 = vld [vmem:[#allocation8 + $0x640] sm:$0xf]  ;;  %v8267_v37 = vld [vmem:[#allocation8 + $0x60c] sm:$0xf0] }
 0x200   :  { %4705 = vmatpush.bf16.msra.mxu3 %v7100_v62  ;;  %4680 = vmatpush.bf16.msra.mxu1 %v6828_v11  ;;  %v8683_v62 = vld [vmem:[#allocation7] sm:$0xff]  ;;  %vm3088_vm5 = vcmp.gt.f32.partialorder %v2847_v4, 0.0 }
 0x201   :  { %v508_v7 = vperm.slane %v8683_v62, 5 }
 0x202   :  { %4693 = vmatpush.bf16.msra.mxu2 %v6956_v12  ;;  %4668 = vmatpush.bf16.msra.mxu0 %v6684_v29  ;;  %v7259_v12 = vld [vmem:[#allocation8 + $0x4a0] sm:$0xf]  ;;  %v8251_v29 = vld [vmem:[#allocation8 + $0x58c] sm:$0xf0] }
 0x203   :  { %v2860_v11 = vadd.f32 %v8662_v2, %v508_v7  ;;  %v7260_v16 = vor.u32 %v8223_v13, %v7259_v12  ;;  %v7388_v2 = vor.u32 %v8255_v40, %v7387_v14  ;;  %v7372_v20 = vor.u32 %v8251_v29, %v7371_v28  ;;  %v7195_v7 = vld [vmem:[#allocation8 + $0x420] sm:$0xf]  ;;  %v8235_v12 = vld [vmem:[#allocation8 + $0x50c] sm:$0xf0]  ;;  %v6909_v28 = vld [vmem:[#allocation8 + $0x1f0] sm:$0xf0] }
 0x204   :  { %4706 = vmatpush.bf16.msra.mxu3 %v7084_v15  ;;  %4681 = vmatpush.bf16.msra.mxu1 %v6812_v34  ;;  %v7532_v15 = vor.u32 %v8291_v10, %v7531_v9  ;;  %v7244_v34 = vor.u32 %v8219_v26, %v7243_v25  ;;  %v2900_v32 = vpop.f32.mrf.mxu1  ;;  %v7179_v9 = vld [vmem:[#allocation8 + $0x400] sm:$0xf]  ;;  %v8203_v10 = vld [vmem:[#allocation8 + $0x40c] sm:$0xf0]  ;;  %v8133_v26 = vld [vmem:[#allocation8 + $0x1e4] sm:$0xf] }
 0x205   :  { %v2873_v24 = vadd.f32 %v8664_v6, %v2860_v11  ;;  %v8247_v6 = vld [vmem:[#allocation8 + $0x56c] sm:$0xf0]  ;;  %v7307_v11 = vld [vmem:[#allocation8 + $0x500] sm:$0xf]  ;;  %v8157_v32 = vld [vmem:[#allocation8 + $0x2a4] sm:$0xf] }
 0x206   :  { %4694 = vmatpush.bf16.msra.mxu2 %v6940_v35  ;;  %4669 = vmatpush.bf16.msra.mxu0 %v6668_v49  ;;  %v2885_v35 = vpop.f32.mrf.mxu0  ;;  %v8279_v49 = vld [vmem:[#allocation8 + $0x66c] sm:$0xf0]  ;;  %v7356_v50 = vor.u32 %v8247_v6, %v7355_v23  ;;  %v2924_v55 = vpop.f32.mrf.mxu3  ;;  %v7451_v13 = vld [vmem:[#allocation8 + $0x620] sm:$0xf]  ;;  %v6912_v6 = vor.u32 %v8133_v26, %v6909_v28  ;;  %v8117_v26 = vld [vmem:[#allocation8 + $0x164] sm:$0xf] }
 0x207   :  { %v2886_v43 = vadd.f32 %v2885_v35, %v2873_v24  ;;  %v7484_v31 = vor.u32 %v8279_v49, %v7483_v19  ;;  %v8271_v14 = vld [vmem:[#allocation8 + $0x62c] sm:$0xf0]  ;;  %v7435_v35 = vld [vmem:[#allocation8 + $0x600] sm:$0xf]  ;;  %v6893_v19 = vld [vmem:[#allocation8 + $0x1d0] sm:$0xf0] }
 0x208   :  { %4707 = vmatpush.bf16.msra.mxu3 %v7068_v41  ;;  %4682 = vmatpush.bf16.msra.mxu1 %v6796_v52  ;;  %v7227_v41 = vld [vmem:[#allocation8 + $0x460] sm:$0xf]  ;;  %v8211_v52 = vld [vmem:[#allocation8 + $0x44c] sm:$0xf0]  ;;  %v7452_v29 = vor.u32 %v8271_v14, %v7451_v13  ;;  %v7436_v49 = vor.u32 %v8267_v37, %v7435_v35  ;;  %v8085_v14 = vld [vmem:[#allocation8 + $0x64] sm:$0xf] }
 0x209   :  { %4670 = vmatmul.bf16.vlgmr.msra.gmra.mxu0 %v8689_v3  ;;  %v2899_v36 = vadd.f32 %v2898_v44, %v2886_v43  ;;  %v7228_v48 = vor.u32 %v8215_v42, %v7227_v41  ;;  %v7212_v46 = vor.u32 %v8211_v52, %v7211_v51  ;;  %v8327_v25 = vld [vmem:[#allocation8 + $0x7ec] sm:$0xf0]  ;;  %v8097_v42 = vld [vmem:[#allocation8 + $0xc4] sm:$0xf]  ;;  %v7037_v44 = vld [vmem:[#allocation8 + $0x2f0] sm:$0xf0] }
 0x20a   :  { %4695 = vmatpush.bf16.msra.mxu2 %v6924_v21  ;;  %4714 = vmatpush.bf16.msrb.mxu0 %v7292_v54  ;;  %v2911_v21 = vpop.f32.mrf.mxu2  ;;  %v8165_v43 = vld [vmem:[#allocation8 + $0x2e4] sm:$0xf]  ;;  %v6845_v28 = vld [vmem:[#allocation8 + $0x170] sm:$0xf0] }
 0x20b   :  { %4683 = vmatmul.bf16.vlgmr.msra.gmra.mxu1 %v8691_v61  ;;  %v2912_v54 = vadd.f32 %v2911_v21, %v2899_v36  ;;  %v7659_v36 = vld [vmem:[#allocation8 + $0x7c0] sm:$0xf]  ;;  %v7040_v52 = vor.u32 %v8165_v43, %v7037_v44  ;;  %v8081_v35 = vld [vmem:[#allocation8 + $0x44] sm:$0xf]  ;;  %v8307_v43 = vld [vmem:[#allocation8 + $0x74c] sm:$0xf0] }
 0x20c   :  { %4708 = vmatpush.bf16.msra.mxu3 %v7052_v0  ;;  %4727 = vmatpush.bf16.msrb.mxu1 %v7420_v58  ;;  %v8243_v0 = vld [vmem:[#allocation8 + $0x54c] sm:$0xf0]  ;;  %v8149_v37 = vld [vmem:[#allocation8 + $0x264] sm:$0xf] }
 0x20d   :  { %4696 = vmatmul.bf16.vlgmr.msra.gmra.mxu2 %v8693_v5  ;;  %v8275_v58 = vld [vmem:[#allocation8 + $0x64c] sm:$0xf0]  ;;  %v7340_v59 = vor.u32 %v8243_v0, %v7339_v53  ;;  %v2925_v60 = vadd.f32 %v2924_v55, %v2912_v54  ;;  %v6768_v53 = vor.u32 %v8097_v42, %v6765_v45  ;;  %v8093_v0 = vld [vmem:[#allocation8 + $0xa4] sm:$0xf]  ;;  %v7021_v55 = vld [vmem:[#allocation8 + $0x2d0] sm:$0xf0] }
 0x20e   :  { %4740 = vmatpush.bf16.msrb.mxu2 %v7548_v27  ;;  %4715 = vmatpush.bf16.msrb.mxu0 %v7276_v8  ;;  %v2887_v56 = vpop.f32.mrf.mxu0  ;;  %v8239_v27 = vld [vmem:[#allocation8 + $0x52c] sm:$0xf0]  ;;  %v3096_v8 = vmul.f32 0.2, %v2847_v4  ;;  %v7468_v47 = vor.u32 %v8275_v58, %v7467_v57  ;;  %v2926_v24 = vpop.f32.mrf.mxu3  ;;  %v8161_v54 = vld [vmem:[#allocation8 + $0x2c4] sm:$0xf] }
 0x20f   :  { %4709 = vmatmul.bf16.vlgmr.msra.gmra.mxu3 %v8695_v30  ;;  %v3097_v40 = vmul.f32 0.2, %v2925_v60  ;;  %vm3089_vm4 = vcmp.gt.f32.partialorder %v2925_v60, 0.0  ;;  %v8319_v56 = vld [vmem:[#allocation8 + $0x7ac] sm:$0xf0] }
 0x210   :  { %4728 = vmatpush.bf16.msrb.mxu1 %v7404_v18  ;;  %v7196_v18 = vor.u32 %v8207_v63, %v7195_v7  ;;  %v3104_v23 = vsel %vm3088_vm5, %v2847_v4, %v3096_v8  ;;  %v8125_v57 = vld [vmem:[#allocation8 + $0x1a4] sm:$0xf]  ;;  %v6877_v58 = vld [vmem:[#allocation8 + $0x1b0] sm:$0xf0]  ;;  %v7595_v42 = vld [vmem:[#allocation8 + $0x740] sm:$0xf] }
 0x211   :  { %v3105_v38 = vsel %vm3089_vm4, %v2925_v60, %v3097_v40  ;;  %v8709_v21 = vpack.c.bf16 %v3104_v23, %v3104_v23  ;;  %v7024_v60 = vor.u32 %v8161_v54, %v7021_v55  ;;  %v8089_v63 = vld [vmem:[#allocation8 + $0x84] sm:$0xf]  ;;  %v6733_v8 = vld [vmem:[#allocation8 + $0x90] sm:$0xf0]  ;;  %v7579_v55 = vld [vmem:[#allocation8 + $0x720] sm:$0xf] }
 0x212   :  { %4741 = vmatpush.bf16.msrb.mxu2 %v7532_v15  ;;  %4716 = vmatpush.bf16.msrb.mxu0 %v7260_v16  ;;  %v7324_v15 = vor.u32 %v8239_v27, %v7323_v1  ;;  %v8101_v16 = vld [vmem:[#allocation8 + $0xe4] sm:$0xf]  ;;  %v2913_v22 = vpop.f32.mrf.mxu2  ;;  %v8707_v51 = vpack.c.bf16 %v3105_v38, %v3105_v38  ;;  %v7005_v1 = vld [vmem:[#allocation8 + $0x2b0] sm:$0xf0]  ;;  %v6880_v27 = vor.u32 %v8125_v57, %v6877_v58  ;;  %v509_v57 = vperm.slane %v8683_v62, 6 }
 0x213   :  { %v6784_v41 = vor.u32 %v8101_v16, %v6781_v17  ;;  %v6736_v13 = vor.u32 %v8089_v63, %v6733_v8  ;;  %v6989_v16 = vld [vmem:[#allocation8 + $0x290] sm:$0xf0]  ;;  %v8113_v44 = vld [vmem:[#allocation8 + $0x144] sm:$0xf] }
 0x214   :  { %4729 = vmatpush.bf16.msrb.mxu1 %v7388_v2  ;;  %v7675_v2 = vld [vmem:[#allocation8 + $0x7e0] sm:$0xf]  ;;  %v6717_v22 = vld [vmem:[#allocation8 + $0x70] sm:$0xf0]  ;;  %v8073_v58 = vld [vmem:[#allocation8 + $0x4] sm:$0xf] }
 0x215   :  { %v6973_v38 = vld [vmem:[#allocation8 + $0x270] sm:$0xf0]  ;;  %v8105_v63 = vld [vmem:[#allocation8 + $0x104] sm:$0xf] }
 0x216   :  { %4742 = vmatpush.bf16.msrb.mxu2 %v7516_v33  ;;  %4717 = vmatpush.bf16.msrb.mxu0 %v7244_v34  ;;  %v7676_v33 = vor.u32 %v8327_v25, %v7675_v2  ;;  %v7180_v34 = vor.u32 %v8203_v10, %v7179_v9  ;;  %v7627_v9 = vld [vmem:[#allocation8 + $0x780] sm:$0xf]  ;;  %v8315_v10 = vld [vmem:[#allocation8 + $0x78c] sm:$0xf0]  ;;  %v6829_v23 = vld [vmem:[#allocation8 + $0x150] sm:$0xf0] }
 0x217   :  { %v7611_v2 = vld [vmem:[#allocation8 + $0x760] sm:$0xf]  ;;  %v8311_v25 = vld [vmem:[#allocation8 + $0x76c] sm:$0xf0] }
 0x218   :  { %4730 = vmatpush.bf16.msrb.mxu1 %v7372_v20  ;;  %v7308_v20 = vor.u32 %v8235_v12, %v7307_v11  ;;  %4753 = vmatpush.bf16.msrb.mxu3 %v7676_v33  ;;  %v7628_v11 = vor.u32 %v8315_v10, %v7627_v9  ;;  %v7008_v12 = vor.u32 %v8157_v32, %v7005_v1  ;;  %v6797_v32 = vld [vmem:[#allocation8 + $0x110] sm:$0xf0]  ;;  %v8141_v1 = vld [vmem:[#allocation8 + $0x224] sm:$0xf]  ;;  %v7563_v10 = vld [vmem:[#allocation8 + $0x700] sm:$0xf] }
 0x219   :  { %v8229_v9 = vld [vmem:[#allocation8 + $0x4e4] sm:$0xf] }
 0x21a   :  { %4743 = vmatpush.bf16.msrb.mxu2 %v7500_v39  ;;  %4718 = vmatpush.bf16.msrb.mxu0 %v7228_v48  ;;  %v8323_v39 = vld [vmem:[#allocation8 + $0x7cc] sm:$0xf0]  ;;  %v8129_v48 = vld [vmem:[#allocation8 + $0x1c4] sm:$0xf]  ;;  %v8713_v40 = vpop.f32.mrf.mxu0 }
 0x21b   :  { %v6896_v4 = vor.u32 %v8129_v48, %v6893_v19  ;;  %v8077_v48 = vld [vmem:[#allocation8 + $0x24] sm:$0xf] }
 0x21c   :  { %4731 = vmatpush.bf16.msrb.mxu1 %v7356_v50  ;;  %v7660_v50 = vor.u32 %v8323_v39, %v7659_v36  ;;  %v8715_v24 = vpop.f32.mrf.mxu1  ;;  %v6976_v36 = vor.u32 %v8149_v37, %v6973_v38  ;;  %v7277_v38 = vld [vmem:[#allocation8 + $0x4d0] sm:$0xf0] }
 0x21e   :  { %4744 = vmatpush.bf16.msrb.mxu2 %v7484_v31  ;;  %4719 = vmatpush.bf16.msrb.mxu0 %v7212_v46  ;;  %v6749_v31 = vld [vmem:[#allocation8 + $0xb0] sm:$0xf0]  ;;  %v7643_v46 = vld [vmem:[#allocation8 + $0x7a0] sm:$0xf] }
 0x21f   :  { %4754 = vmatpush.bf16.msrb.mxu3 %v7660_v50  ;;  %v6752_v7 = vor.u32 %v8093_v0, %v6749_v31  ;;  %v8145_v50 = vld [vmem:[#allocation8 + $0x244] sm:$0xf]  ;;  %v6685_v0 = vld [vmem:[#allocation8 + $0x30] sm:$0xf0] }
 0x220   :  { %4732 = vmatpush.bf16.msrb.mxu1 %v7340_v59  ;;  %v7644_v59 = vor.u32 %v8319_v56, %v7643_v46  ;;  %v8109_v31 = vld [vmem:[#allocation8 + $0x124] sm:$0xf]  ;;  %v6813_v46 = vld [vmem:[#allocation8 + $0x130] sm:$0xf0] }
 0x221   :  { %v6816_v8 = vor.u32 %v8109_v31, %v6813_v46  ;;  %v7245_v31 = vld [vmem:[#allocation8 + $0x490] sm:$0xf0]  ;;  %v8185_v46 = vld [vmem:[#allocation8 + $0x384] sm:$0xf] }
 0x222   :  { %4745 = vmatpush.bf16.msrb.mxu2 %v7468_v47  ;;  %4720 = vmatpush.bf16.msrb.mxu0 %v7196_v18  ;;  %v8121_v47 = vld [vmem:[#allocation8 + $0x184] sm:$0xf]  ;;  %v6861_v18 = vld [vmem:[#allocation8 + $0x190] sm:$0xf0]  ;;  %v2939_v19 = vpop.f32.mrf.mxu0 }
 0x223   :  { %4755 = vmatpush.bf16.msrb.mxu3 %v7644_v59  ;;  %v6864_v17 = vor.u32 %v8121_v47, %v6861_v18  ;;  %v6669_v59 = vld [vmem:[#allocation8 + $0x10] sm:$0xf0]  ;;  %v8299_v47 = vld [vmem:[#allocation8 + $0x70c] sm:$0xf0]  ;;  %v8189_v19 = vld [vmem:[#allocation8 + $0x3a4] sm:$0xf] }
 0x224   :  { %4733 = vmatpush.bf16.msrb.mxu1 %v7324_v15  ;;  %v8153_v15 = vld [vmem:[#allocation8 + $0x284] sm:$0xf]  ;;  %v8717_v45 = vpop.f32.mrf.mxu2  ;;  %v2952_v54 = vpop.f32.mrf.mxu1  ;;  %v7293_v18 = vld [vmem:[#allocation8 + $0x4f0] sm:$0xf0] }
 0x225   :  { %v6992_v33 = vor.u32 %v8153_v15, %v6989_v16  ;;  %v8261_v15 = vld [vmem:[#allocation8 + $0x5e4] sm:$0xf]  ;;  %v7421_v16 = vld [vmem:[#allocation8 + $0x5f0] sm:$0xf0] }
 0x226   :  { %4746 = vmatpush.bf16.msrb.mxu2 %v7452_v29  ;;  %4721 = vmatpush.bf16.msrb.mxu0 %v7180_v34  ;;  %v7612_v29 = vor.u32 %v8311_v25, %v7611_v2  ;;  %v6720_v34 = vor.u32 %v8085_v14, %v6717_v22  ;;  %v2938_v14 = vadd.f32 %v8713_v40, %v509_v57  ;;  %v8193_v40 = vld [vmem:[#allocation8 + $0x3c4] sm:$0xf] }
 0x227   :  { %4756 = vmatpush.bf16.msrb.mxu3 %v7628_v11  ;;  %v7564_v11 = vor.u32 %v8299_v47, %v7563_v10  ;;  %v6672_v25 = vor.u32 %v8073_v58, %v6669_v59  ;;  %v7424_v37 = vor.u32 %v8261_v15, %v7421_v16  ;;  %v8249_v58 = vld [vmem:[#allocation8 + $0x584] sm:$0xf]  ;;  %v7373_v59 = vld [vmem:[#allocation8 + $0x590] sm:$0xf0] }
 0x228   :  { %4734 = vmatpush.bf16.msrb.mxu1 %v7308_v20  ;;  %v6848_v20 = vor.u32 %v8117_v26, %v6845_v28  ;;  %v8137_v28 = vld [vmem:[#allocation8 + $0x204] sm:$0xf] }
 0x229   :  { %4722 = vmatmul.bf16.vlgmr.msrb.gmra.mxu0 %v8709_v21  ;;  %v8245_v47 = vld [vmem:[#allocation8 + $0x564] sm:$0xf] }
 0x22a   :  { %4766 = vmatpush.bf16.msra.mxu0 %v6784_v41  ;;  %4747 = vmatpush.bf16.msrb.mxu2 %v7436_v49  ;;  %v6701_v41 = vld [vmem:[#allocation8 + $0x50] sm:$0xf0]  ;;  %v8719_v49 = vpop.f32.mrf.mxu3  ;;  %v8241_v15 = vld [vmem:[#allocation8 + $0x544] sm:$0xf] }
 0x22b   :  { %4735 = vmatmul.bf16.vlgmr.msrb.gmra.mxu1 %v8707_v51  ;;  %4757 = vmatpush.bf16.msrb.mxu3 %v7612_v29  ;;  %v6704_v39 = vor.u32 %v8081_v35, %v6701_v41  ;;  %v6925_v29 = vld [vmem:[#allocation8 + $0x210] sm:$0xf0]  ;;  %v8225_v35 = vld [vmem:[#allocation8 + $0x4c4] sm:$0xf]  ;;  %v2951_v41 = vadd.f32 %v8715_v24, %v2938_v14 }
 0x22c   :  { %4779 = vmatpush.bf16.msra.mxu1 %v6912_v6  ;;  %v7596_v6 = vor.u32 %v8307_v43, %v7595_v42  ;;  %v8257_v42 = vld [vmem:[#allocation8 + $0x5c4] sm:$0xf]  ;;  %v7405_v43 = vld [vmem:[#allocation8 + $0x5d0] sm:$0xf0] }
 0x22d   :  { %v2964_v24 = vadd.f32 %v8717_v45, %v2951_v41  ;;  %v7213_v14 = vld [vmem:[#allocation8 + $0x450] sm:$0xf0]  ;;  %v8293_v16 = vld [vmem:[#allocation8 + $0x6e4] sm:$0xf] }
 0x22e   :  { %4792 = vmatpush.bf16.msra.mxu2 %v7040_v52  ;;  %4767 = vmatpush.bf16.msra.mxu0 %v6768_v53  ;;  %v6957_v52 = vld [vmem:[#allocation8 + $0x250] sm:$0xf0]  ;;  %v6832_v53 = vor.u32 %v8113_v44, %v6829_v23  ;;  %v6928_v44 = vor.u32 %v8137_v28, %v6925_v29 }
 0x22f   :  { %4758 = vmatpush.bf16.msrb.mxu3 %v7596_v6  ;;  %v7280_v6 = vor.u32 %v8225_v35, %v7277_v38  ;;  %v2977_v57 = vadd.f32 %v8719_v49, %v2964_v24  ;;  %v7341_v28 = vld [vmem:[#allocation8 + $0x550] sm:$0xf0]  ;;  %v8205_v38 = vld [vmem:[#allocation8 + $0x424] sm:$0xf] }
 0x230   :  { %4780 = vmatpush.bf16.msra.mxu1 %v6896_v4  ;;  %v8303_v4 = vld [vmem:[#allocation8 + $0x72c] sm:$0xf0]  ;;  %v7344_v41 = vor.u32 %v8241_v15, %v7341_v28  ;;  %v6883_v28 = vld [vmem:[#allocation8 + $0x1a8] sm:$0xf] }
 0x231   :  { %v7580_v56 = vor.u32 %v8303_v4, %v7579_v55  ;;  %v8217_v55 = vld [vmem:[#allocation8 + $0x484] sm:$0xf] }
 0x232   :  { %4793 = vmatpush.bf16.msra.mxu2 %v7024_v60  ;;  %4768 = vmatpush.bf16.msra.mxu0 %v6752_v7  ;;  %v6960_v60 = vor.u32 %v8145_v50, %v6957_v52  ;;  %v6688_v7 = vor.u32 %v8077_v48, %v6685_v0  ;;  %v2978_v26 = vpop.f32.mrf.mxu3  ;;  %v7261_v48 = vld [vmem:[#allocation8 + $0x4b0] sm:$0xf0]  ;;  %v8253_v52 = vld [vmem:[#allocation8 + $0x5a4] sm:$0xf] }
 0x233   :  { %4759 = vmatpush.bf16.msrb.mxu3 %v7580_v56  ;;  %v7133_v50 = vld [vmem:[#allocation8 + $0x3b0] sm:$0xf0] }
 0x234   :  { %4781 = vmatpush.bf16.msra.mxu1 %v6880_v27  ;;  %v6941_v27 = vld [vmem:[#allocation8 + $0x230] sm:$0xf0]  ;;  %v7136_v0 = vor.u32 %v8189_v19, %v7133_v50  ;;  %v8201_v50 = vld [vmem:[#allocation8 + $0x404] sm:$0xf] }
 0x235   :  { %v6944_v22 = vor.u32 %v8141_v1, %v6941_v27  ;;  %v7117_v56 = vld [vmem:[#allocation8 + $0x390] sm:$0xf0]  ;;  %v8181_v27 = vld [vmem:[#allocation8 + $0x364] sm:$0xf] }
 0x236   :  { %4794 = vmatpush.bf16.msra.mxu2 %v7008_v12  ;;  %4769 = vmatpush.bf16.msra.mxu0 %v6736_v13  ;;  %v8197_v12 = vld [vmem:[#allocation8 + $0x3e4] sm:$0xf]  ;;  %v7165_v13 = vld [vmem:[#allocation8 + $0x3f0] sm:$0xf0]  ;;  %v7120_v45 = vor.u32 %v8185_v46, %v7117_v56 }
 0x237   :  { %v7168_v2 = vor.u32 %v8197_v12, %v7165_v13  ;;  %4760 = vmatpush.bf16.msrb.mxu3 %v7564_v11  ;;  %v7229_v1 = vld [vmem:[#allocation8 + $0x470] sm:$0xf0]  ;;  %v8209_v12 = vld [vmem:[#allocation8 + $0x444] sm:$0xf] }
 0x238   :  { %4782 = vmatpush.bf16.msra.mxu1 %v6864_v17  ;;  %v2965_v17 = vpop.f32.mrf.mxu2  ;;  %v7069_v19 = vld [vmem:[#allocation8 + $0x330] sm:$0xf0]  ;;  %v8169_v46 = vld [vmem:[#allocation8 + $0x304] sm:$0xf] }
 0x239   :  { %v7053_v56 = vld [vmem:[#allocation8 + $0x310] sm:$0xf0] }
 0x23a   :  { %4795 = vmatpush.bf16.msra.mxu2 %v6992_v33  ;;  %4770 = vmatpush.bf16.msra.mxu0 %v6720_v34  ;;  %v6800_v33 = vor.u32 %v8105_v63, %v6797_v32  ;;  %v7296_v34 = vor.u32 %v8229_v9, %v7293_v18  ;;  %v7376_v32 = vor.u32 %v8249_v58, %v7373_v59  ;;  %v7357_v18 = vld [vmem:[#allocation8 + $0x570] sm:$0xf0]  ;;  %v6787_v58 = vld [vmem:[#allocation8 + $0xe8] sm:$0xf]  ;;  %v8104_v59 = vld [vmem:[#allocation8 + $0xf4] sm:$0xf0] }
 0x23b   :  { %4805 = vmatpush.bf16.msra.mxu3 %v7168_v2  ;;  %v7360_v17 = vor.u32 %v8245_v47, %v7357_v18  ;;  %v8177_v2 = vld [vmem:[#allocation8 + $0x344] sm:$0xf]  ;;  %v7501_v47 = vld [vmem:[#allocation8 + $0x690] sm:$0xf0] }
 0x23c   :  { %4783 = vmatpush.bf16.msra.mxu1 %v6848_v20  ;;  %v7149_v20 = vld [vmem:[#allocation8 + $0x3d0] sm:$0xf0] }
 0x23d   :  { %v7152_v23 = vor.u32 %v8193_v40, %v7149_v20  ;;  %v2989_v63 = vpop.f32.mrf.mxu0  ;;  %v7197_v40 = vld [vmem:[#allocation8 + $0x430] sm:$0xf0] }
 0x23e   :  { %4796 = vmatpush.bf16.msra.mxu2 %v6976_v36  ;;  %4771 = vmatpush.bf16.msra.mxu0 %v6704_v39  ;;  %v8221_v36 = vld [vmem:[#allocation8 + $0x4a4] sm:$0xf]  ;;  %v7408_v39 = vor.u32 %v8257_v42, %v7405_v43  ;;  %v2990_v9 = vadd.f32 %v2989_v63, %v2977_v57  ;;  %v7309_v57 = vld [vmem:[#allocation8 + $0x510] sm:$0xf0] }
 0x23f   :  { %4806 = vmatpush.bf16.msra.mxu3 %v7152_v23  ;;  %v7264_v54 = vor.u32 %v8221_v36, %v7261_v48  ;;  %v3002_v10 = vpop.f32.mrf.mxu1  ;;  %v8289_v43 = vld [vmem:[#allocation8 + $0x6c4] sm:$0xf] }
 0x240   :  { %4784 = vmatpush.bf16.msra.mxu1 %v6832_v53  ;;  %v7389_v53 = vld [vmem:[#allocation8 + $0x5b0] sm:$0xf0]  ;;  %v3003_v49 = vadd.f32 %v3002_v10, %v2990_v9  ;;  %v8237_v36 = vld [vmem:[#allocation8 + $0x524] sm:$0xf] }
 0x241   :  { %v7392_v4 = vor.u32 %v8253_v52, %v7389_v53  ;;  %v7200_v52 = vor.u32 %v8205_v38, %v7197_v40  ;;  %v8281_v10 = vld [vmem:[#allocation8 + $0x684] sm:$0xf]  ;;  %v7469_v38 = vld [vmem:[#allocation8 + $0x650] sm:$0xf0] }
 0x242   :  { %4797 = vmatpush.bf16.msra.mxu2 %v6960_v60  ;;  %4772 = vmatpush.bf16.msra.mxu0 %v6688_v7  ;;  %v7248_v60 = vor.u32 %v8217_v55, %v7245_v31  ;;  %v8213_v7 = vld [vmem:[#allocation8 + $0x464] sm:$0xf]  ;;  %vm3090_vm6 = vcmp.gt.f32.partialorder %v3003_v49, 0.0  ;;  %v3098_v26 = vmul.f32 0.2, %v3003_v49 }
 0x243   :  { %4807 = vmatpush.bf16.msra.mxu3 %v7136_v0  ;;  %v7232_v13 = vor.u32 %v8213_v7, %v7229_v1  ;;  %v7181_v0 = vld [vmem:[#allocation8 + $0x410] sm:$0xf0]  ;;  %v8285_v55 = vld [vmem:[#allocation8 + $0x6a4] sm:$0xf]  ;;  %v8136_v7 = vld [vmem:[#allocation8 + $0x1f4] sm:$0xf0] }
 0x244   :  { %4785 = vmatpush.bf16.msra.mxu1 %v6816_v8  ;;  %v7101_v8 = vld [vmem:[#allocation8 + $0x370] sm:$0xf0]  ;;  %v7184_v63 = vor.u32 %v8201_v50, %v7181_v0  ;;  %v6723_v50 = vld [vmem:[#allocation8 + $0x68] sm:$0xf] }
 0x245   :  { %v7104_v11 = vor.u32 %v8181_v27, %v7101_v8  ;;  %v2991_v23 = vpop.f32.mrf.mxu0  ;;  %v7517_v31 = vld [vmem:[#allocation8 + $0x6b0] sm:$0xf0]  ;;  %v6788_v8 = vor.u32 %v8104_v59, %v6787_v58  ;;  %v6851_v0 = vld [vmem:[#allocation8 + $0x168] sm:$0xf]  ;;  %v8084_v59 = vld [vmem:[#allocation8 + $0x54] sm:$0xf0] }
 0x246   :  { %4798 = vmatpush.bf16.msra.mxu2 %v6944_v22  ;;  %4773 = vmatpush.bf16.msra.mxu0 %v6672_v25  ;;  %v7549_v22 = vld [vmem:[#allocation8 + $0x6f0] sm:$0xf0]  ;;  %v8732_v42 = vpop.f32.mrf.mxu3  ;;  %v8124_v23 = vld [vmem:[#allocation8 + $0x194] sm:$0xf0] }
 0x247   :  { %4808 = vmatpush.bf16.msra.mxu3 %v7120_v45  ;;  %v7085_v25 = vld [vmem:[#allocation8 + $0x350] sm:$0xf0]  ;;  %v7552_v35 = vor.u32 %v8293_v16, %v7549_v22  ;;  %v3004_v48 = vpop.f32.mrf.mxu1  ;;  %v7056_v45 = vor.u32 %v8169_v46, %v7053_v56  ;;  %v8277_v16 = vld [vmem:[#allocation8 + $0x664] sm:$0xf] }
 0x248   :  { %4786 = vmatpush.bf16.msra.mxu1 %v6800_v33  ;;  %v7088_v29 = vor.u32 %v8177_v2, %v7085_v25  ;;  %v3106_v33 = vsel %vm3090_vm6, %v3003_v49, %v3098_v26  ;;  %v6899_v49 = vld [vmem:[#allocation8 + $0x1c8] sm:$0xf]  ;;  %v8096_v25 = vld [vmem:[#allocation8 + $0xb4] sm:$0xf0]  ;;  %v510_v26 = vperm.slane %v8683_v62, 7 }
 0x249   :  { %4774 = vmatmul.bf16.vlgmr.msra.gmra.mxu0 %v8689_v3  ;;  %v8730_v20 = vpack.c.bf16 %v3106_v33, %v3106_v33  ;;  %v6755_v2 = vld [vmem:[#allocation8 + $0xa8] sm:$0xf]  ;;  %v7453_v48 = vld [vmem:[#allocation8 + $0x630] sm:$0xf0]  ;;  %v8265_v46 = vld [vmem:[#allocation8 + $0x604] sm:$0xf] }
 0x24a   :  { %4818 = vmatpush.bf16.msrb.mxu0 %v7296_v34  ;;  %4799 = vmatpush.bf16.msra.mxu2 %v6928_v44  ;;  %v7216_v34 = vor.u32 %v8209_v12, %v7213_v14  ;;  %v7533_v44 = vld [vmem:[#allocation8 + $0x6d0] sm:$0xf0]  ;;  %v8100_v12 = vld [vmem:[#allocation8 + $0xd4] sm:$0xf0]  ;;  %v7504_v14 = vor.u32 %v8281_v10, %v7501_v47  ;;  %v6867_v62 = vld [vmem:[#allocation8 + $0x188] sm:$0xf] }
 0x24b   :  { %4787 = vmatmul.bf16.vlgmr.msra.gmra.mxu1 %v8691_v61  ;;  %4809 = vmatpush.bf16.msra.mxu3 %v7104_v11  ;;  %v7536_v53 = vor.u32 %v8289_v43, %v7533_v44  ;;  %v6771_v11 = vld [vmem:[#allocation8 + $0xc8] sm:$0xf]  ;;  %v8092_v43 = vld [vmem:[#allocation8 + $0x94] sm:$0xf0]  ;;  %v7437_v56 = vld [vmem:[#allocation8 + $0x610] sm:$0xf0] }
 0x24c   :  { %4831 = vmatpush.bf16.msrb.mxu1 %v7424_v37  ;;  %v8728_v37 = vpop.f32.mrf.mxu2  ;;  %4748 = vmatmul.bf16.vlgmr.msrb.gmra.mxu2 %v8730_v20  ;;  %v6772_v15 = vor.u32 %v8100_v12, %v6771_v11  ;;  %v8080_v47 = vld [vmem:[#allocation8 + $0x34] sm:$0xf0] }
 0x24d   :  { %v3016_v44 = vadd.f32 %v8728_v37, %v510_v26  ;;  %v8164_v11 = vld [vmem:[#allocation8 + $0x2d4] sm:$0xf0] }
 0x24e   :  { %4819 = vmatpush.bf16.msrb.mxu0 %v7280_v6  ;;  %v8173_v6 = vld [vmem:[#allocation8 + $0x324] sm:$0xf]  ;;  %4844 = vmatpush.bf16.msrb.mxu2 %v7552_v35  ;;  %v3030_v9 = vpop.f32.mrf.mxu3 }
 0x24f   :  { %4810 = vmatpush.bf16.msra.mxu3 %v7088_v29  ;;  %v7072_v24 = vor.u32 %v8173_v6, %v7069_v19  ;;  %v8128_v29 = vld [vmem:[#allocation8 + $0x1b4] sm:$0xf0]  ;;  %v8273_v35 = vld [vmem:[#allocation8 + $0x644] sm:$0xf]  ;;  %v6868_v19 = vor.u32 %v8124_v23, %v6867_v62  ;;  %v7427_v62 = vld [vmem:[#allocation8 + $0x5e8] sm:$0xf] }
 0x250   :  { %4832 = vmatpush.bf16.msrb.mxu1 %v7408_v39  ;;  %v7325_v39 = vld [vmem:[#allocation8 + $0x530] sm:$0xf0]  ;;  %v6884_v40 = vor.u32 %v8128_v29, %v6883_v28  ;;  %v7472_v6 = vor.u32 %v8273_v35, %v7469_v38  ;;  %v6675_v28 = vld [vmem:[#allocation8 + $0x8] sm:$0xf]  ;;  %v8076_v29 = vld [vmem:[#allocation8 + $0x14] sm:$0xf0] }
 0x251   :  { %v8108_v35 = vld [vmem:[#allocation8 + $0x114] sm:$0xf0]  ;;  %v7011_v38 = vld [vmem:[#allocation8 + $0x2a8] sm:$0xf] }
 0x252   :  { %4820 = vmatpush.bf16.msrb.mxu0 %v7264_v54  ;;  %v8233_v54 = vld [vmem:[#allocation8 + $0x504] sm:$0xf]  ;;  %4845 = vmatpush.bf16.msrb.mxu2 %v7536_v53  ;;  %v8264_v23 = vld [vmem:[#allocation8 + $0x5f4] sm:$0xf0] }
 0x253   :  { %4811 = vmatpush.bf16.msra.mxu3 %v7072_v24  ;;  %v7312_v27 = vor.u32 %v8233_v54, %v7309_v57  ;;  %v8088_v24 = vld [vmem:[#allocation8 + $0x74] sm:$0xf0]  ;;  %v6707_v57 = vld [vmem:[#allocation8 + $0x48] sm:$0xf] }
 0x254   :  { %4833 = vmatpush.bf16.msrb.mxu1 %v7392_v4  ;;  %v7328_v4 = vor.u32 %v8237_v36, %v7325_v39  ;;  %v3017_v1 = vpop.f32.mrf.mxu2  ;;  %v8269_v39 = vld [vmem:[#allocation8 + $0x624] sm:$0xf]  ;;  %v8120_v54 = vld [vmem:[#allocation8 + $0x174] sm:$0xf0] }
 0x255   :  { %v6852_v58 = vor.u32 %v8120_v54, %v6851_v0  ;;  %v6708_v1 = vor.u32 %v8084_v59, %v6707_v57  ;;  %v8260_v57 = vld [vmem:[#allocation8 + $0x5d4] sm:$0xf0] }
 0x256   :  { %4821 = vmatpush.bf16.msrb.mxu0 %v7248_v60  ;;  %v6915_v60 = vld [vmem:[#allocation8 + $0x1e8] sm:$0xf] }
 0x257   :  { %4812 = vmatpush.bf16.msra.mxu3 %v7056_v45  ;;  %v6916_v18 = vor.u32 %v8136_v7, %v6915_v60  ;;  %v7043_v45 = vld [vmem:[#allocation8 + $0x2e8] sm:$0xf]  ;;  %v8168_v60 = vld [vmem:[#allocation8 + $0x2f4] sm:$0xf0] }
 0x258   :  { %4834 = vmatpush.bf16.msrb.mxu1 %v7376_v32  ;;  %v7520_v32 = vor.u32 %v8285_v55, %v7517_v31  ;;  %v7456_v55 = vor.u32 %v8269_v39, %v7453_v48  ;;  %v6724_v31 = vor.u32 %v8088_v24, %v6723_v50  ;;  %v6835_v7 = vld [vmem:[#allocation8 + $0x148] sm:$0xf]  ;;  %v6676_v39 = vor.u32 %v8076_v29, %v6675_v28  ;;  %v8309_v29 = vld [vmem:[#allocation8 + $0x764] sm:$0xf] }
 0x25a   :  { %4822 = vmatpush.bf16.msrb.mxu0 %v7232_v13  ;;  %v8132_v13 = vld [vmem:[#allocation8 + $0x1d4] sm:$0xf0]  ;;  %4846 = vmatpush.bf16.msrb.mxu2 %v7520_v32 }
 0x25b   :  { %v6900_v22 = vor.u32 %v8132_v13, %v6899_v49 }
 0x25c   :  { %4835 = vmatpush.bf16.msrb.mxu1 %v7360_v17  ;;  %v7485_v17 = vld [vmem:[#allocation8 + $0x670] sm:$0xf0]  ;;  %4800 = vmatmul.bf16.vlgmr.msra.gmra.mxu2 %v8693_v5 }
 0x25d   :  { %v7488_v33 = vor.u32 %v8277_v16, %v7485_v17  ;;  %v8325_v17 = vld [vmem:[#allocation8 + $0x7e4] sm:$0xf] }
 0x25e   :  { %4823 = vmatpush.bf16.msrb.mxu0 %v7216_v34  ;;  %4847 = vmatpush.bf16.msrb.mxu2 %v7504_v14  ;;  %v6756_v34 = vor.u32 %v8096_v25, %v6755_v2  ;;  %v6819_v14 = vld [vmem:[#allocation8 + $0x128] sm:$0xf] }
 0x260   :  { %4836 = vmatpush.bf16.msrb.mxu1 %v7344_v41  ;;  %v6739_v41 = vld [vmem:[#allocation8 + $0x88] sm:$0xf] }
 0x261   :  { %v6740_v36 = vor.u32 %v8092_v43, %v6739_v41  ;;  %v7299_v43 = vld [vmem:[#allocation8 + $0x4e8] sm:$0xf] }
 0x262   :  { %4824 = vmatpush.bf16.msrb.mxu0 %v7200_v52  ;;  %4848 = vmatpush.bf16.msrb.mxu2 %v7488_v33  ;;  %v3029_v52 = vadd.f32 %v8732_v42, %v3016_v44  ;;  %v7440_v42 = vor.u32 %v8265_v46, %v7437_v56  ;;  %v6803_v33 = vld [vmem:[#allocation8 + $0x108] sm:$0xf]  ;;  %v8232_v44 = vld [vmem:[#allocation8 + $0x4f4] sm:$0xf0] }
 0x263   :  { %v6804_v50 = vor.u32 %v8108_v35, %v6803_v33  ;;  %v7300_v54 = vor.u32 %v8232_v44, %v7299_v43  ;;  %v8228_v46 = vld [vmem:[#allocation8 + $0x4d4] sm:$0xf0]  ;;  %v7411_v56 = vld [vmem:[#allocation8 + $0x5c8] sm:$0xf]  ;;  %v7613_v33 = vld [vmem:[#allocation8 + $0x770] sm:$0xf0] }
 0x264   :  { %4837 = vmatpush.bf16.msrb.mxu1 %v7328_v4  ;;  %v8216_v44 = vld [vmem:[#allocation8 + $0x474] sm:$0xf0] }
 0x266   :  { %4825 = vmatpush.bf16.msrb.mxu0 %v7184_v63  ;;  %v3041_v53 = vpop.f32.mrf.mxu0  ;;  %4849 = vmatpush.bf16.msrb.mxu2 %v7472_v6  ;;  %v8116_v63 = vld [vmem:[#allocation8 + $0x154] sm:$0xf0] }
 0x267   :  { %v3042_v4 = vadd.f32 %v3041_v53, %v3029_v52  ;;  %v6836_v10 = vor.u32 %v8116_v63, %v6835_v7  ;;  %v8321_v52 = vld [vmem:[#allocation8 + $0x7c4] sm:$0xf]  ;;  %v7661_v53 = vld [vmem:[#allocation8 + $0x7d0] sm:$0xf0]  ;;  %v7412_v63 = vor.u32 %v8260_v57, %v7411_v56  ;;  %v7555_v57 = vld [vmem:[#allocation8 + $0x6e8] sm:$0xf] }
 0x268   :  { %4838 = vmatpush.bf16.msrb.mxu1 %v7312_v27  ;;  %v3054_v37 = vpop.f32.mrf.mxu1  ;;  %v7044_v27 = vor.u32 %v8168_v60, %v7043_v45  ;;  %v8317_v45 = vld [vmem:[#allocation8 + $0x7a4] sm:$0xf]  ;;  %v7645_v60 = vld [vmem:[#allocation8 + $0x7b0] sm:$0xf0] }
 0x269   :  { %4826 = vmatmul.bf16.vlgmr.msrb.gmra.mxu0 %v8709_v21  ;;  %v3055_v32 = vadd.f32 %v3054_v37, %v3042_v4  ;;  %v7428_v37 = vor.u32 %v8264_v23, %v7427_v62  ;;  %v8156_v4 = vld [vmem:[#allocation8 + $0x294] sm:$0xf0]  ;;  %v7363_v62 = vld [vmem:[#allocation8 + $0x568] sm:$0xf] }
 0x26a   :  { %4870 = vmatpush.bf16.msra.mxu0 %v6788_v8  ;;  %4850 = vmatpush.bf16.msrb.mxu2 %v7456_v55  ;;  %v6691_v8 = vld [vmem:[#allocation8 + $0x28] sm:$0xf]  ;;  %v8248_v23 = vld [vmem:[#allocation8 + $0x574] sm:$0xf0] }
 0x26b   :  { %4839 = vmatmul.bf16.vlgmr.msrb.gmra.mxu1 %v8707_v51  ;;  %v6692_v25 = vor.u32 %v8080_v47, %v6691_v8  ;;  %v6995_v55 = vld [vmem:[#allocation8 + $0x288] sm:$0xf] }
 0x26c   :  { %4883 = vmatpush.bf16.msra.mxu1 %v6916_v18  ;;  %v7027_v18 = vld [vmem:[#allocation8 + $0x2c8] sm:$0xf]  ;;  %v6996_v59 = vor.u32 %v8156_v4, %v6995_v55  ;;  %v8212_v4 = vld [vmem:[#allocation8 + $0x454] sm:$0xf0] }
 0x26d   :  { %v7028_v26 = vor.u32 %v8164_v11, %v7027_v18  ;;  %v7395_v8 = vld [vmem:[#allocation8 + $0x5a8] sm:$0xf]  ;;  %v8313_v18 = vld [vmem:[#allocation8 + $0x784] sm:$0xf]  ;;  %v7629_v11 = vld [vmem:[#allocation8 + $0x790] sm:$0xf0] }
 0x26e   :  { %4871 = vmatpush.bf16.msra.mxu0 %v6772_v15  ;;  %v3043_v13 = vpop.f32.mrf.mxu0  ;;  %v8112_v15 = vld [vmem:[#allocation8 + $0x134] sm:$0xf0]  ;;  %4851 = vmatpush.bf16.msrb.mxu2 %v7440_v42  ;;  %v6979_v42 = vld [vmem:[#allocation8 + $0x268] sm:$0xf] }
 0x26f   :  { %v7219_v55 = vld [vmem:[#allocation8 + $0x448] sm:$0xf] }
 0x270   :  { %4884 = vmatpush.bf16.msra.mxu1 %v6900_v22  ;;  %v3067_v9 = vpop.f32.mrf.mxu2  ;;  %v3056_v16 = vpop.f32.mrf.mxu1  ;;  %v7677_v22 = vld [vmem:[#allocation8 + $0x7f0] sm:$0xf0] }
 0x271   :  { %v3068_v12 = vadd.f32 %v3067_v9, %v3055_v32  ;;  %4852 = vmatmul.bf16.vlgmr.msrb.gmra.mxu2 %v8730_v20  ;;  %v8152_v32 = vld [vmem:[#allocation8 + $0x274] sm:$0xf0]  ;;  %v7251_v16 = vld [vmem:[#allocation8 + $0x488] sm:$0xf] }
 0x272   :  { %4872 = vmatpush.bf16.msra.mxu0 %v6756_v34  ;;  %v3080_v49 = vpop.f32.mrf.mxu3  ;;  %4896 = vmatpush.bf16.msra.mxu2 %v7044_v27  ;;  %v6820_v34 = vor.u32 %v8112_v15, %v6819_v14  ;;  %v8224_v27 = vld [vmem:[#allocation8 + $0x4b4] sm:$0xf0]  ;;  %v6980_v47 = vor.u32 %v8152_v32, %v6979_v42  ;;  %v6963_v14 = vld [vmem:[#allocation8 + $0x248] sm:$0xf] }
 0x273   :  { %v3081_v2 = vadd.f32 %v3080_v49, %v3068_v12  ;;  %v8256_v9 = vld [vmem:[#allocation8 + $0x5b4] sm:$0xf0]  ;;  %v8747_v12 = vld [vmem:[#allocation10] sm:$0xf]  ;;  %v7203_v32 = vld [vmem:[#allocation8 + $0x428] sm:$0xf] }
 0x274   :  { %4885 = vmatpush.bf16.msra.mxu1 %v6884_v40  ;;  %v8160_v40 = vld [vmem:[#allocation8 + $0x2b4] sm:$0xf0]  ;;  %v7396_v13 = vor.u32 %v8256_v9, %v7395_v8 }
 0x275   :  { %vm3091_vm7 = vcmp.gt.f32.partialorder %v3081_v2, 0.0  ;;  %v3099_v41 = vmul.f32 0.2, %v3081_v2  ;;  %v7012_v24 = vor.u32 %v8160_v40, %v7011_v38  ;;  %v8148_v15 = vld [vmem:[#allocation8 + $0x254] sm:$0xf0] }
 0x276   :  { %4873 = vmatpush.bf16.msra.mxu0 %v6740_v36  ;;  %4897 = vmatpush.bf16.msra.mxu2 %v7028_v26  ;;  %v7680_v36 = vor.u32 %v8325_v17, %v7677_v22  ;;  %v8220_v17 = vld [vmem:[#allocation8 + $0x494] sm:$0xf0]  ;;  %v7379_v22 = vld [vmem:[#allocation8 + $0x588] sm:$0xf]  ;;  %v3374_v26 = vperm.slane %v8747_v12, 0  ;;  %v6964_v28 = vor.u32 %v8148_v15, %v6963_v14 }
 0x277   :  { %v3107_v6 = vsel %vm3091_vm7, %v3081_v2, %v3099_v41  ;;  %v8252_v2 = vld [vmem:[#allocation8 + $0x594] sm:$0xf0]  ;;  %v6947_v38 = vld [vmem:[#allocation8 + $0x228] sm:$0xf] }
 0x278   :  { %4886 = vmatpush.bf16.msra.mxu1 %v6868_v19  ;;  %v8742_v48 = vpack.c.bf16 %v3107_v6, %v3107_v6  ;;  %v3069_v19 = vpop.f32.mrf.mxu2  ;;  %v7380_v35 = vor.u32 %v8252_v2, %v7379_v22  ;;  %v8144_v40 = vld [vmem:[#allocation8 + $0x234] sm:$0xf0]  ;;  %v7235_v41 = vld [vmem:[#allocation8 + $0x468] sm:$0xf] }
 0x279   :  { %v6948_v19 = vor.u32 %v8144_v40, %v6947_v38  ;;  %v8292_v14 = vld [vmem:[#allocation8 + $0x6d4] sm:$0xf0]  ;;  %v7171_v22 = vld [vmem:[#allocation8 + $0x3e8] sm:$0xf] }
 0x27a   :  { %4874 = vmatpush.bf16.msra.mxu0 %v6724_v31  ;;  %v3082_v0 = vpop.f32.mrf.mxu3  ;;  %v7283_v31 = vld [vmem:[#allocation8 + $0x4c8] sm:$0xf]  ;;  %4761 = vmatmul.bf16.vlgmr.msrb.gmra.mxu3 %v8742_v48 }
 0x27b   :  { %4857 = vmatpush.bf16.msrb.mxu3 %v7680_v36  ;;  %4898 = vmatpush.bf16.msra.mxu2 %v7012_v24  ;;  %v7284_v7 = vor.u32 %v8228_v46, %v7283_v31  ;;  %v7597_v24 = vld [vmem:[#allocation8 + $0x750] sm:$0xf0]  ;;  %v7364_v0 = vor.u32 %v8248_v23, %v7363_v62  ;;  %v7347_v31 = vld [vmem:[#allocation8 + $0x548] sm:$0xf]  ;;  %v8244_v46 = vld [vmem:[#allocation8 + $0x554] sm:$0xf0] }
 0x27c   :  { %4887 = vmatpush.bf16.msra.mxu1 %v6852_v58  ;;  %v7664_v58 = vor.u32 %v8321_v52, %v7661_v53  ;;  %v7236_v53 = vor.u32 %v8216_v44, %v7235_v41  ;;  %v7348_v42 = vor.u32 %v8244_v46, %v7347_v31  ;;  %v7523_v38 = vld [vmem:[#allocation8 + $0x6a8] sm:$0xf]  ;;  %v8288_v41 = vld [vmem:[#allocation8 + $0x6b4] sm:$0xf0]  ;;  %v6789_v44 = vld [vmem:[#allocation8 + $0xf8] sm:$0xf0] }
 0x27d   :  { %v8134_v23 = vld [vmem:[#allocation8 + $0x1ec] sm:$0xf]  ;;  %v6773_v31 = vld [vmem:[#allocation8 + $0xd8] sm:$0xf0] }
 0x27e   :  { %4875 = vmatpush.bf16.msra.mxu0 %v6708_v1  ;;  %v7267_v1 = vld [vmem:[#allocation8 + $0x4a8] sm:$0xf] }
 0x27f   :  { %4858 = vmatpush.bf16.msrb.mxu3 %v7664_v58  ;;  %4899 = vmatpush.bf16.msra.mxu2 %v6996_v59  ;;  %v7268_v49 = vor.u32 %v8224_v27, %v7267_v1  ;;  %v8296_v58 = vld [vmem:[#allocation8 + $0x6f4] sm:$0xf0] }
 0x280   :  { %4888 = vmatpush.bf16.msra.mxu1 %v6836_v10  ;;  %v7648_v10 = vor.u32 %v8317_v45, %v7645_v60  ;;  %v8301_v45 = vld [vmem:[#allocation8 + $0x724] sm:$0xf]  ;;  %v7581_v60 = vld [vmem:[#allocation8 + $0x730] sm:$0xf0]  ;;  %v7556_v9 = vor.u32 %v8296_v58, %v7555_v57  ;;  %v6901_v57 = vld [vmem:[#allocation8 + $0x1d8] sm:$0xf0] }
 0x281   :  { %v7139_v58 = vld [vmem:[#allocation8 + $0x3a8] sm:$0xf] }
 0x282   :  { %4876 = vmatpush.bf16.msra.mxu0 %v6692_v25  ;;  %v7632_v25 = vor.u32 %v8313_v18, %v7629_v11  ;;  %v8240_v18 = vld [vmem:[#allocation8 + $0x534] sm:$0xf0] }
 0x283   :  { %4859 = vmatpush.bf16.msrb.mxu3 %v7648_v10  ;;  %4900 = vmatpush.bf16.msra.mxu2 %v6980_v47  ;;  %v8208_v10 = vld [vmem:[#allocation8 + $0x434] sm:$0xf0]  ;;  %v7331_v47 = vld [vmem:[#allocation8 + $0x528] sm:$0xf] }
 0x284   :  { %4889 = vmatpush.bf16.msra.mxu1 %v6820_v34  ;;  %v7252_v34 = vor.u32 %v8220_v17, %v7251_v16  ;;  %v8297_v16 = vld [vmem:[#allocation8 + $0x704] sm:$0xf]  ;;  %v7565_v17 = vld [vmem:[#allocation8 + $0x710] sm:$0xf0]  ;;  %v7204_v2 = vor.u32 %v8208_v10, %v7203_v32  ;;  %v8094_v32 = vld [vmem:[#allocation8 + $0xac] sm:$0xf] }
 0x285   :  { %v7568_v40 = vor.u32 %v8297_v16, %v7565_v17  ;;  %v7123_v10 = vld [vmem:[#allocation8 + $0x388] sm:$0xf]  ;;  %v8090_v16 = vld [vmem:[#allocation8 + $0x8c] sm:$0xf]  ;;  %v6741_v17 = vld [vmem:[#allocation8 + $0x98] sm:$0xf0] }
 0x286   :  { %4877 = vmatpush.bf16.msra.mxu0 %v6676_v39  ;;  %v4671_v43 = vpop.f32.mrf.mxu0  ;;  %v7616_v39 = vor.u32 %v8309_v29, %v7613_v33  ;;  %v8204_v29 = vld [vmem:[#allocation8 + $0x414] sm:$0xf0] }
 0x287   :  { %4860 = vmatpush.bf16.msrb.mxu3 %v7632_v25  ;;  %v4672_v6 = vadd.f32 %v4671_v43, %v3374_v26  ;;  %4901 = vmatpush.bf16.msra.mxu2 %v6964_v28  ;;  %v7332_v25 = vor.u32 %v8240_v18, %v7331_v47  ;;  %v8200_v26 = vld [vmem:[#allocation8 + $0x3f4] sm:$0xf0]  ;;  %v7187_v28 = vld [vmem:[#allocation8 + $0x408] sm:$0xf]  ;;  %v8102_v43 = vld [vmem:[#allocation8 + $0xec] sm:$0xf] }
 0x288   :  { %4890 = vmatpush.bf16.msra.mxu1 %v6804_v50  ;;  %v4684_v36 = vpop.f32.mrf.mxu1  ;;  %v8305_v50 = vld [vmem:[#allocation8 + $0x744] sm:$0xf]  ;;  %v7172_v62 = vor.u32 %v8200_v26, %v7171_v22  ;;  %v8188_v47 = vld [vmem:[#allocation8 + $0x394] sm:$0xf0]  ;;  %v7107_v26 = vld [vmem:[#allocation8 + $0x368] sm:$0xf] }
 0x289   :  { %4878 = vmatmul.bf16.vlgmr.msra.gmra.mxu0 %v8689_v3  ;;  %v4685_v52 = vadd.f32 %v4684_v36, %v4672_v6  ;;  %v7600_v56 = vor.u32 %v8305_v50, %v7597_v24  ;;  %v6917_v6 = vld [vmem:[#allocation8 + $0x1f8] sm:$0xf0]  ;;  %v7155_v50 = vld [vmem:[#allocation8 + $0x3c8] sm:$0xf]  ;;  %v8196_v24 = vld [vmem:[#allocation8 + $0x3d4] sm:$0xf0]  ;;  %v7124_v22 = vor.u32 %v8188_v47, %v7123_v10 }
 0x28a   :  { %4922 = vmatpush.bf16.msrb.mxu0 %v7300_v54  ;;  %v6931_v54 = vld [vmem:[#allocation8 + $0x208] sm:$0xf]  ;;  %4813 = vmatmul.bf16.vlgmr.msra.gmra.mxu3 %v8695_v30  ;;  %v7156_v46 = vor.u32 %v8196_v24, %v7155_v50  ;;  %v7029_v10 = vld [vmem:[#allocation8 + $0x2d8] sm:$0xf0] }
 0x28b   :  { %4891 = vmatmul.bf16.vlgmr.msra.gmra.mxu1 %v8691_v61  ;;  %4861 = vmatpush.bf16.msrb.mxu3 %v7616_v39  ;;  %v7188_v39 = vor.u32 %v8204_v29, %v7187_v28  ;;  %v8184_v28 = vld [vmem:[#allocation8 + $0x374] sm:$0xf0] }
 0x28c   :  { %4935 = vmatpush.bf16.msrb.mxu1 %v7428_v37  ;;  %v8140_v37 = vld [vmem:[#allocation8 + $0x214] sm:$0xf0]  ;;  %4902 = vmatpush.bf16.msra.mxu2 %v6948_v19 }
 0x28d   :  { %v6932_v59 = vor.u32 %v8140_v37, %v6931_v54  ;;  %v7507_v54 = vld [vmem:[#allocation8 + $0x688] sm:$0xf]  ;;  %v6920_v37 = vor.u32 %v8134_v23, %v6917_v6  ;;  %v6853_v23 = vld [vmem:[#allocation8 + $0x178] sm:$0xf0] }
 0x28e   :  { %4923 = vmatpush.bf16.msrb.mxu0 %v7284_v7  ;;  %v4673_v8 = vpop.f32.mrf.mxu0 }
 0x28f   :  { %4862 = vmatpush.bf16.msrb.mxu3 %v7600_v56  ;;  %v8130_v56 = vld [vmem:[#allocation8 + $0x1cc] sm:$0xf] }
 0x290   :  { %4936 = vmatpush.bf16.msrb.mxu1 %v7412_v63  ;;  %v4697_v7 = vpop.f32.mrf.mxu2  ;;  %v7220_v63 = vor.u32 %v8212_v4, %v7219_v55  ;;  %v4686_v11 = vpop.f32.mrf.mxu1  ;;  %4903 = vmatpush.bf16.msra.mxu2 %v6932_v59  ;;  %v8284_v55 = vld [vmem:[#allocation8 + $0x694] sm:$0xf0]  ;;  %v8098_v4 = vld [vmem:[#allocation8 + $0xcc] sm:$0xf] }
 0x291   :  { %v4698_v1 = vadd.f32 %v4697_v7, %v4685_v52  ;;  %v8192_v59 = vld [vmem:[#allocation8 + $0x3b4] sm:$0xf0]  ;;  %v7491_v7 = vld [vmem:[#allocation8 + $0x668] sm:$0xf]  ;;  %v8126_v8 = vld [vmem:[#allocation8 + $0x1ac] sm:$0xf] }
 0x292   :  { %4924 = vmatpush.bf16.msrb.mxu0 %v7268_v49  ;;  %v4710_v27 = vpop.f32.mrf.mxu3  ;;  %v7584_v49 = vor.u32 %v8301_v45, %v7581_v60  ;;  %v7508_v45 = vor.u32 %v8284_v55, %v7507_v54  ;;  %v6776_v60 = vor.u32 %v8098_v4, %v6773_v31  ;;  %v6709_v55 = vld [vmem:[#allocation8 + $0x58] sm:$0xf0]  ;;  %v8114_v4 = vld [vmem:[#allocation8 + $0x14c] sm:$0xf] }
 0x293   :  { %v8751_v15 = vadd.f32 %v4710_v27, %v4698_v1  ;;  %4904 = vmatmul.bf16.vlgmr.msra.gmra.mxu2 %v8693_v5  ;;  %v6757_v1 = vld [vmem:[#allocation8 + $0xb8] sm:$0xf0]  ;;  %v7140_v27 = vor.u32 %v8192_v59, %v7139_v58  ;;  %v8176_v58 = vld [vmem:[#allocation8 + $0x334] sm:$0xf0] }
 0x294   :  { %4937 = vmatpush.bf16.msrb.mxu1 %v7396_v13  ;;  %v7539_v13 = vld [vmem:[#allocation8 + $0x6c8] sm:$0xf]  ;;  %4948 = vmatpush.bf16.msrb.mxu2 %v7556_v9  ;;  %v6885_v9 = vld [vmem:[#allocation8 + $0x1b8] sm:$0xf0]  ;;  %v6760_v11 = vor.u32 %v8094_v32, %v6757_v1  ;;  %v8110_v32 = vld [vmem:[#allocation8 + $0x12c] sm:$0xf] }
 0x295   :  { %v7540_v33 = vor.u32 %v8292_v14, %v7539_v13  ;;  %4863 = vmatpush.bf16.msrb.mxu3 %v7584_v49  ;;  %v7475_v49 = vld [vmem:[#allocation8 + $0x648] sm:$0xf]  ;;  %v6888_v13 = vor.u32 %v8126_v8, %v6885_v9  ;;  %v8276_v14 = vld [vmem:[#allocation8 + $0x654] sm:$0xf0]  ;;  %v6821_v8 = vld [vmem:[#allocation8 + $0x138] sm:$0xf0] }
 0x296   :  { %4925 = vmatpush.bf16.msrb.mxu0 %v7252_v34  ;;  %v7315_v34 = vld [vmem:[#allocation8 + $0x508] sm:$0xf]  ;;  %v7476_v29 = vor.u32 %v8276_v14, %v7475_v49  ;;  %v8162_v9 = vld [vmem:[#allocation8 + $0x2cc] sm:$0xf]  ;;  %v8328_v14 = vld [vmem:[#allocation8 + $0x7f4] sm:$0xf0] }
 0x298   :  { %4938 = vmatpush.bf16.msrb.mxu1 %v7380_v35  ;;  %v8236_v35 = vld [vmem:[#allocation8 + $0x514] sm:$0xf0]  ;;  %v4699_v36 = vpop.f32.mrf.mxu2  ;;  %4949 = vmatpush.bf16.msrb.mxu2 %v7540_v33  ;;  %v6744_v33 = vor.u32 %v8090_v16, %v6741_v17  ;;  %v6824_v16 = vor.u32 %v8110_v32, %v6821_v8  ;;  %v7032_v17 = vor.u32 %v8162_v9, %v7029_v10  ;;  %v8146_v8 = vld [vmem:[#allocation8 + $0x24c] sm:$0xf]  ;;  %v6965_v9 = vld [vmem:[#allocation8 + $0x258] sm:$0xf0] }
 0x299   :  { %v7316_v19 = vor.u32 %v8236_v35, %v7315_v34  ;;  %4864 = vmatpush.bf16.msrb.mxu3 %v7568_v40  ;;  %v7459_v34 = vld [vmem:[#allocation8 + $0x628] sm:$0xf]  ;;  %v8086_v40 = vld [vmem:[#allocation8 + $0x6c] sm:$0xf] }
 0x29a   :  { %4926 = vmatpush.bf16.msrb.mxu0 %v7236_v53  ;;  %v4712_v52 = vpop.f32.mrf.mxu3  ;;  %v7524_v53 = vor.u32 %v8288_v41, %v7523_v38  ;;  %v8272_v38 = vld [vmem:[#allocation8 + $0x634] sm:$0xf0]  ;;  %v6725_v41 = vld [vmem:[#allocation8 + $0x78] sm:$0xf0] }
 0x29b   :  { %v7460_v50 = vor.u32 %v8272_v38, %v7459_v34  ;;  %v6728_v24 = vor.u32 %v8086_v40, %v6725_v41  ;;  %v7443_v52 = vld [vmem:[#allocation8 + $0x608] sm:$0xf]  ;;  %v7301_v38 = vld [vmem:[#allocation8 + $0x4f8] sm:$0xf0]  ;;  %v8262_v40 = vld [vmem:[#allocation8 + $0x5ec] sm:$0xf] }
 0x29c   :  { %4939 = vmatpush.bf16.msrb.mxu1 %v7364_v0  ;;  %v6792_v0 = vor.u32 %v8102_v43, %v6789_v44  ;;  %4950 = vmatpush.bf16.msrb.mxu2 %v7524_v53  ;;  %v7108_v44 = vor.u32 %v8184_v28, %v7107_v26  ;;  %v8268_v53 = vld [vmem:[#allocation8 + $0x614] sm:$0xf0]  ;;  %v6805_v28 = vld [vmem:[#allocation8 + $0x118] sm:$0xf0] }
 0x29d   :  { %4909 = vmatpush.bf16.msra.mxu3 %v7172_v62  ;;  %v8118_v62 = vld [vmem:[#allocation8 + $0x16c] sm:$0xf]  ;;  %v7444_v59 = vor.u32 %v8268_v53, %v7443_v52  ;;  %v7285_v53 = vld [vmem:[#allocation8 + $0x4d8] sm:$0xf0] }
 0x29e   :  { %4927 = vmatpush.bf16.msrb.mxu0 %v7220_v63  ;;  %4865 = vmatmul.bf16.vlgmr.msrb.gmra.mxu3 %v8742_v48  ;;  %v6904_v63 = vor.u32 %v8130_v56, %v6901_v57  ;;  %v6856_v54 = vor.u32 %v8118_v62, %v6853_v23  ;;  %v7045_v56 = vld [vmem:[#allocation8 + $0x2f8] sm:$0xf0]  ;;  %v7075_v57 = vld [vmem:[#allocation8 + $0x328] sm:$0xf]  ;;  %v8324_v62 = vld [vmem:[#allocation8 + $0x7d4] sm:$0xf0] }
 0x29f   :  { %v8226_v52 = vld [vmem:[#allocation8 + $0x4cc] sm:$0xf] }
 0x2a0   :  { %4940 = vmatpush.bf16.msrb.mxu1 %v7348_v42  ;;  %v8280_v42 = vld [vmem:[#allocation8 + $0x674] sm:$0xf0]  ;;  %4951 = vmatpush.bf16.msrb.mxu2 %v7508_v45 }
 0x2a1   :  { %4910 = vmatpush.bf16.msra.mxu3 %v7156_v46  ;;  %v7492_v18 = vor.u32 %v8280_v42, %v7491_v7  ;;  %v6837_v46 = vld [vmem:[#allocation8 + $0x158] sm:$0xf0] }
 0x2a2   :  { %4928 = vmatpush.bf16.msrb.mxu0 %v7204_v2  ;;  %v8122_v2 = vld [vmem:[#allocation8 + $0x18c] sm:$0xf]  ;;  %v6693_v42 = vld [vmem:[#allocation8 + $0x38] sm:$0xf0] }
 0x2a4   :  { %4941 = vmatpush.bf16.msrb.mxu1 %v7332_v25  ;;  %v6869_v25 = vld [vmem:[#allocation8 + $0x198] sm:$0xf0]  ;;  %4952 = vmatpush.bf16.msrb.mxu2 %v7492_v18  ;;  %v7059_v18 = vld [vmem:[#allocation8 + $0x308] sm:$0xf] }
 0x2a5   :  { %4911 = vmatpush.bf16.msra.mxu3 %v7140_v27  ;;  %v6872_v35 = vor.u32 %v8122_v2, %v6869_v25  ;;  %v7076_v27 = vor.u32 %v8176_v58, %v7075_v57  ;;  %v6677_v2 = vld [vmem:[#allocation8 + $0x18] sm:$0xf0]  ;;  %v8106_v25 = vld [vmem:[#allocation8 + $0x10c] sm:$0xf] }
 0x2a6   :  { %4929 = vmatpush.bf16.msrb.mxu0 %v7188_v39  ;;  %v4723_v43 = vpop.f32.mrf.mxu0  ;;  %v7091_v39 = vld [vmem:[#allocation8 + $0x348] sm:$0xf]  ;;  %v6808_v23 = vor.u32 %v8106_v25, %v6805_v28  ;;  %v8214_v28 = vld [vmem:[#allocation8 + $0x46c] sm:$0xf] }
 0x2a7   :  { %v4724_v6 = vadd.f32 %v4723_v43, %v8751_v15  ;;  %v8166_v15 = vld [vmem:[#allocation8 + $0x2ec] sm:$0xf]  ;;  %v7429_v43 = vld [vmem:[#allocation8 + $0x5f8] sm:$0xf0] }
 0x2a8   :  { %4942 = vmatpush.bf16.msrb.mxu1 %v7316_v19  ;;  %v4736_v36 = vpop.f32.mrf.mxu1  ;;  %v8180_v19 = vld [vmem:[#allocation8 + $0x354] sm:$0xf0]  ;;  %4953 = vmatpush.bf16.msrb.mxu2 %v7476_v29  ;;  %v7048_v7 = vor.u32 %v8166_v15, %v7045_v56  ;;  %v8158_v29 = vld [vmem:[#allocation8 + $0x2ac] sm:$0xf]  ;;  %v6981_v56 = vld [vmem:[#allocation8 + $0x278] sm:$0xf0] }
 0x2a9   :  { %4930 = vmatmul.bf16.vlgmr.msrb.gmra.mxu0 %v8709_v21  ;;  %4912 = vmatpush.bf16.msra.mxu3 %v7124_v22  ;;  %v7092_v31 = vor.u32 %v8180_v19, %v7091_v39  ;;  %v8074_v22 = vld [vmem:[#allocation8 + $0xc] sm:$0xf]  ;;  %v6997_v19 = vld [vmem:[#allocation8 + $0x298] sm:$0xf0] }
 0x2aa   :  { %4974 = vmatpush.bf16.msra.mxu0 %v6792_v0  ;;  %v8758_v0 = vadd.f32 %v4736_v36, %v4724_v6  ;;  %v6680_v41 = vor.u32 %v8074_v22, %v6677_v2  ;;  %v8154_v39 = vld [vmem:[#allocation8 + $0x28c] sm:$0xf]  ;;  %v6949_v22 = vld [vmem:[#allocation8 + $0x238] sm:$0xf0] }
 0x2ab   :  { %4943 = vmatmul.bf16.vlgmr.msrb.gmra.mxu1 %v8707_v51  ;;  %v8150_v15 = vld [vmem:[#allocation8 + $0x26c] sm:$0xf] }
 0x2ac   :  { %4987 = vmatpush.bf16.msra.mxu1 %v6920_v37  ;;  %v8082_v37 = vld [vmem:[#allocation8 + $0x4c] sm:$0xf]  ;;  %4954 = vmatpush.bf16.msrb.mxu2 %v7460_v50  ;;  %v7432_v50 = vor.u32 %v8262_v40, %v7429_v43  ;;  %v6984_v32 = vor.u32 %v8150_v15, %v6981_v56  ;;  %v7603_v40 = vld [vmem:[#allocation8 + $0x748] sm:$0xf] }
 0x2ad   :  { %4913 = vmatpush.bf16.msra.mxu3 %v7108_v44  ;;  %v6712_v45 = vor.u32 %v8082_v37, %v6709_v55  ;;  %v7667_v44 = vld [vmem:[#allocation8 + $0x7c8] sm:$0xf]  ;;  %v7413_v37 = vld [vmem:[#allocation8 + $0x5d8] sm:$0xf0] }
 0x2ae   :  { %4975 = vmatpush.bf16.msra.mxu0 %v6776_v60  ;;  %v6840_v60 = vor.u32 %v8114_v4, %v6837_v46  ;;  %v4725_v1 = vpop.f32.mrf.mxu0  ;;  %v7651_v55 = vld [vmem:[#allocation8 + $0x7a8] sm:$0xf]  ;;  %v8320_v4 = vld [vmem:[#allocation8 + $0x7b4] sm:$0xf0]  ;;  %v7288_v46 = vor.u32 %v8226_v52, %v7285_v53  ;;  %v7349_v52 = vld [vmem:[#allocation8 + $0x558] sm:$0xf0] }
 0x2af   :  { %v7652_v58 = vor.u32 %v8320_v4, %v7651_v55  ;;  %v8294_v53 = vld [vmem:[#allocation8 + $0x6ec] sm:$0xf]  ;;  %v8304_v55 = vld [vmem:[#allocation8 + $0x734] sm:$0xf0] }
 0x2b0   :  { %4988 = vmatpush.bf16.msra.mxu1 %v6904_v63  ;;  %v8078_v63 = vld [vmem:[#allocation8 + $0x2c] sm:$0xf]  ;;  %v4738_v47 = vpop.f32.mrf.mxu1  ;;  %4955 = vmatpush.bf16.msrb.mxu2 %v7444_v59 }
 0x2b1   :  { %4914 = vmatpush.bf16.msra.mxu3 %v7092_v31  ;;  %v6696_v49 = vor.u32 %v8078_v63, %v6693_v42  ;;  %v7000_v31 = vor.u32 %v8154_v39, %v6997_v19  ;;  %v8222_v59 = vld [vmem:[#allocation8 + $0x4ac] sm:$0xf]  ;;  %v7635_v63 = vld [vmem:[#allocation8 + $0x788] sm:$0xf]  ;;  %v8316_v42 = vld [vmem:[#allocation8 + $0x794] sm:$0xf0] }
 0x2b2   :  { %4976 = vmatpush.bf16.msra.mxu0 %v6760_v11  ;;  %v8172_v11 = vld [vmem:[#allocation8 + $0x314] sm:$0xf0]  ;;  %v7636_v47 = vor.u32 %v8316_v42, %v7635_v63  ;;  %v8210_v19 = vld [vmem:[#allocation8 + $0x44c] sm:$0xf]  ;;  %v7541_v42 = vld [vmem:[#allocation8 + $0x6d8] sm:$0xf0] }
 0x2b3   :  { %v7060_v26 = vor.u32 %v8172_v11, %v7059_v18  ;;  %4956 = vmatmul.bf16.vlgmr.msrb.gmra.mxu2 %v8730_v20  ;;  %v8218_v18 = vld [vmem:[#allocation8 + $0x48c] sm:$0xf]  ;;  %v7253_v11 = vld [vmem:[#allocation8 + $0x498] sm:$0xf0] }
 0x2b4   :  { %4989 = vmatpush.bf16.msra.mxu1 %v6888_v13  ;;  %v7683_v13 = vld [vmem:[#allocation8 + $0x7e8] sm:$0xf]  ;;  %5000 = vmatpush.bf16.msra.mxu2 %v7048_v7  ;;  %v7397_v7 = vld [vmem:[#allocation8 + $0x5b8] sm:$0xf0]  ;;  %v8290_v63 = vld [vmem:[#allocation8 + $0x6cc] sm:$0xf] }
 0x2b5   :  { %4915 = vmatpush.bf16.msra.mxu3 %v7076_v27  ;;  %v7684_v34 = vor.u32 %v8328_v14, %v7683_v13  ;;  %v3375_v27 = vperm.slane %v8747_v12, 1  ;;  %v8312_v13 = vld [vmem:[#allocation8 + $0x774] sm:$0xf0]  ;;  %v6968_v14 = vor.u32 %v8146_v8, %v6965_v9  ;;  %v8198_v8 = vld [vmem:[#allocation8 + $0x3ec] sm:$0xf] }
 0x2b6   :  { %4977 = vmatpush.bf16.msra.mxu0 %v6744_v33  ;;  %v7013_v33 = vld [vmem:[#allocation8 + $0x2b8] sm:$0xf0] }
 0x2b7   :  { %v7016_v6 = vor.u32 %v8158_v29, %v7013_v33  ;;  %v7237_v29 = vld [vmem:[#allocation8 + $0x478] sm:$0xf0]  ;;  %v8246_v33 = vld [vmem:[#allocation8 + $0x56c] sm:$0xf] }
 0x2b8   :  { %4990 = vmatpush.bf16.msra.mxu1 %v6872_v35  ;;  %v8230_v35 = vld [vmem:[#allocation8 + $0x4ec] sm:$0xf]  ;;  %5001 = vmatpush.bf16.msra.mxu2 %v7032_v17  ;;  %v7173_v9 = vld [vmem:[#allocation8 + $0x3f8] sm:$0xf0] }
 0x2b9   :  { %4916 = vmatpush.bf16.msra.mxu3 %v7060_v26  ;;  %v7304_v36 = vor.u32 %v8230_v35, %v7301_v38  ;;  %v8142_v17 = vld [vmem:[#allocation8 + $0x22c] sm:$0xf]  ;;  %v7365_v38 = vld [vmem:[#allocation8 + $0x578] sm:$0xf0] }
 0x2ba   :  { %4978 = vmatpush.bf16.msra.mxu0 %v6728_v24  ;;  %v7668_v24 = vor.u32 %v8324_v62, %v7667_v44  ;;  %v6952_v44 = vor.u32 %v8142_v17, %v6949_v22  ;;  %v7240_v62 = vor.u32 %v8214_v28, %v7237_v29  ;;  %v8194_v22 = vld [vmem:[#allocation8 + $0x3cc] sm:$0xf] }
 0x2bb   :  { %v8282_v29 = vld [vmem:[#allocation8 + $0x68c] sm:$0xf] }
 0x2bc   :  { %4991 = vmatpush.bf16.msra.mxu1 %v6856_v54  ;;  %v8258_v54 = vld [vmem:[#allocation8 + $0x5cc] sm:$0xf]  ;;  %4917 = vmatmul.bf16.vlgmr.msra.gmra.mxu3 %v8695_v30 }
 0x2bd   :  { %4961 = vmatpush.bf16.msrb.mxu3 %v7684_v34  ;;  %5002 = vmatpush.bf16.msra.mxu2 %v7016_v6  ;;  %v7416_v57 = vor.u32 %v8258_v54, %v7413_v37  ;;  %v6933_v6 = vld [vmem:[#allocation8 + $0x218] sm:$0xf0]  ;;  %v7587_v37 = vld [vmem:[#allocation8 + $0x728] sm:$0xf] }
 0x2be   :  { %4979 = vmatpush.bf16.msra.mxu0 %v6712_v45  ;;  %v7269_v45 = vld [vmem:[#allocation8 + $0x4b8] sm:$0xf0] }
 0x2bf   :  { %v7272_v1 = vor.u32 %v8222_v59, %v7269_v45  ;;  %v7557_v54 = vld [vmem:[#allocation8 + $0x6f8] sm:$0xf0]  ;;  %v8238_v59 = vld [vmem:[#allocation8 + $0x52c] sm:$0xf] }
 0x2c0   :  { %4992 = vmatpush.bf16.msra.mxu1 %v6840_v60  ;;  %v8254_v60 = vld [vmem:[#allocation8 + $0x5ac] sm:$0xf]  ;;  %v7560_v56 = vor.u32 %v8294_v53, %v7557_v54 }
 0x2c1   :  { %4962 = vmatpush.bf16.msrb.mxu3 %v7668_v24  ;;  %5003 = vmatpush.bf16.msra.mxu2 %v7000_v31  ;;  %v7400_v10 = vor.u32 %v8254_v60, %v7397_v7  ;;  %v8242_v24 = vld [vmem:[#allocation8 + $0x54c] sm:$0xf]  ;;  %v7588_v60 = vor.u32 %v8304_v55, %v7587_v37  ;;  %v7333_v7 = vld [vmem:[#allocation8 + $0x538] sm:$0xf0] }
 0x2c2   :  { %4980 = vmatpush.bf16.msra.mxu0 %v6696_v49  ;;  %v7381_v49 = vld [vmem:[#allocation8 + $0x598] sm:$0xf0]  ;;  %v7352_v15 = vor.u32 %v8242_v24, %v7349_v52  ;;  %v8182_v24 = vld [vmem:[#allocation8 + $0x36c] sm:$0xf] }
 0x2c3   :  { %v7109_v52 = vld [vmem:[#allocation8 + $0x378] sm:$0xf0]  ;;  %v8270_v37 = vld [vmem:[#allocation8 + $0x62c] sm:$0xf] }
 0x2c4   :  { %4993 = vmatpush.bf16.msra.mxu1 %v6824_v16  ;;  %v7256_v16 = vor.u32 %v8218_v18, %v7253_v11  ;;  %v8202_v18 = vld [vmem:[#allocation8 + $0x40c] sm:$0xf]  ;;  %v7189_v11 = vld [vmem:[#allocation8 + $0x418] sm:$0xf0]  ;;  %v7112_v54 = vor.u32 %v8182_v24, %v7109_v52 }
 0x2c5   :  { %4963 = vmatpush.bf16.msrb.mxu3 %v7652_v58  ;;  %5004 = vmatpush.bf16.msra.mxu2 %v6984_v32  ;;  %v7205_v58 = vld [vmem:[#allocation8 + $0x438] sm:$0xf0]  ;;  %v7571_v32 = vld [vmem:[#allocation8 + $0x708] sm:$0xf]  ;;  %v7192_v17 = vor.u32 %v8202_v18, %v7189_v11  ;;  %v8322_v18 = vld [vmem:[#allocation8 + $0x7cc] sm:$0xf] }
 0x2c6   :  { %4981 = vmatpush.bf16.msra.mxu0 %v6680_v41  ;;  %v4775_v2 = vpop.f32.mrf.mxu0  ;;  %v8308_v41 = vld [vmem:[#allocation8 + $0x754] sm:$0xf0]  ;;  %v7461_v55 = vld [vmem:[#allocation8 + $0x638] sm:$0xf0] }
 0x2c7   :  { %v4776_v34 = vadd.f32 %v4775_v2, %v3375_v27  ;;  %v7604_v39 = vor.u32 %v8308_v41, %v7603_v40  ;;  %v7157_v2 = vld [vmem:[#allocation8 + $0x3d8] sm:$0xf0]  ;;  %v8278_v40 = vld [vmem:[#allocation8 + $0x66c] sm:$0xf] }
 0x2c8   :  { %4994 = vmatpush.bf16.msra.mxu1 %v6808_v23  ;;  %v4788_v35 = vpop.f32.mrf.mxu1  ;;  %v8138_v23 = vld [vmem:[#allocation8 + $0x20c] sm:$0xf]  ;;  %v7160_v28 = vor.u32 %v8194_v22, %v7157_v2  ;;  %v7493_v41 = vld [vmem:[#allocation8 + $0x678] sm:$0xf0]  ;;  %v3376_v2 = vperm.slane %v8747_v12, 2 }
 0x2c9   :  { %4982 = vmatmul.bf16.vlgmr.msra.gmra.mxu0 %v8689_v3  ;;  %v8250_v3 = vld [vmem:[#allocation8 + $0x58c] sm:$0xf]  ;;  %4964 = vmatpush.bf16.msrb.mxu3 %v7636_v47  ;;  %v8765_v43 = vadd.f32 %v4788_v35, %v4776_v34  ;;  %v6936_v4 = vor.u32 %v8138_v23, %v6933_v6  ;;  %v7544_v47 = vor.u32 %v8290_v63, %v7541_v42  ;;  %v7141_v35 = vld [vmem:[#allocation8 + $0x3b8] sm:$0xf0] }
 0x2ca   :  { %5026 = vmatpush.bf16.msrb.mxu0 %v7304_v36  ;;  %v7384_v25 = vor.u32 %v8250_v3, %v7381_v49  ;;  %5005 = vmatpush.bf16.msra.mxu2 %v6968_v14  ;;  %v7368_v36 = vor.u32 %v8246_v33, %v7365_v38  ;;  %v8234_v49 = vld [vmem:[#allocation8 + $0x50c] sm:$0xf]  ;;  %v7509_v33 = vld [vmem:[#allocation8 + $0x698] sm:$0xf0] }
 0x2cb   :  { %4995 = vmatmul.bf16.vlgmr.msra.gmra.mxu1 %v8691_v61  ;;  %v7619_v61 = vld [vmem:[#allocation8 + $0x768] sm:$0xf]  ;;  %v8286_v14 = vld [vmem:[#allocation8 + $0x6ac] sm:$0xf]  ;;  %v7125_v23 = vld [vmem:[#allocation8 + $0x398] sm:$0xf0] }
 0x2cc   :  { %5039 = vmatpush.bf16.msrb.mxu1 %v7432_v50  ;;  %v7620_v26 = vor.u32 %v8312_v13, %v7619_v61  ;;  %v7221_v50 = vld [vmem:[#allocation8 + $0x458] sm:$0xf0]  ;;  %v7176_v13 = vor.u32 %v8198_v8, %v7173_v9  ;;  %v8190_v34 = vld [vmem:[#allocation8 + $0x3ac] sm:$0xf] }
 0x2cd   :  { %v7224_v31 = vor.u32 %v8210_v19, %v7221_v50  ;;  %v7317_v61 = vld [vmem:[#allocation8 + $0x518] sm:$0xf0]  ;;  %v7144_v38 = vor.u32 %v8190_v34, %v7141_v35  ;;  %v8274_v19 = vld [vmem:[#allocation8 + $0x64c] sm:$0xf] }
 0x2ce   :  { %5027 = vmatpush.bf16.msrb.mxu0 %v7288_v46  ;;  %4965 = vmatpush.bf16.msrb.mxu3 %v7620_v26  ;;  %v4777_v46 = vpop.f32.mrf.mxu0  ;;  %v7477_v50 = vld [vmem:[#allocation8 + $0x658] sm:$0xf0]  ;;  %v8326_v8 = vld [vmem:[#allocation8 + $0x7ec] sm:$0xf] }
 0x2cf   :  { %5006 = vmatpush.bf16.msra.mxu2 %v6952_v44  ;;  %v4749_v44 = vpop.f32.mrf.mxu2  ;;  %v7480_v53 = vor.u32 %v8274_v19, %v7477_v50  ;;  %v7464_v46 = vor.u32 %v8270_v37, %v7461_v55  ;;  %v7685_v9 = vld [vmem:[#allocation8 + $0x7f8] sm:$0xf0]  ;;  %v8306_v35 = vld [vmem:[#allocation8 + $0x74c] sm:$0xf] }
 0x2d0   :  { %5040 = vmatpush.bf16.msrb.mxu1 %v7416_v57  ;;  %v8206_v57 = vld [vmem:[#allocation8 + $0x42c] sm:$0xf]  ;;  %v4790_v45 = vpop.f32.mrf.mxu1  ;;  %v8772_v6 = vadd.f32 %v4749_v44, %v8758_v0  ;;  %v7669_v11 = vld [vmem:[#allocation8 + $0x7d8] sm:$0xf0] }
 0x2d1   :  { %v7208_v27 = vor.u32 %v8206_v57, %v7205_v58  ;;  %v7445_v57 = vld [vmem:[#allocation8 + $0x618] sm:$0xf0]  ;;  %v8174_v58 = vld [vmem:[#allocation8 + $0x32c] sm:$0xf] }
 0x2d2   :  { %5028 = vmatpush.bf16.msrb.mxu0 %v7272_v1  ;;  %4966 = vmatpush.bf16.msrb.mxu3 %v7604_v39  ;;  %v8300_v1 = vld [vmem:[#allocation8 + $0x714] sm:$0xf0]  ;;  %v8302_v44 = vld [vmem:[#allocation8 + $0x72c] sm:$0xf]  ;;  %v7573_v50 = vld [vmem:[#allocation8 + $0x718] sm:$0xf0] }
 0x2d3   :  { %5007 = vmatpush.bf16.msra.mxu2 %v6936_v4  ;;  %v7572_v3 = vor.u32 %v8300_v1, %v7571_v32  ;;  %v8178_v4 = vld [vmem:[#allocation8 + $0x34c] sm:$0xf]  ;;  %v7061_v1 = vld [vmem:[#allocation8 + $0x318] sm:$0xf0] }
 0x2d4   :  { %5041 = vmatpush.bf16.msrb.mxu1 %v7400_v10  ;;  %v7336_v10 = vor.u32 %v8238_v59, %v7333_v7  ;;  %v7077_v59 = vld [vmem:[#allocation8 + $0x338] sm:$0xf0]  ;;  %v8170_v32 = vld [vmem:[#allocation8 + $0x30c] sm:$0xf] }
 0x2d5   :  { %v7080_v63 = vor.u32 %v8174_v58, %v7077_v59  ;;  %v8298_v19 = vld [vmem:[#allocation8 + $0x70c] sm:$0xf] }
 0x2d6   :  { %5029 = vmatpush.bf16.msrb.mxu0 %v7256_v16  ;;  %4967 = vmatpush.bf16.msrb.mxu3 %v7588_v60  ;;  %v7525_v16 = vld [vmem:[#allocation8 + $0x6b8] sm:$0xf0]  ;;  %v7576_v24 = vor.u32 %v8298_v19, %v7573_v50 }
 0x2d7   :  { %5052 = vmatpush.bf16.msrb.mxu2 %v7560_v56  ;;  %v7528_v26 = vor.u32 %v8286_v14, %v7525_v16  ;;  %v4751_v0 = vpop.f32.mrf.mxu2  ;;  %v8266_v56 = vld [vmem:[#allocation8 + $0x60c] sm:$0xf]  ;;  %v7637_v16 = vld [vmem:[#allocation8 + $0x798] sm:$0xf0] }
 0x2d8   :  { %5042 = vmatpush.bf16.msrb.mxu1 %v7384_v25  ;;  %5008 = vmatmul.bf16.vlgmr.msra.gmra.mxu2 %v8693_v5  ;;  %v7320_v25 = vor.u32 %v8234_v49, %v7317_v61  ;;  %v7512_v5 = vor.u32 %v8282_v29, %v7509_v33  ;;  %v7448_v60 = vor.u32 %v8266_v56, %v7445_v57  ;;  %v8318_v61 = vld [vmem:[#allocation8 + $0x7ac] sm:$0xf]  ;;  %v8786_v56 = vld [vmem:[#allocation11] sm:$0xf] }
 0x2d9   :  { %v7672_v49 = vor.u32 %v8322_v18, %v7669_v11  ;;  %v8314_v14 = vld [vmem:[#allocation8 + $0x78c] sm:$0xf] }
 0x2da   :  { %5030 = vmatpush.bf16.msrb.mxu0 %v7240_v62  ;;  %4968 = vmatpush.bf16.msrb.mxu3 %v7572_v3  ;;  %v8186_v62 = vld [vmem:[#allocation8 + $0x38c] sm:$0xf]  ;;  %v7640_v22 = vor.u32 %v8314_v14, %v7637_v16 }
 0x2db   :  { %5053 = vmatpush.bf16.msrb.mxu2 %v7544_v47  ;;  %v7128_v39 = vor.u32 %v8186_v62, %v7125_v23  ;;  %v7688_v47 = vor.u32 %v8326_v8, %v7685_v9  ;;  %v7589_v62 = vld [vmem:[#allocation8 + $0x738] sm:$0xf0]  ;;  %v8346_v9 = vld [vmem:[#allocation10] sm:$0xf] }
 0x2dc   :  { %5043 = vmatpush.bf16.msrb.mxu1 %v7368_v36  ;;  %v7496_v36 = vor.u32 %v8278_v40, %v7493_v41 }
 0x2dd   :  { %4969 = vmatmul.bf16.vlgmr.msrb.gmra.mxu3 %v8742_v48 }
 0x2de   :  { %5031 = vmatpush.bf16.msrb.mxu0 %v7224_v31  ;;  %5013 = vmatpush.bf16.msra.mxu3 %v7176_v13  ;;  %v7093_v31 = vld [vmem:[#allocation8 + $0x358] sm:$0xf0] }
 0x2df   :  { %5054 = vmatpush.bf16.msrb.mxu2 %v7528_v26  ;;  %v4801_v42 = vpop.f32.mrf.mxu2  ;;  %v7653_v13 = vld [vmem:[#allocation8 + $0x7b8] sm:$0xf0] }
 0x2e0   :  { %5044 = vmatpush.bf16.msrb.mxu1 %v7352_v15  ;;  %v7096_v15 = vor.u32 %v8178_v4, %v7093_v31 }
 0x2e2   :  { %5032 = vmatpush.bf16.msrb.mxu0 %v7208_v27  ;;  %5014 = vmatpush.bf16.msra.mxu3 %v7160_v28  ;;  %v4802_v27 = vadd.f32 %v4801_v42, %v8765_v43  ;;  %v7656_v43 = vor.u32 %v8318_v61, %v7653_v13 }
 0x2e3   :  { %5055 = vmatpush.bf16.msrb.mxu2 %v7512_v5  ;;  %v7605_v5 = vld [vmem:[#allocation8 + $0x758] sm:$0xf0] }
 0x2e4   :  { %5045 = vmatpush.bf16.msrb.mxu1 %v7336_v10  ;;  %v7064_v10 = vor.u32 %v8170_v32, %v7061_v1  ;;  %v7608_v41 = vor.u32 %v8306_v35, %v7605_v5 }
 0x2e6   :  { %5033 = vmatpush.bf16.msrb.mxu0 %v7192_v17  ;;  %5015 = vmatpush.bf16.msra.mxu3 %v7144_v38 }
 0x2e7   :  { %5056 = vmatpush.bf16.msrb.mxu2 %v7496_v36  ;;  %v4803_v3 = vpop.f32.mrf.mxu2  ;;  %v7592_v36 = vor.u32 %v8302_v44, %v7589_v62 }
 0x2e8   :  { %5046 = vmatpush.bf16.msrb.mxu1 %v7320_v25  ;;  %v7621_v25 = vld [vmem:[#allocation8 + $0x778] sm:$0xf0] }
 0x2e9   :  { %5034 = vmatmul.bf16.vlgmr.msrb.gmra.mxu0 %v8709_v21  ;;  %v8774_v21 = vpop.f32.mrf.mxu0 }
 0x2ea   :  { %5016 = vmatpush.bf16.msra.mxu3 %v7128_v39 }
 0x2eb   :  { %5047 = vmatmul.bf16.vlgmr.msrb.gmra.mxu1 %v8707_v51  ;;  %v8776_v51 = vpop.f32.mrf.mxu1  ;;  %5057 = vmatpush.bf16.msrb.mxu2 %v7480_v53 }
 0x2ee   :  { %5017 = vmatpush.bf16.msra.mxu3 %v7112_v54 }
 0x2ef   :  { %5058 = vmatpush.bf16.msrb.mxu2 %v7464_v46 }
 0x2f1   :  { %v4829_v45 = vpop.f32.mrf.mxu0 }
 0x2f2   :  { %5018 = vmatpush.bf16.msra.mxu3 %v7096_v15  ;;  %v5092_v45 = vperm.slane %v8786_v56, 0 }
 0x2f3   :  { %v4842_v7 = vpop.f32.mrf.mxu1  ;;  %5059 = vmatpush.bf16.msrb.mxu2 %v7448_v60 }
 0x2f4   :  { %v4853_v17 = vpop.f32.mrf.mxu2 }
 0x2f6   :  { %5019 = vmatpush.bf16.msra.mxu3 %v7080_v63  ;;  %5060 = vmatmul.bf16.vlgmr.msrb.gmra.mxu2 %v8730_v20  ;;  %v8310_v20 = vld [vmem:[#allocation8 + $0x76c] sm:$0xf] }
 0x2f7   :  { %v7624_v33 = vor.u32 %v8310_v20, %v7621_v25 }
 0x2fa   :  { %5020 = vmatpush.bf16.msra.mxu3 %v7064_v10  ;;  %v3377_v10 = vperm.slane %v8346_v9, 3 }
 0x2fc   :  { %v4855_v40 = vpop.f32.mrf.mxu2 }
 0x2fd   :  { %5021 = vmatmul.bf16.vlgmr.msra.gmra.mxu3 %v8695_v30  ;;  %v4762_v34 = vpop.f32.mrf.mxu3 }
 0x2fe   :  { %5065 = vmatpush.bf16.msrb.mxu3 %v7688_v47  ;;  %v4763_v38 = vadd.f32 %v4762_v34, %v8772_v6  ;;  %v5094_v34 = vperm.slane %v8786_v56, 2 }
 0x300   :  { %v5082_v15 = vmul.f32 0.2, %v4763_v38  ;;  %vm5078_vm8 = vcmp.gt.f32.partialorder %v4763_v38, 0.0 }
 0x302   :  { %5066 = vmatpush.bf16.msrb.mxu3 %v7672_v49 }
 0x305   :  { %v4764_v39 = vpop.f32.mrf.mxu3 }
 0x306   :  { %5067 = vmatpush.bf16.msrb.mxu3 %v7656_v43  ;;  %v4879_v26 = vpop.f32.mrf.mxu0 }
 0x307   :  { %v4880_v28 = vadd.f32 %v4879_v26, %v3376_v2 }
 0x308   :  { %v4892_v29 = vpop.f32.mrf.mxu1 }
 0x309   :  { %v4893_v30 = vadd.f32 %v4892_v29, %v4880_v28 }
 0x30a   :  { %5068 = vmatpush.bf16.msrb.mxu3 %v7640_v22 }
 0x30d   :  { %v4814_v52 = vpop.f32.mrf.mxu3 }
 0x30e   :  { %5069 = vmatpush.bf16.msrb.mxu3 %v7624_v33  ;;  %v4881_v23 = vpop.f32.mrf.mxu0  ;;  %v4815_v53 = vadd.f32 %v4814_v52, %v4802_v27 }
 0x310   :  { %v4894_v12 = vpop.f32.mrf.mxu1  ;;  %v4828_v6 = vadd.f32 %v8774_v21, %v4815_v53  ;;  %v5086_v21 = vsel %vm5078_vm8, %v4763_v38, %v5082_v15 }
 0x311   :  { %v5100_v42 = vmul.f32 %v5092_v45, %v5086_v21 }
 0x312   :  { %5070 = vmatpush.bf16.msrb.mxu3 %v7608_v41  ;;  %v4841_v54 = vadd.f32 %v8776_v51, %v4828_v6 }
 0x314   :  { %v4854_v37 = vadd.f32 %v4853_v17, %v4841_v54  ;;  %v5095_v54 = vperm.slane %v8786_v56, 3 }
 0x315   :  { %v4816_v55 = vpop.f32.mrf.mxu3 }
 0x316   :  { %5071 = vmatpush.bf16.msrb.mxu3 %v7592_v36  ;;  %v4905_v0 = vpop.f32.mrf.mxu2 }
 0x317   :  { %v4906_v4 = vadd.f32 %v4905_v0, %v4893_v30 }
 0x31a   :  { %5072 = vmatpush.bf16.msrb.mxu3 %v7576_v24 }
 0x31d   :  { %5073 = vmatmul.bf16.vlgmr.msrb.gmra.mxu3 %v8742_v48  ;;  %v5093_v48 = vperm.slane %v8786_v56, 1 }
 0x31e   :  { %v4907_v58 = vpop.f32.mrf.mxu2 }
 0x321   :  { %v4866_v57 = vpop.f32.mrf.mxu3 }
 0x322   :  { %v4867_v59 = vadd.f32 %v4866_v57, %v4854_v37 }
 0x324   :  { %vm5079_vm9 = vcmp.gt.f32.partialorder %v4867_v59, 0.0  ;;  %v5083_v51 = vmul.f32 0.2, %v4867_v59 }
 0x326   :  { %v4931_v31 = vpop.f32.mrf.mxu0  ;;  %v5087_v63 = vsel %vm5079_vm9, %v4867_v59, %v5083_v51 }
 0x327   :  { %v5101_v32 = vmul.f32 %v5093_v48, %v5087_v63 }
 0x328   :  { %v4944_v46 = vpop.f32.mrf.mxu1 }
 0x329   :  { %v4868_v1 = vpop.f32.mrf.mxu3  ;;  %v5104_v27 = vadd.f32 %v5101_v32, %v5100_v42 }
 0x32e   :  { %v4933_v60 = vpop.f32.mrf.mxu0 }
 0x330   :  { %v4946_v7 = vpop.f32.mrf.mxu1 }
 0x336   :  { %v4957_v8 = vpop.f32.mrf.mxu2 }
 0x33e   :  { %v4959_v13 = vpop.f32.mrf.mxu2 }
 0x33f   :  { %v4918_v49 = vpop.f32.mrf.mxu3 }
 0x340   :  { %v4919_v61 = vadd.f32 %v4918_v49, %v4906_v4 }
 0x342   :  { %v4932_v43 = vadd.f32 %v4931_v31, %v4919_v61 }
 0x344   :  { %v4945_v17 = vadd.f32 %v4944_v46, %v4932_v43  ;;  %v8339_v46 = vld [vmem:[#allocation2] ss:$0 sm:$0xff] }
 0x346   :  { %v4983_v47 = vpop.f32.mrf.mxu0  ;;  %v4958_v22 = vadd.f32 %v4957_v8, %v4945_v17 }
 0x347   :  { %v4984_v11 = vadd.f32 %v4983_v47, %v3377_v10  ;;  %v4920_v2 = vpop.f32.mrf.mxu3 }
 0x348   :  { %v4996_v18 = vpop.f32.mrf.mxu1 }
 0x349   :  { %v4997_v3 = vadd.f32 %v4996_v18, %v4984_v11 }
 0x34e   :  { %v4985_v14 = vpop.f32.mrf.mxu0 }
 0x350   :  { %v4998_v16 = vpop.f32.mrf.mxu1 }
 0x35b   :  { %v5009_v20 = vpop.f32.mrf.mxu2 }
 0x35c   :  { %v5010_v39 = vadd.f32 %v5009_v20, %v4997_v3 }
 0x360   :  { %v4970_v28 = vpop.f32.mrf.mxu3 }
 0x361   :  { %v4971_v29 = vadd.f32 %v4970_v28, %v4958_v22 }
 0x363   :  { %v5011_v33 = vpop.f32.mrf.mxu2  ;;  %vm5080_vm10 = vcmp.gt.f32.partialorder %v4971_v29, 0.0  ;;  %v5084_v35 = vmul.f32 0.2, %v4971_v29 }
 0x365   :  { %v5088_v38 = vsel %vm5080_vm10, %v4971_v29, %v5084_v35 }
 0x366   :  { %v5035_v25 = vpop.f32.mrf.mxu0  ;;  %v5102_v40 = vmul.f32 %v5094_v34, %v5088_v38 }
 0x368   :  { %v5048_v26 = vpop.f32.mrf.mxu1  ;;  %v4972_v41 = vpop.f32.mrf.mxu3  ;;  %v5105_v44 = vadd.f32 %v5104_v27, %v5102_v40 }
 0x36e   :  { %v5037_v5 = vpop.f32.mrf.mxu0 }
 0x370   :  { %v5050_v30 = vpop.f32.mrf.mxu1 }
 0x379   :  { %v5061_v62 = vpop.f32.mrf.mxu2 }
 0x380   :  { %v5022_v23 = vpop.f32.mrf.mxu3 }
 0x381   :  { %v5063_v12 = vpop.f32.mrf.mxu2  ;;  %v5023_v19 = vadd.f32 %v5022_v23, %v5010_v39 }
 0x383   :  { %v5036_v50 = vadd.f32 %v5035_v25, %v5023_v19 }
 0x385   :  { %v5049_v24 = vadd.f32 %v5048_v26, %v5036_v50 }
 0x387   :  { %v5062_v52 = vadd.f32 %v5061_v62, %v5049_v24 }
 0x388   :  { %v5024_v36 = vpop.f32.mrf.mxu3 }
 0x3a0   :  { %v5074_v53 = vpop.f32.mrf.mxu3 }
 0x3a1   :  { %v5075_v6 = vadd.f32 %v5074_v53, %v5062_v52 }
 0x3a3   :  { %vm5081_vm11 = vcmp.gt.f32.partialorder %v5075_v6, 0.0  ;;  %v5085_v37 = vmul.f32 0.2, %v5075_v6 }
 0x3a5   :  { %v5089_v55 = vsel %vm5081_vm11, %v5075_v6, %v5085_v37 }
 0x3a6   :  { %v5103_v0 = vmul.f32 %v5095_v54, %v5089_v55 }
 0x3a8   :  { %v5076_v4 = vpop.f32.mrf.mxu3  ;;  %v5106_v31 = vadd.f32 %v5105_v44, %v5103_v0 }
 0x3aa   :  { %5107 = vadd.xlane.f32.xlu0 %v5106_v31 }
 0x41d   :  { %v5108_v15 = vpop.xlane.xlu0 %5107 }
 0x41e   :  { %v5113_v57 = vadd.f32 %v8339_v46, %v5108_v15 }
 0x420   :  { %v5114_v58 = vsub.f32 0.0, %v5113_v57 }
 0x422   :  { %v5115_v59 = vmul.f32 1.442695, %v5114_v58 }
 0x424   :  { %8340 = vpow2.f32 %v5115_v59 }
 0x42a   :  { %v8341_v45 = vpop.eup %8340 }
 0x42b   :  { %v5117_v48 = vadd.f32 1.0, %v8341_v45 }
 0x42d   :  { %8342 = vrcp.f32 %v5117_v48 }
 0x433   :  { %v8343_v21 = vpop.eup %8342 }
 0x434   :  { %5120 = vst.msk [vmem:[%s8802_s7] sm:$0xff] %vm5119_vm12, %v8343_v21 }
 0x435   :  { %5125 = vsyncpa [#allocation4], 1 }
 0x436   :  { %5126 = vsyncpa [#allocation6], 1 }
 0x437   :  { %5127 = vsyncpa [#allocation9], 1 }
 0x438   :  { %5128 = vsyncpa [#allocation12], 1 }

</bundles_post_ra>
